<compile_context>
chip_gen: v5e
topology: v5e:2x2
jax: 0.10.0
libtpu: 0.0.40
codegen_flags: <defaults>
</compile_context>

<pallas_src>
import math

import jax
import jax.numpy as jnp
from jax.experimental import pallas as pl
from jax.experimental.pallas import tpu as pltpu


def _round_up(x: int, m: int) -> int:
    return (x + m - 1) // m * m


def _window_set_kernel(x_ref, o_ref):
    """x_ref: (BT, W*size) lane-dense time slab  ->  o_ref: (BT, W, size)."""
    W = o_ref.shape[1]
    size = o_ref.shape[2]
    # Static, *bounded* unroll: W is capped by the tile chooser (<= 128), it is
    # NOT the full number of windows.  Each copy moves one contiguous window of
    # the lane-dense input slab into its (lane-padded) output row.
    for w in range(W):
        o_ref[:, w, :] = x_ref[:, w * size:(w + 1) * size]


def _choose_tiles(B: int, num: int, size: int, itemsize: int):
    """Pick (BT, W): rows-per-block and windows-per-block."""
    # Sublane packing multiple: 8 for 32-bit, 16 for bf16, 32 for int8.
    sub = 8 * max(1, 4 // max(1, itemsize))

    # ---- window-group tile W -------------------------------------------
    # Legality: input block lane width W*size must be a multiple of 128 (or
    # equal T); output block second-minor W must be a multiple of `sub` (or
    # equal num).
    g = 128 // math.gcd(128, size)            # min windows for a 128-lane slab
    w_min = (sub * g) // math.gcd(sub, g)     # lcm(sub, g)
    if num % w_min == 0:
        W = w_min
        # Fewer / bigger DMA steps, but keep the in-kernel unroll small.
        while num % (2 * W) == 0 and (2 * W) * size <= 512 and 2 * W <= 128:
            W *= 2
    else:
        W = num                                # full window axis: always legal

    # ---- row tile BT ----------------------------------------------------
    # Per-row VMEM cost (pipeline double-buffers both blocks):
    #   input : lane-dense slab (rounded up to 128 lanes)
    #   output: lane-padded block (minor dim -> multiple of 128, second-minor
    #           -> multiple of the sublane packing)
    in_row = _round_up(W * size, 128) * itemsize
    out_row = _round_up(W, sub) * _round_up(size, 128) * itemsize
    budget = 8 * 1024 * 1024                   # ~8 MiB total pipeline buffers
    cap = max(sub, budget // (2 * (in_row + out_row)))
    if B <= sub:
        BT = B                                 # full extent: always legal
    else:
        BT = min(1024, (cap // sub) * sub, (B // sub) * sub)
        BT = max(BT, sub)
    return BT, W


def window_set(x: jax.Array, size: int) -> jax.Array:
    """Pallas equivalent of WindowSet(size).forward(x)."""
    *lead, T = x.shape
    if T % size != 0:
        raise ValueError("time dim must be divisible by the window size")
    num = T // size

    B = 1
    for d in lead:
        B *= d

    # Flattening leading dims is a contiguous row-major merge (no data
    # reordering); for the common [batch, T] input it is a no-op.
    x2 = x.reshape(B, T)

    itemsize = jnp.dtype(x.dtype).itemsize
    BT, W = _choose_tiles(B, num, size, itemsize)
    grid = (pl.cdiv(B, BT), pl.cdiv(num, W))   # W divides num by construction

    out = pl.pallas_call(
        _window_set_kernel,
        out_shape=jax.ShapeDtypeStruct((B, num, size), x.dtype),
        grid_spec=pltpu.PrefetchScalarGridSpec(
            num_scalar_prefetch=0,
            grid=grid,
            # Window split happens here: block g of the input covers the
            # contiguous time slab [g*W*size, (g+1)*W*size) of each row tile.
            in_specs=[pl.BlockSpec((BT, W * size), lambda b, g: (b, g))],
            out_specs=pl.BlockSpec((BT, W, size), lambda b, g: (b, g, 0)),
        ),
        compiler_params=pltpu.CompilerParams(
            # Both axes are fully independent -> shard across TensorCores.
            dimension_semantics=("parallel", "parallel"),
            vmem_limit_bytes=32 * 1024 * 1024,
        ),
        # Pure memory-bound relayout: tell XLA so it can overlap neighbors.
        cost_estimate=pl.CostEstimate(
            flops=0, transcendentals=0, bytes_accessed=2 * B * T * itemsize),
    )(x2)

    # Splitting B back into the leading dims does not touch the tiled minor
    # dims -> free metadata reshape.
    return out.reshape(*lead, num, size)


if __name__ == "__main__":
    key = jax.random.PRNGKey(0)

    # [batch, channels, spatial, T] with a window of 4 time steps.
    batch, channels, spatial, T = 2, 4, 16, 16
    size = 4
    x = jax.random.normal(key, (batch, channels, spatial, T), dtype=jnp.float32)

    y = window_set(x, size)
    jax.block_until_ready(y)

    # Reference: exactly what torch's unsqueeze(-2).reshape(...) computes.
    y_ref = x.reshape(batch, channels, spatial, T // size, size)
    assert y.shape == (batch, channels, spatial, T // size, size), y.shape
    assert y.dtype == x.dtype
    assert jnp.array_equal(y, y_ref), "mismatch vs reference reshape"

    # Second check: exercises the lane-dense window-group path (W*size == 512)
    # on a plain [batch, T] input.
    x2 = jax.random.normal(jax.random.PRNGKey(0), (16, 1024), dtype=jnp.float32)
    y2 = window_set(x2, 8)
    jax.block_until_ready(y2)
    assert jnp.array_equal(y2, x2.reshape(16, 128, 8)), "mismatch (grouped path)"

    print("KERNEL_OK")
</pallas_src>

<mosaic_0001>
module attributes {stable_mosaic.version = 11 : i64} {
  func.func @_window_set_kernel(%arg0: i32, %arg1: i32, %arg2: memref<128x16xf32, #tpu.memory_space<vmem>>, %arg3: memref<128x4x4xf32, #tpu.memory_space<vmem>>) attributes {dimension_semantics = [#tpu.dimension_semantics<parallel>, #tpu.dimension_semantics<parallel>], iteration_bounds = array<i64: 1, 1>, scalar_prefetch = 0 : i64, scratch_operands = 0 : i64, tpu.core_type = #tpu.core_type<tc>, window_params = [{transform_indices = @transform_0, window_bounds = array<i64: 128, 16>}, {transform_indices = @transform_1, window_bounds = array<i64: 128, 4, 4>}]} {
    %c0 = arith.constant 0 : index
    %c0_0 = arith.constant 0 : index
    %0 = vector.load %arg2[%c0, %c0_0] : memref<128x16xf32, #tpu.memory_space<vmem>>, vector<128x4xf32>
    %c0_1 = arith.constant 0 : index
    %c0_2 = arith.constant 0 : index
    %c0_3 = arith.constant 0 : index
    %1 = vector.load %arg3[%c0_1, %c0_2, %c0_3] : memref<128x4x4xf32, #tpu.memory_space<vmem>>, vector<128x1x4xf32>
    %2 = vector.shape_cast %1 : vector<128x1x4xf32> to vector<128x4xf32>
    %3 = vector.shape_cast %0 : vector<128x4xf32> to vector<128x1x4xf32>
    tpu.vector_store %arg3[%c0_1, %c0_2, %c0_3], %3 {strides = array<i32>} : memref<128x4x4xf32, #tpu.memory_space<vmem>>, vector<128x1x4xf32>,
    %c0_4 = arith.constant 0 : index
    %c4 = arith.constant 4 : index
    %4 = vector.load %arg2[%c0_4, %c4] : memref<128x16xf32, #tpu.memory_space<vmem>>, vector<128x4xf32>
    %c0_5 = arith.constant 0 : index
    %c1 = arith.constant 1 : index
    %c0_6 = arith.constant 0 : index
    %5 = vector.load %arg3[%c0_5, %c1, %c0_6] : memref<128x4x4xf32, #tpu.memory_space<vmem>>, vector<128x1x4xf32>
    %6 = vector.shape_cast %5 : vector<128x1x4xf32> to vector<128x4xf32>
    %7 = vector.shape_cast %4 : vector<128x4xf32> to vector<128x1x4xf32>
    tpu.vector_store %arg3[%c0_5, %c1, %c0_6], %7 {strides = array<i32>} : memref<128x4x4xf32, #tpu.memory_space<vmem>>, vector<128x1x4xf32>,
    %c0_7 = arith.constant 0 : index
    %c8 = arith.constant 8 : index
    %8 = vector.load %arg2[%c0_7, %c8] : memref<128x16xf32, #tpu.memory_space<vmem>>, vector<128x4xf32>
    %c0_8 = arith.constant 0 : index
    %c2 = arith.constant 2 : index
    %c0_9 = arith.constant 0 : index
    %9 = vector.load %arg3[%c0_8, %c2, %c0_9] : memref<128x4x4xf32, #tpu.memory_space<vmem>>, vector<128x1x4xf32>
    %10 = vector.shape_cast %9 : vector<128x1x4xf32> to vector<128x4xf32>
    %11 = vector.shape_cast %8 : vector<128x4xf32> to vector<128x1x4xf32>
    tpu.vector_store %arg3[%c0_8, %c2, %c0_9], %11 {strides = array<i32>} : memref<128x4x4xf32, #tpu.memory_space<vmem>>, vector<128x1x4xf32>,
    %c0_10 = arith.constant 0 : index
    %c12 = arith.constant 12 : index
    %12 = vector.load %arg2[%c0_10, %c12] : memref<128x16xf32, #tpu.memory_space<vmem>>, vector<128x4xf32>
    %c0_11 = arith.constant 0 : index
    %c3 = arith.constant 3 : index
    %c0_12 = arith.constant 0 : index
    %13 = vector.load %arg3[%c0_11, %c3, %c0_12] : memref<128x4x4xf32, #tpu.memory_space<vmem>>, vector<128x1x4xf32>
    %14 = vector.shape_cast %13 : vector<128x1x4xf32> to vector<128x4xf32>
    %15 = vector.shape_cast %12 : vector<128x4xf32> to vector<128x1x4xf32>
    tpu.vector_store %arg3[%c0_11, %c3, %c0_12], %15 {strides = array<i32>} : memref<128x4x4xf32, #tpu.memory_space<vmem>>, vector<128x1x4xf32>,
    return
  }
  func.func @transform_0(%arg0: i32, %arg1: i32) -> (i32, i32) {
    %c0_i32 = arith.constant 0 : i32
    return %arg0, %arg1 : i32, i32
  }
  func.func @transform_1(%arg0: i32, %arg1: i32) -> (i32, i32, i32) {
    %c0_i32 = arith.constant 0 : i32
    %c0_i32_0 = arith.constant 0 : i32
    return %arg0, %arg1, %c0_i32 : i32, i32, i32
  }
}

</mosaic_0001>

<bundles_post_ra>
// kernel: tpu_custom_call.1
= control target key start
LH: loop header
LB: loop body
LE: loop exit
PB: predicated region body
PF: predicated region fallthrough
CT: control target
= control target key end

     0   :  { %s2752_s8 = smov 124   ;;  %vm264_vm0 = vcmask 24576   ;;  %s2753_s21 = smov 120   ;;  %s5633_s0 = inlined_call_operand.vmem [shape: f32[128,16], index: 0, kind: input, shape index: {}]   ;;  %s5634_s1 = inlined_call_operand.vmem [shape: f32[128,4,4], index: 1, kind: output, shape index: {}]  }
   0x1   :  { %v393_v0 = vld [vmem:[%s5633_s0] sm:$0xff]  ;;  %v394_v15 = vld [vmem:[%s5633_s0 + $0x8] sm:$0xff]  ;;  %v395_v31 = vld [vmem:[%s5633_s0 + $0x10] sm:$0xff]  ;;  %s2754_s29 = smov 116  }
   0x2   :  { %v537_v1 = vperm.slane %v393_v0, 0  ;;  %v426_v2 = vrot.slane %v393_v0, 2  ;;  %v428_v3 = vrot.slane %v393_v0, 4  ;;  %v425_v5 = vrot.slane %v393_v0, 1  ;;  %v396_v47 = vld [vmem:[%s5633_s0 + $0x18] sm:$0xff]  ;;  %v397_v63 = vld [vmem:[%s5633_s0 + $0x20] sm:$0xff] }
   0x3   :  { %v427_v7 = vrot.slane %v393_v0, 3  ;;  %v429_v8 = vrot.slane %v393_v0, 5  ;;  %v430_v12 = vrot.slane %v393_v0, 6  ;;  %v431_v13 = vrot.slane %v393_v0, 7 }
   0x4   :  { %665 = vrot.lane.b32.xlu0 %v537_v1, %s2752_s8  ;;  %v539_v4 = vperm.slane %v426_v2, 0  ;;  %v541_v6 = vperm.slane %v428_v3, 0  ;;  %v538_v9 = vperm.slane %v425_v5, 0  ;;  %v545_v17 = vperm.slane %v394_v15, 0 }
   0x5   :  { %v540_v10 = vperm.slane %v427_v7, 0  ;;  %v542_v11 = vperm.slane %v429_v8, 0  ;;  %v543_v14 = vperm.slane %v430_v12, 0  ;;  %v544_v16 = vperm.slane %v431_v13, 0 }
   0x6   :  { %669 = vrot.lane.b32.xlu1 %v539_v4, %s2752_s8  ;;  %673 = vrot.lane.b32.xlu2 %v541_v6, %s2752_s8  ;;  %v432_v18 = vrot.slane %v394_v15, 1  ;;  %v433_v19 = vrot.slane %v394_v15, 2  ;;  %v434_v20 = vrot.slane %v394_v15, 3  ;;  %v435_v24 = vrot.slane %v394_v15, 4 }
   0x7   :  { %v436_v25 = vrot.slane %v394_v15, 5  ;;  %v437_v26 = vrot.slane %v394_v15, 6  ;;  %v438_v30 = vrot.slane %v394_v15, 7  ;;  %v439_v32 = vrot.slane %v395_v31, 1 }
   0x8   :  { %v546_v21 = vperm.slane %v432_v18, 0  ;;  %v547_v22 = vperm.slane %v433_v19, 0  ;;  %v548_v23 = vperm.slane %v434_v20, 0  ;;  %v549_v27 = vperm.slane %v435_v24, 0 }
   0x9   :  { %v550_v28 = vperm.slane %v436_v25, 0  ;;  %v551_v29 = vperm.slane %v437_v26, 0  ;;  %v552_v33 = vperm.slane %v438_v30, 0  ;;  %v553_v34 = vperm.slane %v395_v31, 0 }
   0xa   :  { %v554_v35 = vperm.slane %v439_v32, 0  ;;  %v440_v36 = vrot.slane %v395_v31, 2  ;;  %v441_v37 = vrot.slane %v395_v31, 3  ;;  %v442_v38 = vrot.slane %v395_v31, 4 }
   0xb   :  { %v443_v42 = vrot.slane %v395_v31, 5  ;;  %v444_v43 = vrot.slane %v395_v31, 6  ;;  %v445_v44 = vrot.slane %v395_v31, 7  ;;  %v446_v49 = vrot.slane %v396_v47, 1 }
   0xc   :  { %667 = vrot.lane.b32.xlu0 %v538_v9, %s2752_s8  ;;  %v555_v39 = vperm.slane %v440_v36, 0  ;;  %v556_v40 = vperm.slane %v441_v37, 0  ;;  %v557_v41 = vperm.slane %v442_v38, 0  ;;  %v447_v50 = vrot.slane %v396_v47, 2  ;;  %v399_v37 = vld [vmem:[%s5633_s0 + $0x30] sm:$0xff] }
   0xd   :  { %v558_v45 = vperm.slane %v443_v42, 0  ;;  %v559_v46 = vperm.slane %v444_v43, 0  ;;  %v560_v48 = vperm.slane %v445_v44, 0  ;;  %v561_v51 = vperm.slane %v396_v47, 0 }
   0xe   :  { %671 = vrot.lane.b32.xlu1 %v540_v10, %s2752_s8  ;;  %675 = vrot.lane.b32.xlu2 %v542_v11, %s2752_s8  ;;  %v562_v52 = vperm.slane %v446_v49, 0  ;;  %v563_v53 = vperm.slane %v447_v50, 0  ;;  %v448_v54 = vrot.slane %v396_v47, 3  ;;  %v449_v55 = vrot.slane %v396_v47, 4 }
   0xf   :  { %v450_v56 = vrot.slane %v396_v47, 5  ;;  %v451_v60 = vrot.slane %v396_v47, 6  ;;  %v452_v61 = vrot.slane %v396_v47, 7  ;;  %v569_v1 = vperm.slane %v397_v63, 0 }
  0x10   :  { %v564_v57 = vperm.slane %v448_v54, 0  ;;  %v565_v58 = vperm.slane %v449_v55, 0  ;;  %v453_v2 = vrot.slane %v397_v63, 1  ;;  %v454_v3 = vrot.slane %v397_v63, 2 }
  0x11   :  { %v566_v59 = vperm.slane %v450_v56, 0  ;;  %v567_v62 = vperm.slane %v451_v60, 0  ;;  %v568_v0 = vperm.slane %v452_v61, 0  ;;  %v455_v4 = vrot.slane %v397_v63, 3  ;;  %v400_v61 = vld [vmem:[%s5633_s0 + $0x38] sm:$0xff] }
  0x12   :  { %v570_v5 = vperm.slane %v453_v2, 0  ;;  %v571_v6 = vperm.slane %v454_v3, 0  ;;  %v456_v8 = vrot.slane %v397_v63, 4  ;;  %v457_v9 = vrot.slane %v397_v63, 5 }
  0x13   :  { %v572_v7 = vperm.slane %v455_v4, 0  ;;  %v458_v10 = vrot.slane %v397_v63, 6  ;;  %v459_v15 = vrot.slane %v397_v63, 7  ;;  %v585_v43 = vperm.slane %v399_v37, 0 }
  0x14   :  { %677 = vrot.lane.b32.xlu0 %v543_v14, %s2752_s8  ;;  %v573_v11 = vperm.slane %v456_v8, 0  ;;  %v574_v13 = vperm.slane %v457_v9, 0  ;;  %v469_v47 = vrot.slane %v399_v37, 3  ;;  %v470_v49 = vrot.slane %v399_v37, 4 }
  0x15   :  { %v575_v14 = vperm.slane %v458_v10, 0  ;;  %v576_v18 = vperm.slane %v459_v15, 0  ;;  %v471_v50 = vrot.slane %v399_v37, 5  ;;  %v472_v56 = vrot.slane %v399_v37, 6 }
  0x16   :  { %679 = vrot.lane.b32.xlu1 %v544_v16, %s2752_s8  ;;  %681 = vrot.lane.b32.xlu2 %v545_v17, %s2752_s8  ;;  %v398_v16 = vld [vmem:[%s5633_s0 + $0x28] sm:$0xff]  ;;  %v589_v54 = vperm.slane %v470_v49, 0  ;;  %v475_v3 = vrot.slane %v400_v61, 2  ;;  %v476_v4 = vrot.slane %v400_v61, 3  ;;  %v477_v10 = vrot.slane %v400_v61, 4 }
  0x17   :  { %v460_v17 = vrot.slane %v398_v16, 1  ;;  %v577_v20 = vperm.slane %v398_v16, 0  ;;  %v463_v24 = vrot.slane %v398_v16, 4  ;;  %v465_v31 = vrot.slane %v398_v16, 6 }
  0x18   :  { %v466_v32 = vrot.slane %v398_v16, 7  ;;  %v590_v55 = vperm.slane %v471_v50, 0  ;;  %v591_v60 = vperm.slane %v472_v56, 0  ;;  %v595_v8 = vperm.slane %v475_v3, 0 }
  0x19   :  { %v583_v36 = vperm.slane %v465_v31, 0  ;;  %v596_v9 = vperm.slane %v476_v4, 0  ;;  %v597_v15 = vperm.slane %v477_v10, 0 }
  0x1a   :  { %v584_v38 = vperm.slane %v466_v32, 0 }
  0x1c   :  { %683 = vrot.lane.b32.xlu0 %v546_v21, %s2752_s8  ;;  %v578_v21 = vperm.slane %v460_v17, 0 }
  0x1e   :  { %685 = vrot.lane.b32.xlu1 %v547_v22, %s2752_s8  ;;  %687 = vrot.lane.b32.xlu2 %v548_v23, %s2752_s8  ;;  %v461_v22 = vrot.slane %v398_v16, 2  ;;  %v462_v23 = vrot.slane %v398_v16, 3 }
  0x20   :  { %v579_v25 = vperm.slane %v461_v22, 0 }
  0x24   :  { %689 = vrot.lane.b32.xlu0 %v549_v27, %s2752_s8  ;;  %v580_v27 = vperm.slane %v462_v23, 0 }
  0x26   :  { %691 = vrot.lane.b32.xlu1 %v550_v28, %s2752_s8  ;;  %693 = vrot.lane.b32.xlu2 %v551_v29, %s2752_s8  ;;  %v581_v28 = vperm.slane %v463_v24, 0  ;;  %v464_v29 = vrot.slane %v398_v16, 5 }
  0x2c   :  { %695 = vrot.lane.b32.xlu0 %v552_v33, %s2752_s8 }
  0x2e   :  { %697 = vrot.lane.b32.xlu1 %v553_v34, %s2752_s8  ;;  %699 = vrot.lane.b32.xlu2 %v554_v35, %s2752_s8  ;;  %v582_v34 = vperm.slane %v464_v29, 0 }
  0x34   :  { %701 = vrot.lane.b32.xlu0 %v555_v39, %s2752_s8 }
  0x36   :  { %703 = vrot.lane.b32.xlu1 %v556_v40, %s2752_s8  ;;  %705 = vrot.lane.b32.xlu2 %v557_v41, %s2752_s8  ;;  %v467_v40 = vrot.slane %v399_v37, 1  ;;  %v468_v41 = vrot.slane %v399_v37, 2 }
  0x3c   :  { %707 = vrot.lane.b32.xlu0 %v558_v45, %s2752_s8  ;;  %v586_v45 = vperm.slane %v467_v40, 0 }
  0x3e   :  { %709 = vrot.lane.b32.xlu1 %v559_v46, %s2752_s8  ;;  %711 = vrot.lane.b32.xlu2 %v560_v48, %s2752_s8  ;;  %v587_v46 = vperm.slane %v468_v41, 0 }
  0x44   :  { %713 = vrot.lane.b32.xlu0 %v561_v51, %s2752_s8 }
  0x46   :  { %715 = vrot.lane.b32.xlu1 %v562_v52, %s2752_s8  ;;  %717 = vrot.lane.b32.xlu2 %v563_v53, %s2752_s8  ;;  %v588_v52 = vperm.slane %v469_v47, 0 }
  0x4c   :  { %719 = vrot.lane.b32.xlu0 %v564_v57, %s2752_s8 }
  0x4e   :  { %721 = vrot.lane.b32.xlu1 %v565_v58, %s2752_s8  ;;  %723 = vrot.lane.b32.xlu2 %v566_v59, %s2752_s8  ;;  %v473_v58 = vrot.slane %v399_v37, 7 }
  0x50   :  { %v592_v63 = vperm.slane %v473_v58, 0 }
  0x54   :  { %725 = vrot.lane.b32.xlu0 %v567_v62, %s2752_s8 }
  0x56   :  { %727 = vrot.lane.b32.xlu1 %v568_v0, %s2752_s8  ;;  %729 = vrot.lane.b32.xlu2 %v569_v1, %s2752_s8  ;;  %v593_v0 = vperm.slane %v400_v61, 0  ;;  %v474_v1 = vrot.slane %v400_v61, 1 }
  0x5c   :  { %731 = vrot.lane.b32.xlu0 %v570_v5, %s2752_s8 }
  0x5e   :  { %733 = vrot.lane.b32.xlu1 %v571_v6, %s2752_s8  ;;  %735 = vrot.lane.b32.xlu2 %v572_v7, %s2752_s8  ;;  %v594_v6 = vperm.slane %v474_v1, 0 }
  0x60   :  { %v674_v12 = vpop.permute.xlu2 %673 }
  0x61   :  { %1053 = vst.msk [vmem:[%s5634_s1 + $0x11] sm:$0x1] %vm264_vm0, %v674_v12  ;;  %v478_v12 = vrot.slane %v400_v61, 5 }
  0x63   :  { %v598_v17 = vperm.slane %v478_v12, 0 }
  0x64   :  { %737 = vrot.lane.b32.xlu0 %v573_v11, %s2752_s8 }
  0x66   :  { %739 = vrot.lane.b32.xlu1 %v574_v13, %s2752_s8  ;;  %741 = vrot.lane.b32.xlu2 %v575_v14, %s2752_s8  ;;  %v479_v13 = vrot.slane %v400_v61, 6 }
  0x68   :  { %v676_v19 = vpop.permute.xlu2 %675 }
  0x69   :  { %1054 = vst.msk [vmem:[%s5634_s1 + $0x15] sm:$0x1] %vm264_vm0, %v676_v19  ;;  %v480_v19 = vrot.slane %v400_v61, 7 }
  0x6b   :  { %v600_v24 = vperm.slane %v480_v19, 0 }
  0x6c   :  { %743 = vrot.lane.b32.xlu0 %v576_v18, %s2752_s8  ;;  %v599_v18 = vperm.slane %v479_v13, 0 }
  0x6e   :  { %745 = vrot.lane.b32.xlu1 %v577_v20, %s2752_s8  ;;  %747 = vrot.lane.b32.xlu2 %v578_v21, %s2752_s8  ;;  %v401_v21 = vld [vmem:[%s5633_s0 + $0x40] sm:$0xff] }
  0x6f   :  { %v481_v22 = vrot.slane %v401_v21, 1  ;;  %v484_v31 = vrot.slane %v401_v21, 4  ;;  %v485_v37 = vrot.slane %v401_v21, 5  ;;  %v487_v40 = vrot.slane %v401_v21, 7 }
  0x70   :  { %v682_v26 = vpop.permute.xlu2 %681 }
  0x71   :  { %1057 = vst.msk [vmem:[%s5634_s1 + $0x21] sm:$0x1] %vm264_vm0, %v682_v26  ;;  %v601_v26 = vperm.slane %v401_v21, 0 }
  0x74   :  { %749 = vrot.lane.b32.xlu0 %v579_v25, %s2752_s8 }
  0x76   :  { %751 = vrot.lane.b32.xlu1 %v580_v27, %s2752_s8  ;;  %v666_v30 = vpop.permute.xlu0 %665  ;;  %753 = vrot.lane.b32.xlu2 %v581_v28, %s2752_s8  ;;  %v602_v27 = vperm.slane %v481_v22, 0  ;;  %v482_v28 = vrot.slane %v401_v21, 2 }
  0x77   :  { %1049 = vst.msk [vmem:[%s5634_s1 + $0x1] sm:$0x1] %vm264_vm0, %v666_v30  ;;  %v483_v30 = vrot.slane %v401_v21, 3 }
  0x78   :  { %v670_v33 = vpop.permute.xlu1 %669  ;;  %v688_v35 = vpop.permute.xlu2 %687 }
  0x79   :  { %1051 = vst.msk [vmem:[%s5634_s1 + $0x9] sm:$0x1] %vm264_vm0, %v670_v33  ;;  %v603_v33 = vperm.slane %v482_v28, 0 }
  0x7a   :  { %1060 = vst.msk [vmem:[%s5634_s1 + $0x2d] sm:$0x1] %vm264_vm0, %v688_v35  ;;  %v604_v35 = vperm.slane %v483_v30, 0 }
  0x7c   :  { %755 = vrot.lane.b32.xlu0 %v582_v34, %s2752_s8 }
  0x7e   :  { %757 = vrot.lane.b32.xlu1 %v583_v36, %s2752_s8  ;;  %v668_v39 = vpop.permute.xlu0 %667  ;;  %759 = vrot.lane.b32.xlu2 %v584_v38, %s2752_s8  ;;  %v605_v36 = vperm.slane %v484_v31, 0 }
  0x7f   :  { %1050 = vst.msk [vmem:[%s5634_s1 + $0x5] sm:$0x1] %vm264_vm0, %v668_v39  ;;  %v486_v39 = vrot.slane %v401_v21, 6 }
  0x80   :  { %v672_v42 = vpop.permute.xlu1 %671  ;;  %v694_v44 = vpop.permute.xlu2 %693 }
  0x81   :  { %1052 = vst.msk [vmem:[%s5634_s1 + $0xd] sm:$0x1] %vm264_vm0, %v672_v42  ;;  %v606_v42 = vperm.slane %v485_v37, 0 }
  0x82   :  { %1063 = vst.msk [vmem:[%s5634_s1 + $0x39] sm:$0x1] %vm264_vm0, %v694_v44  ;;  %v607_v44 = vperm.slane %v486_v39, 0 }
  0x84   :  { %761 = vrot.lane.b32.xlu0 %v585_v43, %s2752_s8 }
  0x86   :  { %763 = vrot.lane.b32.xlu1 %v586_v45, %s2752_s8  ;;  %v678_v48 = vpop.permute.xlu0 %677  ;;  %765 = vrot.lane.b32.xlu2 %v587_v46, %s2752_s8  ;;  %v402_v45 = vld [vmem:[%s5633_s0 + $0x48] sm:$0xff]  ;;  %v608_v46 = vperm.slane %v487_v40, 0 }
  0x87   :  { %1055 = vst.msk [vmem:[%s5634_s1 + $0x19] sm:$0x1] %vm264_vm0, %v678_v48  ;;  %v488_v48 = vrot.slane %v402_v45, 1  ;;  %v489_v49 = vrot.slane %v402_v45, 2  ;;  %v492_v58 = vrot.slane %v402_v45, 5 }
  0x88   :  { %v680_v51 = vpop.permute.xlu1 %679  ;;  %v700_v53 = vpop.permute.xlu2 %699 }
  0x89   :  { %1056 = vst.msk [vmem:[%s5634_s1 + $0x1d] sm:$0x1] %vm264_vm0, %v680_v51  ;;  %v609_v51 = vperm.slane %v402_v45, 0 }
  0x8a   :  { %1066 = vst.msk [vmem:[%s5634_s1 + $0x45] sm:$0x1] %vm264_vm0, %v700_v53  ;;  %v610_v53 = vperm.slane %v488_v48, 0 }
  0x8c   :  { %767 = vrot.lane.b32.xlu0 %v588_v52, %s2752_s8 }
  0x8e   :  { %769 = vrot.lane.b32.xlu1 %v589_v54, %s2752_s8  ;;  %v684_v57 = vpop.permute.xlu0 %683  ;;  %771 = vrot.lane.b32.xlu2 %v590_v55, %s2752_s8  ;;  %v611_v54 = vperm.slane %v489_v49, 0  ;;  %v490_v55 = vrot.slane %v402_v45, 3 }
  0x8f   :  { %1058 = vst.msk [vmem:[%s5634_s1 + $0x25] sm:$0x1] %vm264_vm0, %v684_v57  ;;  %v491_v57 = vrot.slane %v402_v45, 4 }
  0x90   :  { %v686_v59 = vpop.permute.xlu1 %685  ;;  %v706_v62 = vpop.permute.xlu2 %705 }
  0x91   :  { %1059 = vst.msk [vmem:[%s5634_s1 + $0x29] sm:$0x1] %vm264_vm0, %v686_v59 }
  0x92   :  { %1069 = vst.msk [vmem:[%s5634_s1 + $0x51] sm:$0x1] %vm264_vm0, %v706_v62  ;;  %v613_v62 = vperm.slane %v491_v57, 0 }
  0x94   :  { %773 = vrot.lane.b32.xlu0 %v591_v60, %s2752_s8  ;;  %v612_v60 = vperm.slane %v490_v55, 0 }
  0x96   :  { %775 = vrot.lane.b32.xlu1 %v592_v63, %s2752_s8  ;;  %v690_v2 = vpop.permute.xlu0 %689  ;;  %777 = vrot.lane.b32.xlu2 %v593_v0, %s2752_s8  ;;  %v614_v63 = vperm.slane %v492_v58, 0  ;;  %v493_v0 = vrot.slane %v402_v45, 6 }
  0x97   :  { %1061 = vst.msk [vmem:[%s5634_s1 + $0x31] sm:$0x1] %vm264_vm0, %v690_v2  ;;  %v494_v2 = vrot.slane %v402_v45, 7 }
  0x98   :  { %v692_v5 = vpop.permute.xlu1 %691  ;;  %v712_v7 = vpop.permute.xlu2 %711  ;;  %v615_v4 = vperm.slane %v493_v0, 0 }
  0x99   :  { %1062 = vst.msk [vmem:[%s5634_s1 + $0x35] sm:$0x1] %vm264_vm0, %v692_v5  ;;  %v403_v5 = vld [vmem:[%s5633_s0 + $0x50] sm:$0xff] }
  0x9a   :  { %1072 = vst.msk [vmem:[%s5634_s1 + $0x5d] sm:$0x1] %vm264_vm0, %v712_v7  ;;  %v616_v7 = vperm.slane %v494_v2, 0  ;;  %v497_v12 = vrot.slane %v403_v5, 3  ;;  %v500_v21 = vrot.slane %v403_v5, 6 }
  0x9c   :  { %779 = vrot.lane.b32.xlu0 %v594_v6, %s2752_s8 }
  0x9e   :  { %781 = vrot.lane.b32.xlu1 %v595_v8, %s2752_s8  ;;  %v696_v11 = vpop.permute.xlu0 %695  ;;  %783 = vrot.lane.b32.xlu2 %v596_v9, %s2752_s8  ;;  %v617_v8 = vperm.slane %v403_v5, 0  ;;  %v495_v9 = vrot.slane %v403_v5, 1 }
  0x9f   :  { %1064 = vst.msk [vmem:[%s5634_s1 + $0x3d] sm:$0x1] %vm264_vm0, %v696_v11  ;;  %v496_v11 = vrot.slane %v403_v5, 2 }
  0xa0   :  { %v698_v14 = vpop.permute.xlu1 %697  ;;  %v718_v16 = vpop.permute.xlu2 %717 }
  0xa1   :  { %1065 = vst.msk [vmem:[%s5634_s1 + $0x41] sm:$0x1] %vm264_vm0, %v698_v14  ;;  %v618_v14 = vperm.slane %v495_v9, 0 }
  0xa2   :  { %1075 = vst.msk [vmem:[%s5634_s1 + $0x69] sm:$0x1] %vm264_vm0, %v718_v16  ;;  %v619_v16 = vperm.slane %v496_v11, 0 }
  0xa4   :  { %785 = vrot.lane.b32.xlu0 %v597_v15, %s2752_s8 }
  0xa6   :  { %787 = vrot.lane.b32.xlu1 %v598_v17, %s2752_s8  ;;  %v702_v20 = vpop.permute.xlu0 %701  ;;  %789 = vrot.lane.b32.xlu2 %v599_v18, %s2752_s8  ;;  %v620_v17 = vperm.slane %v497_v12, 0  ;;  %v498_v18 = vrot.slane %v403_v5, 4 }
  0xa7   :  { %1067 = vst.msk [vmem:[%s5634_s1 + $0x49] sm:$0x1] %vm264_vm0, %v702_v20  ;;  %v499_v20 = vrot.slane %v403_v5, 5 }
  0xa8   :  { %v704_v23 = vpop.permute.xlu1 %703  ;;  %v724_v25 = vpop.permute.xlu2 %723 }
  0xa9   :  { %1068 = vst.msk [vmem:[%s5634_s1 + $0x4d] sm:$0x1] %vm264_vm0, %v704_v23  ;;  %v621_v23 = vperm.slane %v498_v18, 0 }
  0xaa   :  { %1078 = vst.msk [vmem:[%s5634_s1 + $0x75] sm:$0x1] %vm264_vm0, %v724_v25  ;;  %v622_v25 = vperm.slane %v499_v20, 0 }
  0xac   :  { %791 = vrot.lane.b32.xlu0 %v600_v24, %s2752_s8 }
  0xae   :  { %793 = vrot.lane.b32.xlu1 %v601_v26, %s2752_s8  ;;  %v708_v29 = vpop.permute.xlu0 %707  ;;  %795 = vrot.lane.b32.xlu2 %v602_v27, %s2752_s8  ;;  %v623_v26 = vperm.slane %v500_v21, 0  ;;  %v501_v27 = vrot.slane %v403_v5, 7 }
  0xaf   :  { %1070 = vst.msk [vmem:[%s5634_s1 + $0x55] sm:$0x1] %vm264_vm0, %v708_v29  ;;  %v404_v29 = vld [vmem:[%s5633_s0 + $0x58] sm:$0xff] }
  0xb0   :  { %v710_v32 = vpop.permute.xlu1 %709  ;;  %v730_v34 = vpop.permute.xlu2 %729  ;;  %v502_v30 = vrot.slane %v404_v29, 1  ;;  %v505_v39 = vrot.slane %v404_v29, 4  ;;  %v506_v45 = vrot.slane %v404_v29, 5  ;;  %v508_v48 = vrot.slane %v404_v29, 7 }
  0xb1   :  { %1071 = vst.msk [vmem:[%s5634_s1 + $0x59] sm:$0x1] %vm264_vm0, %v710_v32  ;;  %v624_v32 = vperm.slane %v501_v27, 0 }
  0xb2   :  { %1081 = vst.msk [vmem:[%s5634_s1 + $0x81] sm:$0x1] %vm264_vm0, %v730_v34  ;;  %v625_v34 = vperm.slane %v404_v29, 0 }
  0xb4   :  { %797 = vrot.lane.b32.xlu0 %v603_v33, %s2752_s8 }
  0xb6   :  { %799 = vrot.lane.b32.xlu1 %v604_v35, %s2752_s8  ;;  %v714_v38 = vpop.permute.xlu0 %713  ;;  %801 = vrot.lane.b32.xlu2 %v605_v36, %s2752_s8  ;;  %v626_v35 = vperm.slane %v502_v30, 0  ;;  %v503_v36 = vrot.slane %v404_v29, 2 }
  0xb7   :  { %1073 = vst.msk [vmem:[%s5634_s1 + $0x61] sm:$0x1] %vm264_vm0, %v714_v38  ;;  %v504_v38 = vrot.slane %v404_v29, 3 }
  0xb8   :  { %v716_v41 = vpop.permute.xlu1 %715  ;;  %v736_v43 = vpop.permute.xlu2 %735 }
  0xb9   :  { %1074 = vst.msk [vmem:[%s5634_s1 + $0x65] sm:$0x1] %vm264_vm0, %v716_v41  ;;  %v627_v41 = vperm.slane %v503_v36, 0 }
  0xba   :  { %1084 = vst.msk [vmem:[%s5634_s1 + $0x8d] sm:$0x1] %vm264_vm0, %v736_v43  ;;  %v628_v43 = vperm.slane %v504_v38, 0 }
  0xbc   :  { %803 = vrot.lane.b32.xlu0 %v606_v42, %s2752_s8 }
  0xbe   :  { %805 = vrot.lane.b32.xlu1 %v607_v44, %s2752_s8  ;;  %v720_v47 = vpop.permute.xlu0 %719  ;;  %807 = vrot.lane.b32.xlu2 %v608_v46, %s2752_s8  ;;  %v629_v44 = vperm.slane %v505_v39, 0 }
  0xbf   :  { %1076 = vst.msk [vmem:[%s5634_s1 + $0x6d] sm:$0x1] %vm264_vm0, %v720_v47  ;;  %v507_v47 = vrot.slane %v404_v29, 6 }
  0xc0   :  { %v722_v50 = vpop.permute.xlu1 %721  ;;  %v742_v52 = vpop.permute.xlu2 %741 }
  0xc1   :  { %1077 = vst.msk [vmem:[%s5634_s1 + $0x71] sm:$0x1] %vm264_vm0, %v722_v50  ;;  %v630_v50 = vperm.slane %v506_v45, 0 }
  0xc2   :  { %1087 = vst.msk [vmem:[%s5634_s1 + $0x99] sm:$0x1] %vm264_vm0, %v742_v52  ;;  %v631_v52 = vperm.slane %v507_v47, 0 }
  0xc4   :  { %809 = vrot.lane.b32.xlu0 %v609_v51, %s2752_s8 }
  0xc6   :  { %811 = vrot.lane.b32.xlu1 %v610_v53, %s2752_s8  ;;  %v726_v56 = vpop.permute.xlu0 %725  ;;  %813 = vrot.lane.b32.xlu2 %v611_v54, %s2752_s8  ;;  %v405_v53 = vld [vmem:[%s5633_s0 + $0x60] sm:$0xff]  ;;  %v632_v54 = vperm.slane %v508_v48, 0 }
  0xc7   :  { %1079 = vst.msk [vmem:[%s5634_s1 + $0x79] sm:$0x1] %vm264_vm0, %v726_v56  ;;  %v509_v56 = vrot.slane %v405_v53, 1  ;;  %v510_v57 = vrot.slane %v405_v53, 2  ;;  %v513_v2 = vrot.slane %v405_v53, 5 }
  0xc8   :  { %v728_v59 = vpop.permute.xlu1 %727  ;;  %v748_v61 = vpop.permute.xlu2 %747 }
  0xc9   :  { %1080 = vst.msk [vmem:[%s5634_s1 + $0x7d] sm:$0x1] %vm264_vm0, %v728_v59  ;;  %v633_v59 = vperm.slane %v405_v53, 0 }
  0xca   :  { %1090 = vst.msk [vmem:[%s5634_s1 + $0xa5] sm:$0x1] %vm264_vm0, %v748_v61  ;;  %v634_v61 = vperm.slane %v509_v56, 0 }
  0xcc   :  { %815 = vrot.lane.b32.xlu0 %v612_v60, %s2752_s8 }
  0xce   :  { %817 = vrot.lane.b32.xlu1 %v613_v62, %s2752_s8  ;;  %v732_v1 = vpop.permute.xlu0 %731  ;;  %819 = vrot.lane.b32.xlu2 %v614_v63, %s2752_s8  ;;  %v635_v62 = vperm.slane %v510_v57, 0  ;;  %v511_v63 = vrot.slane %v405_v53, 3 }
  0xcf   :  { %1082 = vst.msk [vmem:[%s5634_s1 + $0x85] sm:$0x1] %vm264_vm0, %v732_v1  ;;  %v512_v1 = vrot.slane %v405_v53, 4 }
  0xd0   :  { %v734_v3 = vpop.permute.xlu1 %733  ;;  %v754_v6 = vpop.permute.xlu2 %753 }
  0xd1   :  { %1083 = vst.msk [vmem:[%s5634_s1 + $0x89] sm:$0x1] %vm264_vm0, %v734_v3 }
  0xd2   :  { %1093 = vst.msk [vmem:[%s5634_s1 + $0xb1] sm:$0x1] %vm264_vm0, %v754_v6  ;;  %v637_v6 = vperm.slane %v512_v1, 0 }
  0xd4   :  { %821 = vrot.lane.b32.xlu0 %v615_v4, %s2752_s8  ;;  %v636_v4 = vperm.slane %v511_v63, 0 }
  0xd6   :  { %823 = vrot.lane.b32.xlu1 %v616_v7, %s2752_s8  ;;  %v738_v10 = vpop.permute.xlu0 %737  ;;  %825 = vrot.lane.b32.xlu2 %v617_v8, %s2752_s8  ;;  %v638_v7 = vperm.slane %v513_v2, 0  ;;  %v514_v8 = vrot.slane %v405_v53, 6 }
  0xd7   :  { %1085 = vst.msk [vmem:[%s5634_s1 + $0x91] sm:$0x1] %vm264_vm0, %v738_v10  ;;  %v515_v10 = vrot.slane %v405_v53, 7 }
  0xd8   :  { %v740_v13 = vpop.permute.xlu1 %739  ;;  %v760_v15 = vpop.permute.xlu2 %759  ;;  %v639_v12 = vperm.slane %v514_v8, 0 }
  0xd9   :  { %1086 = vst.msk [vmem:[%s5634_s1 + $0x95] sm:$0x1] %vm264_vm0, %v740_v13  ;;  %v406_v13 = vld [vmem:[%s5633_s0 + $0x68] sm:$0xff] }
  0xda   :  { %1096 = vst.msk [vmem:[%s5634_s1 + $0xbd] sm:$0x1] %vm264_vm0, %v760_v15  ;;  %v640_v15 = vperm.slane %v515_v10, 0  ;;  %v518_v20 = vrot.slane %v406_v13, 3  ;;  %v521_v29 = vrot.slane %v406_v13, 6 }
  0xdc   :  { %827 = vrot.lane.b32.xlu0 %v618_v14, %s2752_s8 }
  0xde   :  { %829 = vrot.lane.b32.xlu1 %v619_v16, %s2752_s8  ;;  %v744_v19 = vpop.permute.xlu0 %743  ;;  %831 = vrot.lane.b32.xlu2 %v620_v17, %s2752_s8  ;;  %v641_v16 = vperm.slane %v406_v13, 0  ;;  %v516_v17 = vrot.slane %v406_v13, 1 }
  0xdf   :  { %1088 = vst.msk [vmem:[%s5634_s1 + $0x9d] sm:$0x1] %vm264_vm0, %v744_v19  ;;  %v517_v19 = vrot.slane %v406_v13, 2 }
  0xe0   :  { %v746_v22 = vpop.permute.xlu1 %745  ;;  %v766_v24 = vpop.permute.xlu2 %765 }
  0xe1   :  { %1089 = vst.msk [vmem:[%s5634_s1 + $0xa1] sm:$0x1] %vm264_vm0, %v746_v22  ;;  %v642_v22 = vperm.slane %v516_v17, 0 }
  0xe2   :  { %1099 = vst.msk [vmem:[%s5634_s1 + $0xc9] sm:$0x1] %vm264_vm0, %v766_v24  ;;  %v643_v24 = vperm.slane %v517_v19, 0 }
  0xe4   :  { %833 = vrot.lane.b32.xlu0 %v621_v23, %s2752_s8 }
  0xe6   :  { %835 = vrot.lane.b32.xlu1 %v622_v25, %s2752_s8  ;;  %v750_v28 = vpop.permute.xlu0 %749  ;;  %837 = vrot.lane.b32.xlu2 %v623_v26, %s2752_s8  ;;  %v644_v25 = vperm.slane %v518_v20, 0  ;;  %v519_v26 = vrot.slane %v406_v13, 4 }
  0xe7   :  { %1091 = vst.msk [vmem:[%s5634_s1 + $0xa9] sm:$0x1] %vm264_vm0, %v750_v28  ;;  %v520_v28 = vrot.slane %v406_v13, 5 }
  0xe8   :  { %v752_v31 = vpop.permute.xlu1 %751  ;;  %v772_v33 = vpop.permute.xlu2 %771 }
  0xe9   :  { %1092 = vst.msk [vmem:[%s5634_s1 + $0xad] sm:$0x1] %vm264_vm0, %v752_v31  ;;  %v645_v31 = vperm.slane %v519_v26, 0 }
  0xea   :  { %1102 = vst.msk [vmem:[%s5634_s1 + $0xd5] sm:$0x1] %vm264_vm0, %v772_v33  ;;  %v646_v33 = vperm.slane %v520_v28, 0 }
  0xec   :  { %839 = vrot.lane.b32.xlu0 %v624_v32, %s2752_s8 }
  0xee   :  { %841 = vrot.lane.b32.xlu1 %v625_v34, %s2752_s8  ;;  %v756_v37 = vpop.permute.xlu0 %755  ;;  %843 = vrot.lane.b32.xlu2 %v626_v35, %s2752_s8  ;;  %v647_v34 = vperm.slane %v521_v29, 0  ;;  %v522_v35 = vrot.slane %v406_v13, 7 }
  0xef   :  { %1094 = vst.msk [vmem:[%s5634_s1 + $0xb5] sm:$0x1] %vm264_vm0, %v756_v37  ;;  %v407_v37 = vld [vmem:[%s5633_s0 + $0x70] sm:$0xff] }
  0xf0   :  { %v758_v40 = vpop.permute.xlu1 %757  ;;  %v778_v42 = vpop.permute.xlu2 %777  ;;  %v523_v38 = vrot.slane %v407_v37, 1  ;;  %v526_v47 = vrot.slane %v407_v37, 4  ;;  %v527_v53 = vrot.slane %v407_v37, 5  ;;  %v529_v56 = vrot.slane %v407_v37, 7 }
  0xf1   :  { %1095 = vst.msk [vmem:[%s5634_s1 + $0xb9] sm:$0x1] %vm264_vm0, %v758_v40  ;;  %v648_v40 = vperm.slane %v522_v35, 0 }
  0xf2   :  { %1105 = vst.msk [vmem:[%s5634_s1 + $0xe1] sm:$0x1] %vm264_vm0, %v778_v42  ;;  %v649_v42 = vperm.slane %v407_v37, 0 }
  0xf4   :  { %845 = vrot.lane.b32.xlu0 %v627_v41, %s2752_s8 }
  0xf6   :  { %847 = vrot.lane.b32.xlu1 %v628_v43, %s2752_s8  ;;  %v762_v46 = vpop.permute.xlu0 %761  ;;  %849 = vrot.lane.b32.xlu2 %v629_v44, %s2752_s8  ;;  %v650_v43 = vperm.slane %v523_v38, 0  ;;  %v524_v44 = vrot.slane %v407_v37, 2 }
  0xf7   :  { %1097 = vst.msk [vmem:[%s5634_s1 + $0xc1] sm:$0x1] %vm264_vm0, %v762_v46  ;;  %v525_v46 = vrot.slane %v407_v37, 3 }
  0xf8   :  { %v764_v49 = vpop.permute.xlu1 %763  ;;  %v784_v51 = vpop.permute.xlu2 %783 }
  0xf9   :  { %1098 = vst.msk [vmem:[%s5634_s1 + $0xc5] sm:$0x1] %vm264_vm0, %v764_v49  ;;  %v651_v49 = vperm.slane %v524_v44, 0 }
  0xfa   :  { %1108 = vst.msk [vmem:[%s5634_s1 + $0xed] sm:$0x1] %vm264_vm0, %v784_v51  ;;  %v652_v51 = vperm.slane %v525_v46, 0 }
  0xfc   :  { %851 = vrot.lane.b32.xlu0 %v630_v50, %s2752_s8 }
  0xfe   :  { %853 = vrot.lane.b32.xlu1 %v631_v52, %s2752_s8  ;;  %v768_v55 = vpop.permute.xlu0 %767  ;;  %855 = vrot.lane.b32.xlu2 %v632_v54, %s2752_s8  ;;  %v653_v52 = vperm.slane %v526_v47, 0 }
  0xff   :  { %1100 = vst.msk [vmem:[%s5634_s1 + $0xcd] sm:$0x1] %vm264_vm0, %v768_v55  ;;  %v528_v55 = vrot.slane %v407_v37, 6 }
 0x100   :  { %v770_v58 = vpop.permute.xlu1 %769  ;;  %v790_v60 = vpop.permute.xlu2 %789 }
 0x101   :  { %1101 = vst.msk [vmem:[%s5634_s1 + $0xd1] sm:$0x1] %vm264_vm0, %v770_v58  ;;  %v654_v58 = vperm.slane %v527_v53, 0 }
 0x102   :  { %1111 = vst.msk [vmem:[%s5634_s1 + $0xf9] sm:$0x1] %vm264_vm0, %v790_v60  ;;  %v655_v60 = vperm.slane %v528_v55, 0 }
 0x104   :  { %857 = vrot.lane.b32.xlu0 %v633_v59, %s2752_s8 }
 0x106   :  { %859 = vrot.lane.b32.xlu1 %v634_v61, %s2752_s8  ;;  %v774_v0 = vpop.permute.xlu0 %773  ;;  %861 = vrot.lane.b32.xlu2 %v635_v62, %s2752_s8  ;;  %v408_v61 = vld [vmem:[%s5633_s0 + $0x78] sm:$0xff]  ;;  %v656_v62 = vperm.slane %v529_v56, 0 }
 0x107   :  { %1103 = vst.msk [vmem:[%s5634_s1 + $0xd9] sm:$0x1] %vm264_vm0, %v774_v0  ;;  %v530_v0 = vrot.slane %v408_v61, 1  ;;  %v531_v1 = vrot.slane %v408_v61, 2  ;;  %v534_v10 = vrot.slane %v408_v61, 5 }
 0x108   :  { %v776_v3 = vpop.permute.xlu1 %775  ;;  %v796_v5 = vpop.permute.xlu2 %795 }
 0x109   :  { %1104 = vst.msk [vmem:[%s5634_s1 + $0xdd] sm:$0x1] %vm264_vm0, %v776_v3  ;;  %v657_v3 = vperm.slane %v408_v61, 0 }
 0x10a   :  { %1114 = vst.msk [vmem:[%s5634_s1 + $0x105] sm:$0x1] %vm264_vm0, %v796_v5  ;;  %v658_v5 = vperm.slane %v530_v0, 0 }
 0x10c   :  { %863 = vrot.lane.b32.xlu0 %v636_v4, %s2752_s8 }
 0x10e   :  { %865 = vrot.lane.b32.xlu1 %v637_v6, %s2752_s8  ;;  %v780_v9 = vpop.permute.xlu0 %779  ;;  %867 = vrot.lane.b32.xlu2 %v638_v7, %s2752_s8  ;;  %v659_v6 = vperm.slane %v531_v1, 0  ;;  %v532_v7 = vrot.slane %v408_v61, 3 }
 0x10f   :  { %1106 = vst.msk [vmem:[%s5634_s1 + $0xe5] sm:$0x1] %vm264_vm0, %v780_v9  ;;  %v533_v9 = vrot.slane %v408_v61, 4 }
 0x110   :  { %v782_v11 = vpop.permute.xlu1 %781  ;;  %v802_v14 = vpop.permute.xlu2 %801 }
 0x111   :  { %1107 = vst.msk [vmem:[%s5634_s1 + $0xe9] sm:$0x1] %vm264_vm0, %v782_v11 }
 0x112   :  { %1117 = vst.msk [vmem:[%s5634_s1 + $0x111] sm:$0x1] %vm264_vm0, %v802_v14  ;;  %v661_v14 = vperm.slane %v533_v9, 0 }
 0x114   :  { %869 = vrot.lane.b32.xlu0 %v639_v12, %s2752_s8  ;;  %v660_v12 = vperm.slane %v532_v7, 0 }
 0x116   :  { %871 = vrot.lane.b32.xlu1 %v640_v15, %s2752_s8  ;;  %v786_v18 = vpop.permute.xlu0 %785  ;;  %873 = vrot.lane.b32.xlu2 %v641_v16, %s2752_s8  ;;  %v662_v15 = vperm.slane %v534_v10, 0  ;;  %v535_v16 = vrot.slane %v408_v61, 6 }
 0x117   :  { %1109 = vst.msk [vmem:[%s5634_s1 + $0xf1] sm:$0x1] %vm264_vm0, %v786_v18  ;;  %v536_v18 = vrot.slane %v408_v61, 7 }
 0x118   :  { %v788_v21 = vpop.permute.xlu1 %787  ;;  %v808_v23 = vpop.permute.xlu2 %807  ;;  %v663_v20 = vperm.slane %v535_v16, 0 }
 0x119   :  { %1110 = vst.msk [vmem:[%s5634_s1 + $0xf5] sm:$0x1] %vm264_vm0, %v788_v21  ;;  %v1177_v21 = vld [vmem:[%s5633_s0] sm:$0xff] }
 0x11a   :  { %1120 = vst.msk [vmem:[%s5634_s1 + $0x11d] sm:$0x1] %vm264_vm0, %v808_v23  ;;  %v664_v23 = vperm.slane %v536_v18, 0  ;;  %v1211_v28 = vrot.slane %v1177_v21, 3  ;;  %v1214_v37 = vrot.slane %v1177_v21, 6 }
 0x11c   :  { %875 = vrot.lane.b32.xlu0 %v642_v22, %s2752_s8 }
 0x11e   :  { %877 = vrot.lane.b32.xlu1 %v643_v24, %s2752_s8  ;;  %v792_v27 = vpop.permute.xlu0 %791  ;;  %879 = vrot.lane.b32.xlu2 %v644_v25, %s2752_s8  ;;  %v1321_v24 = vperm.slane %v1177_v21, 0  ;;  %v1209_v25 = vrot.slane %v1177_v21, 1 }
 0x11f   :  { %1112 = vst.msk [vmem:[%s5634_s1 + $0xfd] sm:$0x1] %vm264_vm0, %v792_v27  ;;  %v1210_v27 = vrot.slane %v1177_v21, 2 }
 0x120   :  { %v794_v30 = vpop.permute.xlu1 %793  ;;  %v814_v32 = vpop.permute.xlu2 %813 }
 0x121   :  { %1113 = vst.msk [vmem:[%s5634_s1 + $0x101] sm:$0x1] %vm264_vm0, %v794_v30  ;;  %v1322_v30 = vperm.slane %v1209_v25, 0 }
 0x122   :  { %1123 = vst.msk [vmem:[%s5634_s1 + $0x129] sm:$0x1] %vm264_vm0, %v814_v32  ;;  %v1323_v32 = vperm.slane %v1210_v27, 0 }
 0x124   :  { %881 = vrot.lane.b32.xlu0 %v645_v31, %s2752_s8 }
 0x126   :  { %883 = vrot.lane.b32.xlu1 %v646_v33, %s2752_s8  ;;  %v798_v36 = vpop.permute.xlu0 %797  ;;  %885 = vrot.lane.b32.xlu2 %v647_v34, %s2752_s8  ;;  %v1324_v33 = vperm.slane %v1211_v28, 0  ;;  %v1212_v34 = vrot.slane %v1177_v21, 4 }
 0x127   :  { %1115 = vst.msk [vmem:[%s5634_s1 + $0x109] sm:$0x1] %vm264_vm0, %v798_v36  ;;  %v1213_v36 = vrot.slane %v1177_v21, 5 }
 0x128   :  { %v800_v39 = vpop.permute.xlu1 %799  ;;  %v820_v41 = vpop.permute.xlu2 %819 }
 0x129   :  { %1116 = vst.msk [vmem:[%s5634_s1 + $0x10d] sm:$0x1] %vm264_vm0, %v800_v39  ;;  %v1325_v39 = vperm.slane %v1212_v34, 0 }
 0x12a   :  { %1126 = vst.msk [vmem:[%s5634_s1 + $0x135] sm:$0x1] %vm264_vm0, %v820_v41  ;;  %v1326_v41 = vperm.slane %v1213_v36, 0 }
 0x12c   :  { %887 = vrot.lane.b32.xlu0 %v648_v40, %s2752_s8 }
 0x12e   :  { %889 = vrot.lane.b32.xlu1 %v649_v42, %s2752_s8  ;;  %v804_v45 = vpop.permute.xlu0 %803  ;;  %891 = vrot.lane.b32.xlu2 %v650_v43, %s2752_s8  ;;  %v1327_v42 = vperm.slane %v1214_v37, 0  ;;  %v1215_v43 = vrot.slane %v1177_v21, 7 }
 0x12f   :  { %1118 = vst.msk [vmem:[%s5634_s1 + $0x115] sm:$0x1] %vm264_vm0, %v804_v45  ;;  %v1178_v45 = vld [vmem:[%s5633_s0 + $0x8] sm:$0xff] }
 0x130   :  { %v806_v48 = vpop.permute.xlu1 %805  ;;  %v826_v50 = vpop.permute.xlu2 %825  ;;  %v1216_v46 = vrot.slane %v1178_v45, 1  ;;  %v1219_v55 = vrot.slane %v1178_v45, 4  ;;  %v1220_v61 = vrot.slane %v1178_v45, 5  ;;  %v1222_v0 = vrot.slane %v1178_v45, 7 }
 0x131   :  { %1119 = vst.msk [vmem:[%s5634_s1 + $0x119] sm:$0x1] %vm264_vm0, %v806_v48  ;;  %v1328_v48 = vperm.slane %v1215_v43, 0 }
 0x132   :  { %1129 = vst.msk [vmem:[%s5634_s1 + $0x141] sm:$0x1] %vm264_vm0, %v826_v50  ;;  %v1329_v50 = vperm.slane %v1178_v45, 0 }
 0x134   :  { %893 = vrot.lane.b32.xlu0 %v651_v49, %s2752_s8 }
 0x136   :  { %895 = vrot.lane.b32.xlu1 %v652_v51, %s2752_s8  ;;  %v810_v54 = vpop.permute.xlu0 %809  ;;  %897 = vrot.lane.b32.xlu2 %v653_v52, %s2752_s8  ;;  %v1330_v51 = vperm.slane %v1216_v46, 0  ;;  %v1217_v52 = vrot.slane %v1178_v45, 2 }
 0x137   :  { %1121 = vst.msk [vmem:[%s5634_s1 + $0x121] sm:$0x1] %vm264_vm0, %v810_v54  ;;  %v1218_v54 = vrot.slane %v1178_v45, 3 }
 0x138   :  { %v812_v57 = vpop.permute.xlu1 %811  ;;  %v832_v59 = vpop.permute.xlu2 %831 }
 0x139   :  { %1122 = vst.msk [vmem:[%s5634_s1 + $0x125] sm:$0x1] %vm264_vm0, %v812_v57  ;;  %v1331_v57 = vperm.slane %v1217_v52, 0 }
 0x13a   :  { %1132 = vst.msk [vmem:[%s5634_s1 + $0x14d] sm:$0x1] %vm264_vm0, %v832_v59  ;;  %v1332_v59 = vperm.slane %v1218_v54, 0 }
 0x13c   :  { %899 = vrot.lane.b32.xlu0 %v654_v58, %s2752_s8 }
 0x13e   :  { %901 = vrot.lane.b32.xlu1 %v655_v60, %s2752_s8  ;;  %v816_v63 = vpop.permute.xlu0 %815  ;;  %903 = vrot.lane.b32.xlu2 %v656_v62, %s2752_s8  ;;  %v1333_v60 = vperm.slane %v1219_v55, 0 }
 0x13f   :  { %1124 = vst.msk [vmem:[%s5634_s1 + $0x12d] sm:$0x1] %vm264_vm0, %v816_v63  ;;  %v1221_v63 = vrot.slane %v1178_v45, 6 }
 0x140   :  { %v818_v2 = vpop.permute.xlu1 %817  ;;  %v838_v4 = vpop.permute.xlu2 %837 }
 0x141   :  { %1125 = vst.msk [vmem:[%s5634_s1 + $0x131] sm:$0x1] %vm264_vm0, %v818_v2  ;;  %v1334_v2 = vperm.slane %v1220_v61, 0 }
 0x142   :  { %1135 = vst.msk [vmem:[%s5634_s1 + $0x159] sm:$0x1] %vm264_vm0, %v838_v4  ;;  %v1335_v4 = vperm.slane %v1221_v63, 0 }
 0x144   :  { %905 = vrot.lane.b32.xlu0 %v657_v3, %s2752_s8 }
 0x146   :  { %907 = vrot.lane.b32.xlu1 %v658_v5, %s2752_s8  ;;  %v822_v8 = vpop.permute.xlu0 %821  ;;  %909 = vrot.lane.b32.xlu2 %v659_v6, %s2752_s8  ;;  %v1179_v5 = vld [vmem:[%s5633_s0 + $0x10] sm:$0xff]  ;;  %v1336_v6 = vperm.slane %v1222_v0, 0 }
 0x147   :  { %1127 = vst.msk [vmem:[%s5634_s1 + $0x139] sm:$0x1] %vm264_vm0, %v822_v8  ;;  %v1223_v8 = vrot.slane %v1179_v5, 1  ;;  %v1224_v9 = vrot.slane %v1179_v5, 2  ;;  %v1227_v18 = vrot.slane %v1179_v5, 5 }
 0x148   :  { %v824_v11 = vpop.permute.xlu1 %823  ;;  %v844_v13 = vpop.permute.xlu2 %843 }
 0x149   :  { %1128 = vst.msk [vmem:[%s5634_s1 + $0x13d] sm:$0x1] %vm264_vm0, %v824_v11  ;;  %v1337_v11 = vperm.slane %v1179_v5, 0 }
 0x14a   :  { %1138 = vst.msk [vmem:[%s5634_s1 + $0x165] sm:$0x1] %vm264_vm0, %v844_v13  ;;  %v1338_v13 = vperm.slane %v1223_v8, 0 }
 0x14c   :  { %911 = vrot.lane.b32.xlu0 %v660_v12, %s2752_s8 }
 0x14e   :  { %913 = vrot.lane.b32.xlu1 %v661_v14, %s2752_s8  ;;  %v828_v17 = vpop.permute.xlu0 %827  ;;  %915 = vrot.lane.b32.xlu2 %v662_v15, %s2752_s8  ;;  %v1339_v14 = vperm.slane %v1224_v9, 0  ;;  %v1225_v15 = vrot.slane %v1179_v5, 3 }
 0x14f   :  { %1130 = vst.msk [vmem:[%s5634_s1 + $0x145] sm:$0x1] %vm264_vm0, %v828_v17  ;;  %v1226_v17 = vrot.slane %v1179_v5, 4 }
 0x150   :  { %v830_v19 = vpop.permute.xlu1 %829  ;;  %v850_v22 = vpop.permute.xlu2 %849 }
 0x151   :  { %1131 = vst.msk [vmem:[%s5634_s1 + $0x149] sm:$0x1] %vm264_vm0, %v830_v19 }
 0x152   :  { %1141 = vst.msk [vmem:[%s5634_s1 + $0x171] sm:$0x1] %vm264_vm0, %v850_v22  ;;  %v1341_v22 = vperm.slane %v1226_v17, 0 }
 0x154   :  { %917 = vrot.lane.b32.xlu0 %v663_v20, %s2752_s8  ;;  %v1340_v20 = vperm.slane %v1225_v15, 0 }
 0x156   :  { %919 = vrot.lane.b32.xlu1 %v664_v23, %s2752_s8  ;;  %v834_v26 = vpop.permute.xlu0 %833  ;;  %1449 = vrot.lane.b32.xlu2 %v1321_v24, %s2753_s21  ;;  %v1342_v23 = vperm.slane %v1227_v18, 0  ;;  %v1228_v24 = vrot.slane %v1179_v5, 6 }
 0x157   :  { %1133 = vst.msk [vmem:[%s5634_s1 + $0x151] sm:$0x1] %vm264_vm0, %v834_v26  ;;  %v1229_v26 = vrot.slane %v1179_v5, 7 }
 0x158   :  { %v836_v29 = vpop.permute.xlu1 %835  ;;  %v856_v31 = vpop.permute.xlu2 %855  ;;  %v1343_v28 = vperm.slane %v1228_v24, 0 }
 0x159   :  { %1134 = vst.msk [vmem:[%s5634_s1 + $0x155] sm:$0x1] %vm264_vm0, %v836_v29  ;;  %v1180_v29 = vld [vmem:[%s5633_s0 + $0x18] sm:$0xff] }
 0x15a   :  { %1144 = vst.msk [vmem:[%s5634_s1 + $0x17d] sm:$0x1] %vm264_vm0, %v856_v31  ;;  %v1344_v31 = vperm.slane %v1229_v26, 0  ;;  %v1232_v36 = vrot.slane %v1180_v29, 3  ;;  %v1235_v45 = vrot.slane %v1180_v29, 6 }
 0x15c   :  { %1451 = vrot.lane.b32.xlu0 %v1322_v30, %s2753_s21 }
 0x15e   :  { %1453 = vrot.lane.b32.xlu1 %v1323_v32, %s2753_s21  ;;  %v840_v35 = vpop.permute.xlu0 %839  ;;  %1455 = vrot.lane.b32.xlu2 %v1324_v33, %s2753_s21  ;;  %v1345_v32 = vperm.slane %v1180_v29, 0  ;;  %v1230_v33 = vrot.slane %v1180_v29, 1 }
 0x15f   :  { %1136 = vst.msk [vmem:[%s5634_s1 + $0x15d] sm:$0x1] %vm264_vm0, %v840_v35  ;;  %v1231_v35 = vrot.slane %v1180_v29, 2 }
 0x160   :  { %v842_v38 = vpop.permute.xlu1 %841  ;;  %v862_v40 = vpop.permute.xlu2 %861 }
 0x161   :  { %1137 = vst.msk [vmem:[%s5634_s1 + $0x161] sm:$0x1] %vm264_vm0, %v842_v38  ;;  %v1346_v38 = vperm.slane %v1230_v33, 0 }
 0x162   :  { %1147 = vst.msk [vmem:[%s5634_s1 + $0x189] sm:$0x1] %vm264_vm0, %v862_v40  ;;  %v1347_v40 = vperm.slane %v1231_v35, 0 }
 0x164   :  { %1457 = vrot.lane.b32.xlu0 %v1325_v39, %s2753_s21 }
 0x166   :  { %1459 = vrot.lane.b32.xlu1 %v1326_v41, %s2753_s21  ;;  %v846_v44 = vpop.permute.xlu0 %845  ;;  %1461 = vrot.lane.b32.xlu2 %v1327_v42, %s2753_s21  ;;  %v1348_v41 = vperm.slane %v1232_v36, 0  ;;  %v1233_v42 = vrot.slane %v1180_v29, 4 }
 0x167   :  { %1139 = vst.msk [vmem:[%s5634_s1 + $0x169] sm:$0x1] %vm264_vm0, %v846_v44  ;;  %v1234_v44 = vrot.slane %v1180_v29, 5 }
 0x168   :  { %v848_v47 = vpop.permute.xlu1 %847  ;;  %v868_v49 = vpop.permute.xlu2 %867 }
 0x169   :  { %1140 = vst.msk [vmem:[%s5634_s1 + $0x16d] sm:$0x1] %vm264_vm0, %v848_v47  ;;  %v1349_v47 = vperm.slane %v1233_v42, 0 }
 0x16a   :  { %1150 = vst.msk [vmem:[%s5634_s1 + $0x195] sm:$0x1] %vm264_vm0, %v868_v49  ;;  %v1350_v49 = vperm.slane %v1234_v44, 0 }
 0x16c   :  { %1463 = vrot.lane.b32.xlu0 %v1328_v48, %s2753_s21 }
 0x16e   :  { %1465 = vrot.lane.b32.xlu1 %v1329_v50, %s2753_s21  ;;  %v852_v53 = vpop.permute.xlu0 %851  ;;  %1467 = vrot.lane.b32.xlu2 %v1330_v51, %s2753_s21  ;;  %v1351_v50 = vperm.slane %v1235_v45, 0  ;;  %v1236_v51 = vrot.slane %v1180_v29, 7 }
 0x16f   :  { %1142 = vst.msk [vmem:[%s5634_s1 + $0x175] sm:$0x1] %vm264_vm0, %v852_v53  ;;  %v1181_v53 = vld [vmem:[%s5633_s0 + $0x20] sm:$0xff] }
 0x170   :  { %v854_v56 = vpop.permute.xlu1 %853  ;;  %v874_v58 = vpop.permute.xlu2 %873  ;;  %v1237_v54 = vrot.slane %v1181_v53, 1  ;;  %v1240_v63 = vrot.slane %v1181_v53, 4  ;;  %v1241_v5 = vrot.slane %v1181_v53, 5  ;;  %v1243_v8 = vrot.slane %v1181_v53, 7 }
 0x171   :  { %1143 = vst.msk [vmem:[%s5634_s1 + $0x179] sm:$0x1] %vm264_vm0, %v854_v56  ;;  %v1352_v56 = vperm.slane %v1236_v51, 0 }
 0x172   :  { %1153 = vst.msk [vmem:[%s5634_s1 + $0x1a1] sm:$0x1] %vm264_vm0, %v874_v58  ;;  %v1353_v58 = vperm.slane %v1181_v53, 0 }
 0x174   :  { %1469 = vrot.lane.b32.xlu0 %v1331_v57, %s2753_s21 }
 0x176   :  { %1471 = vrot.lane.b32.xlu1 %v1332_v59, %s2753_s21  ;;  %v858_v62 = vpop.permute.xlu0 %857  ;;  %1473 = vrot.lane.b32.xlu2 %v1333_v60, %s2753_s21  ;;  %v1354_v59 = vperm.slane %v1237_v54, 0  ;;  %v1238_v60 = vrot.slane %v1181_v53, 2 }
 0x177   :  { %1145 = vst.msk [vmem:[%s5634_s1 + $0x181] sm:$0x1] %vm264_vm0, %v858_v62  ;;  %v1239_v62 = vrot.slane %v1181_v53, 3 }
 0x178   :  { %v860_v1 = vpop.permute.xlu1 %859  ;;  %v880_v3 = vpop.permute.xlu2 %879 }
 0x179   :  { %1146 = vst.msk [vmem:[%s5634_s1 + $0x185] sm:$0x1] %vm264_vm0, %v860_v1  ;;  %v1355_v1 = vperm.slane %v1238_v60, 0 }
 0x17a   :  { %1156 = vst.msk [vmem:[%s5634_s1 + $0x1ad] sm:$0x1] %vm264_vm0, %v880_v3  ;;  %v1356_v3 = vperm.slane %v1239_v62, 0 }
 0x17c   :  { %1475 = vrot.lane.b32.xlu0 %v1334_v2, %s2753_s21 }
 0x17e   :  { %1477 = vrot.lane.b32.xlu1 %v1335_v4, %s2753_s21  ;;  %v864_v7 = vpop.permute.xlu0 %863  ;;  %1479 = vrot.lane.b32.xlu2 %v1336_v6, %s2753_s21  ;;  %v1357_v4 = vperm.slane %v1240_v63, 0 }
 0x17f   :  { %1148 = vst.msk [vmem:[%s5634_s1 + $0x18d] sm:$0x1] %vm264_vm0, %v864_v7  ;;  %v1242_v7 = vrot.slane %v1181_v53, 6 }
 0x180   :  { %v866_v10 = vpop.permute.xlu1 %865  ;;  %v886_v12 = vpop.permute.xlu2 %885 }
 0x181   :  { %1149 = vst.msk [vmem:[%s5634_s1 + $0x191] sm:$0x1] %vm264_vm0, %v866_v10  ;;  %v1358_v10 = vperm.slane %v1241_v5, 0 }
 0x182   :  { %1159 = vst.msk [vmem:[%s5634_s1 + $0x1b9] sm:$0x1] %vm264_vm0, %v886_v12  ;;  %v1359_v12 = vperm.slane %v1242_v7, 0 }
 0x184   :  { %1481 = vrot.lane.b32.xlu0 %v1337_v11, %s2753_s21 }
 0x186   :  { %1483 = vrot.lane.b32.xlu1 %v1338_v13, %s2753_s21  ;;  %v870_v16 = vpop.permute.xlu0 %869  ;;  %1485 = vrot.lane.b32.xlu2 %v1339_v14, %s2753_s21  ;;  %v1182_v13 = vld [vmem:[%s5633_s0 + $0x28] sm:$0xff]  ;;  %v1360_v14 = vperm.slane %v1243_v8, 0 }
 0x187   :  { %1151 = vst.msk [vmem:[%s5634_s1 + $0x199] sm:$0x1] %vm264_vm0, %v870_v16  ;;  %v1244_v16 = vrot.slane %v1182_v13, 1  ;;  %v1245_v17 = vrot.slane %v1182_v13, 2  ;;  %v1248_v26 = vrot.slane %v1182_v13, 5 }
 0x188   :  { %v872_v19 = vpop.permute.xlu1 %871  ;;  %v892_v21 = vpop.permute.xlu2 %891 }
 0x189   :  { %1152 = vst.msk [vmem:[%s5634_s1 + $0x19d] sm:$0x1] %vm264_vm0, %v872_v19  ;;  %v1361_v19 = vperm.slane %v1182_v13, 0 }
 0x18a   :  { %1162 = vst.msk [vmem:[%s5634_s1 + $0x1c5] sm:$0x1] %vm264_vm0, %v892_v21  ;;  %v1362_v21 = vperm.slane %v1244_v16, 0 }
 0x18c   :  { %1487 = vrot.lane.b32.xlu0 %v1340_v20, %s2753_s21 }
 0x18e   :  { %1489 = vrot.lane.b32.xlu1 %v1341_v22, %s2753_s21  ;;  %v876_v25 = vpop.permute.xlu0 %875  ;;  %1491 = vrot.lane.b32.xlu2 %v1342_v23, %s2753_s21  ;;  %v1363_v22 = vperm.slane %v1245_v17, 0  ;;  %v1246_v23 = vrot.slane %v1182_v13, 3 }
 0x18f   :  { %1154 = vst.msk [vmem:[%s5634_s1 + $0x1a5] sm:$0x1] %vm264_vm0, %v876_v25  ;;  %v1247_v25 = vrot.slane %v1182_v13, 4 }
 0x190   :  { %v878_v27 = vpop.permute.xlu1 %877  ;;  %v898_v30 = vpop.permute.xlu2 %897 }
 0x191   :  { %1155 = vst.msk [vmem:[%s5634_s1 + $0x1a9] sm:$0x1] %vm264_vm0, %v878_v27 }
 0x192   :  { %1165 = vst.msk [vmem:[%s5634_s1 + $0x1d1] sm:$0x1] %vm264_vm0, %v898_v30  ;;  %v1365_v30 = vperm.slane %v1247_v25, 0 }
 0x194   :  { %1493 = vrot.lane.b32.xlu0 %v1343_v28, %s2753_s21  ;;  %v1364_v28 = vperm.slane %v1246_v23, 0 }
 0x196   :  { %1495 = vrot.lane.b32.xlu1 %v1344_v31, %s2753_s21  ;;  %v882_v34 = vpop.permute.xlu0 %881  ;;  %1497 = vrot.lane.b32.xlu2 %v1345_v32, %s2753_s21  ;;  %v1366_v31 = vperm.slane %v1248_v26, 0  ;;  %v1249_v32 = vrot.slane %v1182_v13, 6 }
 0x197   :  { %1157 = vst.msk [vmem:[%s5634_s1 + $0x1b1] sm:$0x1] %vm264_vm0, %v882_v34  ;;  %v1250_v34 = vrot.slane %v1182_v13, 7 }
 0x198   :  { %v884_v37 = vpop.permute.xlu1 %883  ;;  %v904_v39 = vpop.permute.xlu2 %903  ;;  %v1367_v36 = vperm.slane %v1249_v32, 0 }
 0x199   :  { %1158 = vst.msk [vmem:[%s5634_s1 + $0x1b5] sm:$0x1] %vm264_vm0, %v884_v37  ;;  %v1183_v37 = vld [vmem:[%s5633_s0 + $0x30] sm:$0xff] }
 0x19a   :  { %1168 = vst.msk [vmem:[%s5634_s1 + $0x1dd] sm:$0x1] %vm264_vm0, %v904_v39  ;;  %v1368_v39 = vperm.slane %v1250_v34, 0  ;;  %v1253_v44 = vrot.slane %v1183_v37, 3  ;;  %v1256_v53 = vrot.slane %v1183_v37, 6 }
 0x19c   :  { %1499 = vrot.lane.b32.xlu0 %v1346_v38, %s2753_s21 }
 0x19e   :  { %1501 = vrot.lane.b32.xlu1 %v1347_v40, %s2753_s21  ;;  %v888_v43 = vpop.permute.xlu0 %887  ;;  %1503 = vrot.lane.b32.xlu2 %v1348_v41, %s2753_s21  ;;  %v1369_v40 = vperm.slane %v1183_v37, 0  ;;  %v1251_v41 = vrot.slane %v1183_v37, 1 }
 0x19f   :  { %1160 = vst.msk [vmem:[%s5634_s1 + $0x1bd] sm:$0x1] %vm264_vm0, %v888_v43  ;;  %v1252_v43 = vrot.slane %v1183_v37, 2 }
 0x1a0   :  { %v890_v46 = vpop.permute.xlu1 %889  ;;  %v910_v48 = vpop.permute.xlu2 %909 }
 0x1a1   :  { %1161 = vst.msk [vmem:[%s5634_s1 + $0x1c1] sm:$0x1] %vm264_vm0, %v890_v46  ;;  %v1370_v46 = vperm.slane %v1251_v41, 0 }
 0x1a2   :  { %1171 = vst.msk [vmem:[%s5634_s1 + $0x1e9] sm:$0x1] %vm264_vm0, %v910_v48  ;;  %v1371_v48 = vperm.slane %v1252_v43, 0 }
 0x1a4   :  { %1505 = vrot.lane.b32.xlu0 %v1349_v47, %s2753_s21 }
 0x1a6   :  { %1507 = vrot.lane.b32.xlu1 %v1350_v49, %s2753_s21  ;;  %v894_v52 = vpop.permute.xlu0 %893  ;;  %1509 = vrot.lane.b32.xlu2 %v1351_v50, %s2753_s21  ;;  %v1372_v49 = vperm.slane %v1253_v44, 0  ;;  %v1254_v50 = vrot.slane %v1183_v37, 4 }
 0x1a7   :  { %1163 = vst.msk [vmem:[%s5634_s1 + $0x1c9] sm:$0x1] %vm264_vm0, %v894_v52  ;;  %v1255_v52 = vrot.slane %v1183_v37, 5 }
 0x1a8   :  { %v896_v55 = vpop.permute.xlu1 %895  ;;  %v916_v57 = vpop.permute.xlu2 %915 }
 0x1a9   :  { %1164 = vst.msk [vmem:[%s5634_s1 + $0x1cd] sm:$0x1] %vm264_vm0, %v896_v55  ;;  %v1373_v55 = vperm.slane %v1254_v50, 0 }
 0x1aa   :  { %1174 = vst.msk [vmem:[%s5634_s1 + $0x1f5] sm:$0x1] %vm264_vm0, %v916_v57  ;;  %v1374_v57 = vperm.slane %v1255_v52, 0 }
 0x1ac   :  { %1511 = vrot.lane.b32.xlu0 %v1352_v56, %s2753_s21 }
 0x1ae   :  { %1513 = vrot.lane.b32.xlu1 %v1353_v58, %s2753_s21  ;;  %v900_v61 = vpop.permute.xlu0 %899  ;;  %1515 = vrot.lane.b32.xlu2 %v1354_v59, %s2753_s21  ;;  %v1375_v58 = vperm.slane %v1256_v53, 0  ;;  %v1257_v59 = vrot.slane %v1183_v37, 7 }
 0x1af   :  { %1166 = vst.msk [vmem:[%s5634_s1 + $0x1d5] sm:$0x1] %vm264_vm0, %v900_v61  ;;  %v1184_v61 = vld [vmem:[%s5633_s0 + $0x38] sm:$0xff] }
 0x1b0   :  { %v902_v0 = vpop.permute.xlu1 %901  ;;  %v1450_v2 = vpop.permute.xlu2 %1449  ;;  %v1258_v62 = vrot.slane %v1184_v61, 1  ;;  %v1261_v7 = vrot.slane %v1184_v61, 4  ;;  %v1262_v13 = vrot.slane %v1184_v61, 5  ;;  %v1264_v16 = vrot.slane %v1184_v61, 7 }
 0x1b1   :  { %1167 = vst.msk [vmem:[%s5634_s1 + $0x1d9] sm:$0x1] %vm264_vm0, %v902_v0  ;;  %v1376_v0 = vperm.slane %v1257_v59, 0 }
 0x1b2   :  { %1833 = vst.msk [vmem:[%s5634_s1 + $0x2] sm:$0x1] %vm264_vm0, %v1450_v2  ;;  %v1377_v2 = vperm.slane %v1184_v61, 0 }
 0x1b4   :  { %1517 = vrot.lane.b32.xlu0 %v1355_v1, %s2753_s21 }
 0x1b6   :  { %1519 = vrot.lane.b32.xlu1 %v1356_v3, %s2753_s21  ;;  %v906_v6 = vpop.permute.xlu0 %905  ;;  %1521 = vrot.lane.b32.xlu2 %v1357_v4, %s2753_s21  ;;  %v1378_v3 = vperm.slane %v1258_v62, 0  ;;  %v1259_v4 = vrot.slane %v1184_v61, 2 }
 0x1b7   :  { %1169 = vst.msk [vmem:[%s5634_s1 + $0x1e1] sm:$0x1] %vm264_vm0, %v906_v6  ;;  %v1260_v6 = vrot.slane %v1184_v61, 3 }
 0x1b8   :  { %v908_v9 = vpop.permute.xlu1 %907  ;;  %v1456_v11 = vpop.permute.xlu2 %1455 }
 0x1b9   :  { %1170 = vst.msk [vmem:[%s5634_s1 + $0x1e5] sm:$0x1] %vm264_vm0, %v908_v9  ;;  %v1379_v9 = vperm.slane %v1259_v4, 0 }
 0x1ba   :  { %1836 = vst.msk [vmem:[%s5634_s1 + $0xe] sm:$0x1] %vm264_vm0, %v1456_v11  ;;  %v1380_v11 = vperm.slane %v1260_v6, 0 }
 0x1bc   :  { %1523 = vrot.lane.b32.xlu0 %v1358_v10, %s2753_s21 }
 0x1be   :  { %1525 = vrot.lane.b32.xlu1 %v1359_v12, %s2753_s21  ;;  %v912_v15 = vpop.permute.xlu0 %911  ;;  %1527 = vrot.lane.b32.xlu2 %v1360_v14, %s2753_s21  ;;  %v1381_v12 = vperm.slane %v1261_v7, 0 }
 0x1bf   :  { %1172 = vst.msk [vmem:[%s5634_s1 + $0x1ed] sm:$0x1] %vm264_vm0, %v912_v15  ;;  %v1263_v15 = vrot.slane %v1184_v61, 6 }
 0x1c0   :  { %v914_v18 = vpop.permute.xlu1 %913  ;;  %v1462_v20 = vpop.permute.xlu2 %1461 }
 0x1c1   :  { %1173 = vst.msk [vmem:[%s5634_s1 + $0x1f1] sm:$0x1] %vm264_vm0, %v914_v18  ;;  %v1382_v18 = vperm.slane %v1262_v13, 0 }
 0x1c2   :  { %1839 = vst.msk [vmem:[%s5634_s1 + $0x1a] sm:$0x1] %vm264_vm0, %v1462_v20  ;;  %v1383_v20 = vperm.slane %v1263_v15, 0 }
 0x1c4   :  { %1529 = vrot.lane.b32.xlu0 %v1361_v19, %s2753_s21 }
 0x1c6   :  { %1531 = vrot.lane.b32.xlu1 %v1362_v21, %s2753_s21  ;;  %v918_v24 = vpop.permute.xlu0 %917  ;;  %1533 = vrot.lane.b32.xlu2 %v1363_v22, %s2753_s21  ;;  %v1185_v21 = vld [vmem:[%s5633_s0 + $0x40] sm:$0xff]  ;;  %v1384_v22 = vperm.slane %v1264_v16, 0 }
 0x1c7   :  { %1175 = vst.msk [vmem:[%s5634_s1 + $0x1f9] sm:$0x1] %vm264_vm0, %v918_v24  ;;  %v1265_v24 = vrot.slane %v1185_v21, 1  ;;  %v1266_v25 = vrot.slane %v1185_v21, 2  ;;  %v1269_v34 = vrot.slane %v1185_v21, 5 }
 0x1c8   :  { %v920_v27 = vpop.permute.xlu1 %919  ;;  %v1468_v29 = vpop.permute.xlu2 %1467 }
 0x1c9   :  { %1176 = vst.msk [vmem:[%s5634_s1 + $0x1fd] sm:$0x1] %vm264_vm0, %v920_v27  ;;  %v1385_v27 = vperm.slane %v1185_v21, 0 }
 0x1ca   :  { %1842 = vst.msk [vmem:[%s5634_s1 + $0x26] sm:$0x1] %vm264_vm0, %v1468_v29  ;;  %v1386_v29 = vperm.slane %v1265_v24, 0 }
 0x1cc   :  { %1535 = vrot.lane.b32.xlu0 %v1364_v28, %s2753_s21 }
 0x1ce   :  { %1537 = vrot.lane.b32.xlu1 %v1365_v30, %s2753_s21  ;;  %v1452_v33 = vpop.permute.xlu0 %1451  ;;  %1539 = vrot.lane.b32.xlu2 %v1366_v31, %s2753_s21  ;;  %v1387_v30 = vperm.slane %v1266_v25, 0  ;;  %v1267_v31 = vrot.slane %v1185_v21, 3 }
 0x1cf   :  { %1834 = vst.msk [vmem:[%s5634_s1 + $0x6] sm:$0x1] %vm264_vm0, %v1452_v33  ;;  %v1268_v33 = vrot.slane %v1185_v21, 4 }
 0x1d0   :  { %v1454_v35 = vpop.permute.xlu1 %1453  ;;  %v1474_v38 = vpop.permute.xlu2 %1473 }
 0x1d1   :  { %1835 = vst.msk [vmem:[%s5634_s1 + $0xa] sm:$0x1] %vm264_vm0, %v1454_v35 }
 0x1d2   :  { %1845 = vst.msk [vmem:[%s5634_s1 + $0x32] sm:$0x1] %vm264_vm0, %v1474_v38  ;;  %v1389_v38 = vperm.slane %v1268_v33, 0 }
 0x1d4   :  { %1541 = vrot.lane.b32.xlu0 %v1367_v36, %s2753_s21  ;;  %v1388_v36 = vperm.slane %v1267_v31, 0 }
 0x1d6   :  { %1543 = vrot.lane.b32.xlu1 %v1368_v39, %s2753_s21  ;;  %v1458_v42 = vpop.permute.xlu0 %1457  ;;  %1545 = vrot.lane.b32.xlu2 %v1369_v40, %s2753_s21  ;;  %v1390_v39 = vperm.slane %v1269_v34, 0  ;;  %v1270_v40 = vrot.slane %v1185_v21, 6 }
 0x1d7   :  { %1837 = vst.msk [vmem:[%s5634_s1 + $0x12] sm:$0x1] %vm264_vm0, %v1458_v42  ;;  %v1271_v42 = vrot.slane %v1185_v21, 7 }
 0x1d8   :  { %v1460_v45 = vpop.permute.xlu1 %1459  ;;  %v1480_v47 = vpop.permute.xlu2 %1479  ;;  %v1391_v44 = vperm.slane %v1270_v40, 0 }
 0x1d9   :  { %1838 = vst.msk [vmem:[%s5634_s1 + $0x16] sm:$0x1] %vm264_vm0, %v1460_v45  ;;  %v1186_v45 = vld [vmem:[%s5633_s0 + $0x48] sm:$0xff] }
 0x1da   :  { %1848 = vst.msk [vmem:[%s5634_s1 + $0x3e] sm:$0x1] %vm264_vm0, %v1480_v47  ;;  %v1392_v47 = vperm.slane %v1271_v42, 0  ;;  %v1274_v52 = vrot.slane %v1186_v45, 3  ;;  %v1277_v61 = vrot.slane %v1186_v45, 6 }
 0x1dc   :  { %1547 = vrot.lane.b32.xlu0 %v1370_v46, %s2753_s21 }
 0x1de   :  { %1549 = vrot.lane.b32.xlu1 %v1371_v48, %s2753_s21  ;;  %v1464_v51 = vpop.permute.xlu0 %1463  ;;  %1551 = vrot.lane.b32.xlu2 %v1372_v49, %s2753_s21  ;;  %v1393_v48 = vperm.slane %v1186_v45, 0  ;;  %v1272_v49 = vrot.slane %v1186_v45, 1 }
 0x1df   :  { %1840 = vst.msk [vmem:[%s5634_s1 + $0x1e] sm:$0x1] %vm264_vm0, %v1464_v51  ;;  %v1273_v51 = vrot.slane %v1186_v45, 2 }
 0x1e0   :  { %v1466_v54 = vpop.permute.xlu1 %1465  ;;  %v1486_v56 = vpop.permute.xlu2 %1485 }
 0x1e1   :  { %1841 = vst.msk [vmem:[%s5634_s1 + $0x22] sm:$0x1] %vm264_vm0, %v1466_v54  ;;  %v1394_v54 = vperm.slane %v1272_v49, 0 }
 0x1e2   :  { %1851 = vst.msk [vmem:[%s5634_s1 + $0x4a] sm:$0x1] %vm264_vm0, %v1486_v56  ;;  %v1395_v56 = vperm.slane %v1273_v51, 0 }
 0x1e4   :  { %1553 = vrot.lane.b32.xlu0 %v1373_v55, %s2753_s21 }
 0x1e6   :  { %1555 = vrot.lane.b32.xlu1 %v1374_v57, %s2753_s21  ;;  %v1470_v60 = vpop.permute.xlu0 %1469  ;;  %1557 = vrot.lane.b32.xlu2 %v1375_v58, %s2753_s21  ;;  %v1396_v57 = vperm.slane %v1274_v52, 0  ;;  %v1275_v58 = vrot.slane %v1186_v45, 4 }
 0x1e7   :  { %1843 = vst.msk [vmem:[%s5634_s1 + $0x2a] sm:$0x1] %vm264_vm0, %v1470_v60  ;;  %v1276_v60 = vrot.slane %v1186_v45, 5 }
 0x1e8   :  { %v1472_v63 = vpop.permute.xlu1 %1471  ;;  %v1492_v1 = vpop.permute.xlu2 %1491 }
 0x1e9   :  { %1844 = vst.msk [vmem:[%s5634_s1 + $0x2e] sm:$0x1] %vm264_vm0, %v1472_v63  ;;  %v1397_v63 = vperm.slane %v1275_v58, 0 }
 0x1ea   :  { %1854 = vst.msk [vmem:[%s5634_s1 + $0x56] sm:$0x1] %vm264_vm0, %v1492_v1  ;;  %v1398_v1 = vperm.slane %v1276_v60, 0 }
 0x1ec   :  { %1559 = vrot.lane.b32.xlu0 %v1376_v0, %s2753_s21 }
 0x1ee   :  { %1561 = vrot.lane.b32.xlu1 %v1377_v2, %s2753_s21  ;;  %v1476_v5 = vpop.permute.xlu0 %1475  ;;  %1563 = vrot.lane.b32.xlu2 %v1378_v3, %s2753_s21  ;;  %v1399_v2 = vperm.slane %v1277_v61, 0  ;;  %v1278_v3 = vrot.slane %v1186_v45, 7 }
 0x1ef   :  { %1846 = vst.msk [vmem:[%s5634_s1 + $0x36] sm:$0x1] %vm264_vm0, %v1476_v5  ;;  %v1187_v5 = vld [vmem:[%s5633_s0 + $0x50] sm:$0xff] }
 0x1f0   :  { %v1478_v8 = vpop.permute.xlu1 %1477  ;;  %v1498_v10 = vpop.permute.xlu2 %1497  ;;  %v1279_v6 = vrot.slane %v1187_v5, 1  ;;  %v1282_v15 = vrot.slane %v1187_v5, 4  ;;  %v1283_v21 = vrot.slane %v1187_v5, 5  ;;  %v1285_v24 = vrot.slane %v1187_v5, 7 }
 0x1f1   :  { %1847 = vst.msk [vmem:[%s5634_s1 + $0x3a] sm:$0x1] %vm264_vm0, %v1478_v8  ;;  %v1400_v8 = vperm.slane %v1278_v3, 0 }
 0x1f2   :  { %1857 = vst.msk [vmem:[%s5634_s1 + $0x62] sm:$0x1] %vm264_vm0, %v1498_v10  ;;  %v1401_v10 = vperm.slane %v1187_v5, 0 }
 0x1f4   :  { %1565 = vrot.lane.b32.xlu0 %v1379_v9, %s2753_s21 }
 0x1f6   :  { %1567 = vrot.lane.b32.xlu1 %v1380_v11, %s2753_s21  ;;  %v1482_v14 = vpop.permute.xlu0 %1481  ;;  %1569 = vrot.lane.b32.xlu2 %v1381_v12, %s2753_s21  ;;  %v1402_v11 = vperm.slane %v1279_v6, 0  ;;  %v1280_v12 = vrot.slane %v1187_v5, 2 }
 0x1f7   :  { %1849 = vst.msk [vmem:[%s5634_s1 + $0x42] sm:$0x1] %vm264_vm0, %v1482_v14  ;;  %v1281_v14 = vrot.slane %v1187_v5, 3 }
 0x1f8   :  { %v1484_v17 = vpop.permute.xlu1 %1483  ;;  %v1504_v19 = vpop.permute.xlu2 %1503 }
 0x1f9   :  { %1850 = vst.msk [vmem:[%s5634_s1 + $0x46] sm:$0x1] %vm264_vm0, %v1484_v17  ;;  %v1403_v17 = vperm.slane %v1280_v12, 0 }
 0x1fa   :  { %1860 = vst.msk [vmem:[%s5634_s1 + $0x6e] sm:$0x1] %vm264_vm0, %v1504_v19  ;;  %v1404_v19 = vperm.slane %v1281_v14, 0 }
 0x1fc   :  { %1571 = vrot.lane.b32.xlu0 %v1382_v18, %s2753_s21 }
 0x1fe   :  { %1573 = vrot.lane.b32.xlu1 %v1383_v20, %s2753_s21  ;;  %v1488_v23 = vpop.permute.xlu0 %1487  ;;  %1575 = vrot.lane.b32.xlu2 %v1384_v22, %s2753_s21  ;;  %v1405_v20 = vperm.slane %v1282_v15, 0 }
 0x1ff   :  { %1852 = vst.msk [vmem:[%s5634_s1 + $0x4e] sm:$0x1] %vm264_vm0, %v1488_v23  ;;  %v1284_v23 = vrot.slane %v1187_v5, 6 }
 0x200   :  { %v1490_v26 = vpop.permute.xlu1 %1489  ;;  %v1510_v28 = vpop.permute.xlu2 %1509 }
 0x201   :  { %1853 = vst.msk [vmem:[%s5634_s1 + $0x52] sm:$0x1] %vm264_vm0, %v1490_v26  ;;  %v1406_v26 = vperm.slane %v1283_v21, 0 }
 0x202   :  { %1863 = vst.msk [vmem:[%s5634_s1 + $0x7a] sm:$0x1] %vm264_vm0, %v1510_v28  ;;  %v1407_v28 = vperm.slane %v1284_v23, 0 }
 0x204   :  { %1577 = vrot.lane.b32.xlu0 %v1385_v27, %s2753_s21 }
 0x206   :  { %1579 = vrot.lane.b32.xlu1 %v1386_v29, %s2753_s21  ;;  %v1494_v32 = vpop.permute.xlu0 %1493  ;;  %1581 = vrot.lane.b32.xlu2 %v1387_v30, %s2753_s21  ;;  %v1188_v29 = vld [vmem:[%s5633_s0 + $0x58] sm:$0xff]  ;;  %v1408_v30 = vperm.slane %v1285_v24, 0 }
 0x207   :  { %1855 = vst.msk [vmem:[%s5634_s1 + $0x5a] sm:$0x1] %vm264_vm0, %v1494_v32  ;;  %v1286_v32 = vrot.slane %v1188_v29, 1  ;;  %v1287_v33 = vrot.slane %v1188_v29, 2  ;;  %v1290_v42 = vrot.slane %v1188_v29, 5 }
 0x208   :  { %v1496_v35 = vpop.permute.xlu1 %1495  ;;  %v1516_v37 = vpop.permute.xlu2 %1515 }
 0x209   :  { %1856 = vst.msk [vmem:[%s5634_s1 + $0x5e] sm:$0x1] %vm264_vm0, %v1496_v35  ;;  %v1409_v35 = vperm.slane %v1188_v29, 0 }
 0x20a   :  { %1866 = vst.msk [vmem:[%s5634_s1 + $0x86] sm:$0x1] %vm264_vm0, %v1516_v37  ;;  %v1410_v37 = vperm.slane %v1286_v32, 0 }
 0x20c   :  { %1583 = vrot.lane.b32.xlu0 %v1388_v36, %s2753_s21 }
 0x20e   :  { %1585 = vrot.lane.b32.xlu1 %v1389_v38, %s2753_s21  ;;  %v1500_v41 = vpop.permute.xlu0 %1499  ;;  %1587 = vrot.lane.b32.xlu2 %v1390_v39, %s2753_s21  ;;  %v1411_v38 = vperm.slane %v1287_v33, 0  ;;  %v1288_v39 = vrot.slane %v1188_v29, 3 }
 0x20f   :  { %1858 = vst.msk [vmem:[%s5634_s1 + $0x66] sm:$0x1] %vm264_vm0, %v1500_v41  ;;  %v1289_v41 = vrot.slane %v1188_v29, 4 }
 0x210   :  { %v1502_v43 = vpop.permute.xlu1 %1501  ;;  %v1522_v46 = vpop.permute.xlu2 %1521 }
 0x211   :  { %1859 = vst.msk [vmem:[%s5634_s1 + $0x6a] sm:$0x1] %vm264_vm0, %v1502_v43 }
 0x212   :  { %1869 = vst.msk [vmem:[%s5634_s1 + $0x92] sm:$0x1] %vm264_vm0, %v1522_v46  ;;  %v1413_v46 = vperm.slane %v1289_v41, 0 }
 0x214   :  { %1589 = vrot.lane.b32.xlu0 %v1391_v44, %s2753_s21  ;;  %v1412_v44 = vperm.slane %v1288_v39, 0 }
 0x216   :  { %1591 = vrot.lane.b32.xlu1 %v1392_v47, %s2753_s21  ;;  %v1506_v50 = vpop.permute.xlu0 %1505  ;;  %1593 = vrot.lane.b32.xlu2 %v1393_v48, %s2753_s21  ;;  %v1414_v47 = vperm.slane %v1290_v42, 0  ;;  %v1291_v48 = vrot.slane %v1188_v29, 6 }
 0x217   :  { %1861 = vst.msk [vmem:[%s5634_s1 + $0x72] sm:$0x1] %vm264_vm0, %v1506_v50  ;;  %v1292_v50 = vrot.slane %v1188_v29, 7 }
 0x218   :  { %v1508_v53 = vpop.permute.xlu1 %1507  ;;  %v1528_v55 = vpop.permute.xlu2 %1527  ;;  %v1415_v52 = vperm.slane %v1291_v48, 0 }
 0x219   :  { %1862 = vst.msk [vmem:[%s5634_s1 + $0x76] sm:$0x1] %vm264_vm0, %v1508_v53  ;;  %v1189_v53 = vld [vmem:[%s5633_s0 + $0x60] sm:$0xff] }
 0x21a   :  { %1872 = vst.msk [vmem:[%s5634_s1 + $0x9e] sm:$0x1] %vm264_vm0, %v1528_v55  ;;  %v1416_v55 = vperm.slane %v1292_v50, 0  ;;  %v1295_v60 = vrot.slane %v1189_v53, 3  ;;  %v1298_v5 = vrot.slane %v1189_v53, 6 }
 0x21c   :  { %1595 = vrot.lane.b32.xlu0 %v1394_v54, %s2753_s21 }
 0x21e   :  { %1597 = vrot.lane.b32.xlu1 %v1395_v56, %s2753_s21  ;;  %v1512_v59 = vpop.permute.xlu0 %1511  ;;  %1599 = vrot.lane.b32.xlu2 %v1396_v57, %s2753_s21  ;;  %v1417_v56 = vperm.slane %v1189_v53, 0  ;;  %v1293_v57 = vrot.slane %v1189_v53, 1 }
 0x21f   :  { %1864 = vst.msk [vmem:[%s5634_s1 + $0x7e] sm:$0x1] %vm264_vm0, %v1512_v59  ;;  %v1294_v59 = vrot.slane %v1189_v53, 2 }
 0x220   :  { %v1514_v62 = vpop.permute.xlu1 %1513  ;;  %v1534_v0 = vpop.permute.xlu2 %1533 }
 0x221   :  { %1865 = vst.msk [vmem:[%s5634_s1 + $0x82] sm:$0x1] %vm264_vm0, %v1514_v62  ;;  %v1418_v62 = vperm.slane %v1293_v57, 0 }
 0x222   :  { %1875 = vst.msk [vmem:[%s5634_s1 + $0xaa] sm:$0x1] %vm264_vm0, %v1534_v0  ;;  %v1419_v0 = vperm.slane %v1294_v59, 0 }
 0x224   :  { %1601 = vrot.lane.b32.xlu0 %v1397_v63, %s2753_s21 }
 0x226   :  { %1603 = vrot.lane.b32.xlu1 %v1398_v1, %s2753_s21  ;;  %v1518_v4 = vpop.permute.xlu0 %1517  ;;  %1605 = vrot.lane.b32.xlu2 %v1399_v2, %s2753_s21  ;;  %v1420_v1 = vperm.slane %v1295_v60, 0  ;;  %v1296_v2 = vrot.slane %v1189_v53, 4 }
 0x227   :  { %1867 = vst.msk [vmem:[%s5634_s1 + $0x8a] sm:$0x1] %vm264_vm0, %v1518_v4  ;;  %v1297_v4 = vrot.slane %v1189_v53, 5 }
 0x228   :  { %v1520_v7 = vpop.permute.xlu1 %1519  ;;  %v1540_v9 = vpop.permute.xlu2 %1539 }
 0x229   :  { %1868 = vst.msk [vmem:[%s5634_s1 + $0x8e] sm:$0x1] %vm264_vm0, %v1520_v7  ;;  %v1421_v7 = vperm.slane %v1296_v2, 0 }
 0x22a   :  { %1878 = vst.msk [vmem:[%s5634_s1 + $0xb6] sm:$0x1] %vm264_vm0, %v1540_v9  ;;  %v1422_v9 = vperm.slane %v1297_v4, 0 }
 0x22c   :  { %1607 = vrot.lane.b32.xlu0 %v1400_v8, %s2753_s21 }
 0x22e   :  { %1609 = vrot.lane.b32.xlu1 %v1401_v10, %s2753_s21  ;;  %v1524_v13 = vpop.permute.xlu0 %1523  ;;  %1611 = vrot.lane.b32.xlu2 %v1402_v11, %s2753_s21  ;;  %v1423_v10 = vperm.slane %v1298_v5, 0  ;;  %v1299_v11 = vrot.slane %v1189_v53, 7 }
 0x22f   :  { %1870 = vst.msk [vmem:[%s5634_s1 + $0x96] sm:$0x1] %vm264_vm0, %v1524_v13  ;;  %v1190_v13 = vld [vmem:[%s5633_s0 + $0x68] sm:$0xff] }
 0x230   :  { %v1526_v16 = vpop.permute.xlu1 %1525  ;;  %v1546_v18 = vpop.permute.xlu2 %1545  ;;  %v1300_v14 = vrot.slane %v1190_v13, 1  ;;  %v1303_v23 = vrot.slane %v1190_v13, 4  ;;  %v1304_v29 = vrot.slane %v1190_v13, 5  ;;  %v1306_v32 = vrot.slane %v1190_v13, 7 }
 0x231   :  { %1871 = vst.msk [vmem:[%s5634_s1 + $0x9a] sm:$0x1] %vm264_vm0, %v1526_v16  ;;  %v1424_v16 = vperm.slane %v1299_v11, 0 }
 0x232   :  { %1881 = vst.msk [vmem:[%s5634_s1 + $0xc2] sm:$0x1] %vm264_vm0, %v1546_v18  ;;  %v1425_v18 = vperm.slane %v1190_v13, 0 }
 0x234   :  { %1613 = vrot.lane.b32.xlu0 %v1403_v17, %s2753_s21 }
 0x236   :  { %1615 = vrot.lane.b32.xlu1 %v1404_v19, %s2753_s21  ;;  %v1530_v22 = vpop.permute.xlu0 %1529  ;;  %1617 = vrot.lane.b32.xlu2 %v1405_v20, %s2753_s21  ;;  %v1426_v19 = vperm.slane %v1300_v14, 0  ;;  %v1301_v20 = vrot.slane %v1190_v13, 2 }
 0x237   :  { %1873 = vst.msk [vmem:[%s5634_s1 + $0xa2] sm:$0x1] %vm264_vm0, %v1530_v22  ;;  %v1302_v22 = vrot.slane %v1190_v13, 3 }
 0x238   :  { %v1532_v25 = vpop.permute.xlu1 %1531  ;;  %v1552_v27 = vpop.permute.xlu2 %1551 }
 0x239   :  { %1874 = vst.msk [vmem:[%s5634_s1 + $0xa6] sm:$0x1] %vm264_vm0, %v1532_v25  ;;  %v1427_v25 = vperm.slane %v1301_v20, 0 }
 0x23a   :  { %1884 = vst.msk [vmem:[%s5634_s1 + $0xce] sm:$0x1] %vm264_vm0, %v1552_v27  ;;  %v1428_v27 = vperm.slane %v1302_v22, 0 }
 0x23c   :  { %1619 = vrot.lane.b32.xlu0 %v1406_v26, %s2753_s21 }
 0x23e   :  { %1621 = vrot.lane.b32.xlu1 %v1407_v28, %s2753_s21  ;;  %v1536_v31 = vpop.permute.xlu0 %1535  ;;  %1623 = vrot.lane.b32.xlu2 %v1408_v30, %s2753_s21  ;;  %v1429_v28 = vperm.slane %v1303_v23, 0 }
 0x23f   :  { %1876 = vst.msk [vmem:[%s5634_s1 + $0xae] sm:$0x1] %vm264_vm0, %v1536_v31  ;;  %v1305_v31 = vrot.slane %v1190_v13, 6 }
 0x240   :  { %v1538_v34 = vpop.permute.xlu1 %1537  ;;  %v1558_v36 = vpop.permute.xlu2 %1557 }
 0x241   :  { %1877 = vst.msk [vmem:[%s5634_s1 + $0xb2] sm:$0x1] %vm264_vm0, %v1538_v34  ;;  %v1430_v34 = vperm.slane %v1304_v29, 0 }
 0x242   :  { %1887 = vst.msk [vmem:[%s5634_s1 + $0xda] sm:$0x1] %vm264_vm0, %v1558_v36  ;;  %v1431_v36 = vperm.slane %v1305_v31, 0 }
 0x244   :  { %1625 = vrot.lane.b32.xlu0 %v1409_v35, %s2753_s21 }
 0x246   :  { %1627 = vrot.lane.b32.xlu1 %v1410_v37, %s2753_s21  ;;  %v1542_v40 = vpop.permute.xlu0 %1541  ;;  %1629 = vrot.lane.b32.xlu2 %v1411_v38, %s2753_s21  ;;  %v1191_v37 = vld [vmem:[%s5633_s0 + $0x70] sm:$0xff]  ;;  %v1432_v38 = vperm.slane %v1306_v32, 0 }
 0x247   :  { %1879 = vst.msk [vmem:[%s5634_s1 + $0xba] sm:$0x1] %vm264_vm0, %v1542_v40  ;;  %v1307_v40 = vrot.slane %v1191_v37, 1  ;;  %v1308_v41 = vrot.slane %v1191_v37, 2  ;;  %v1311_v50 = vrot.slane %v1191_v37, 5 }
 0x248   :  { %v1544_v43 = vpop.permute.xlu1 %1543  ;;  %v1564_v45 = vpop.permute.xlu2 %1563 }
 0x249   :  { %1880 = vst.msk [vmem:[%s5634_s1 + $0xbe] sm:$0x1] %vm264_vm0, %v1544_v43  ;;  %v1433_v43 = vperm.slane %v1191_v37, 0 }
 0x24a   :  { %1890 = vst.msk [vmem:[%s5634_s1 + $0xe6] sm:$0x1] %vm264_vm0, %v1564_v45  ;;  %v1434_v45 = vperm.slane %v1307_v40, 0 }
 0x24c   :  { %1631 = vrot.lane.b32.xlu0 %v1412_v44, %s2753_s21 }
 0x24e   :  { %1633 = vrot.lane.b32.xlu1 %v1413_v46, %s2753_s21  ;;  %v1548_v49 = vpop.permute.xlu0 %1547  ;;  %1635 = vrot.lane.b32.xlu2 %v1414_v47, %s2753_s21  ;;  %v1435_v46 = vperm.slane %v1308_v41, 0  ;;  %v1309_v47 = vrot.slane %v1191_v37, 3 }
 0x24f   :  { %1882 = vst.msk [vmem:[%s5634_s1 + $0xc6] sm:$0x1] %vm264_vm0, %v1548_v49  ;;  %v1310_v49 = vrot.slane %v1191_v37, 4 }
 0x250   :  { %v1550_v51 = vpop.permute.xlu1 %1549  ;;  %v1570_v54 = vpop.permute.xlu2 %1569 }
 0x251   :  { %1883 = vst.msk [vmem:[%s5634_s1 + $0xca] sm:$0x1] %vm264_vm0, %v1550_v51 }
 0x252   :  { %1893 = vst.msk [vmem:[%s5634_s1 + $0xf2] sm:$0x1] %vm264_vm0, %v1570_v54  ;;  %v1437_v54 = vperm.slane %v1310_v49, 0 }
 0x254   :  { %1637 = vrot.lane.b32.xlu0 %v1415_v52, %s2753_s21  ;;  %v1436_v52 = vperm.slane %v1309_v47, 0 }
 0x256   :  { %1639 = vrot.lane.b32.xlu1 %v1416_v55, %s2753_s21  ;;  %v1554_v58 = vpop.permute.xlu0 %1553  ;;  %1641 = vrot.lane.b32.xlu2 %v1417_v56, %s2753_s21  ;;  %v1438_v55 = vperm.slane %v1311_v50, 0  ;;  %v1312_v56 = vrot.slane %v1191_v37, 6 }
 0x257   :  { %1885 = vst.msk [vmem:[%s5634_s1 + $0xd2] sm:$0x1] %vm264_vm0, %v1554_v58  ;;  %v1313_v58 = vrot.slane %v1191_v37, 7 }
 0x258   :  { %v1556_v61 = vpop.permute.xlu1 %1555  ;;  %v1576_v63 = vpop.permute.xlu2 %1575  ;;  %v1439_v60 = vperm.slane %v1312_v56, 0 }
 0x259   :  { %1886 = vst.msk [vmem:[%s5634_s1 + $0xd6] sm:$0x1] %vm264_vm0, %v1556_v61  ;;  %v1192_v61 = vld [vmem:[%s5633_s0 + $0x78] sm:$0xff] }
 0x25a   :  { %1896 = vst.msk [vmem:[%s5634_s1 + $0xfe] sm:$0x1] %vm264_vm0, %v1576_v63  ;;  %v1440_v63 = vperm.slane %v1313_v58, 0  ;;  %v1316_v4 = vrot.slane %v1192_v61, 3  ;;  %v1319_v13 = vrot.slane %v1192_v61, 6 }
 0x25c   :  { %1643 = vrot.lane.b32.xlu0 %v1418_v62, %s2753_s21 }
 0x25e   :  { %1645 = vrot.lane.b32.xlu1 %v1419_v0, %s2753_s21  ;;  %v1560_v3 = vpop.permute.xlu0 %1559  ;;  %1647 = vrot.lane.b32.xlu2 %v1420_v1, %s2753_s21  ;;  %v1441_v0 = vperm.slane %v1192_v61, 0  ;;  %v1314_v1 = vrot.slane %v1192_v61, 1 }
 0x25f   :  { %1888 = vst.msk [vmem:[%s5634_s1 + $0xde] sm:$0x1] %vm264_vm0, %v1560_v3  ;;  %v1315_v3 = vrot.slane %v1192_v61, 2 }
 0x260   :  { %v1562_v6 = vpop.permute.xlu1 %1561  ;;  %v1582_v8 = vpop.permute.xlu2 %1581 }
 0x261   :  { %1889 = vst.msk [vmem:[%s5634_s1 + $0xe2] sm:$0x1] %vm264_vm0, %v1562_v6  ;;  %v1442_v6 = vperm.slane %v1314_v1, 0 }
 0x262   :  { %1899 = vst.msk [vmem:[%s5634_s1 + $0x10a] sm:$0x1] %vm264_vm0, %v1582_v8  ;;  %v1443_v8 = vperm.slane %v1315_v3, 0 }
 0x264   :  { %1649 = vrot.lane.b32.xlu0 %v1421_v7, %s2753_s21 }
 0x266   :  { %1651 = vrot.lane.b32.xlu1 %v1422_v9, %s2753_s21  ;;  %v1566_v12 = vpop.permute.xlu0 %1565  ;;  %1653 = vrot.lane.b32.xlu2 %v1423_v10, %s2753_s21  ;;  %v1444_v9 = vperm.slane %v1316_v4, 0  ;;  %v1317_v10 = vrot.slane %v1192_v61, 4 }
 0x267   :  { %1891 = vst.msk [vmem:[%s5634_s1 + $0xea] sm:$0x1] %vm264_vm0, %v1566_v12  ;;  %v1318_v12 = vrot.slane %v1192_v61, 5 }
 0x268   :  { %v1568_v15 = vpop.permute.xlu1 %1567  ;;  %v1588_v17 = vpop.permute.xlu2 %1587 }
 0x269   :  { %1892 = vst.msk [vmem:[%s5634_s1 + $0xee] sm:$0x1] %vm264_vm0, %v1568_v15  ;;  %v1445_v15 = vperm.slane %v1317_v10, 0 }
 0x26a   :  { %1902 = vst.msk [vmem:[%s5634_s1 + $0x116] sm:$0x1] %vm264_vm0, %v1588_v17  ;;  %v1446_v17 = vperm.slane %v1318_v12, 0 }
 0x26c   :  { %1655 = vrot.lane.b32.xlu0 %v1424_v16, %s2753_s21 }
 0x26e   :  { %1657 = vrot.lane.b32.xlu1 %v1425_v18, %s2753_s21  ;;  %v1572_v21 = vpop.permute.xlu0 %1571  ;;  %1659 = vrot.lane.b32.xlu2 %v1426_v19, %s2753_s21  ;;  %v1447_v18 = vperm.slane %v1319_v13, 0  ;;  %v1320_v19 = vrot.slane %v1192_v61, 7 }
 0x26f   :  { %1894 = vst.msk [vmem:[%s5634_s1 + $0xf6] sm:$0x1] %vm264_vm0, %v1572_v21  ;;  %v1961_v21 = vld [vmem:[%s5633_s0] sm:$0xff] }
 0x270   :  { %v1574_v24 = vpop.permute.xlu1 %1573  ;;  %v1594_v26 = vpop.permute.xlu2 %1593  ;;  %v1993_v22 = vrot.slane %v1961_v21, 1  ;;  %v1996_v31 = vrot.slane %v1961_v21, 4  ;;  %v1997_v37 = vrot.slane %v1961_v21, 5  ;;  %v1999_v40 = vrot.slane %v1961_v21, 7 }
 0x271   :  { %1895 = vst.msk [vmem:[%s5634_s1 + $0xfa] sm:$0x1] %vm264_vm0, %v1574_v24  ;;  %v1448_v24 = vperm.slane %v1320_v19, 0 }
 0x272   :  { %1905 = vst.msk [vmem:[%s5634_s1 + $0x122] sm:$0x1] %vm264_vm0, %v1594_v26  ;;  %v2105_v26 = vperm.slane %v1961_v21, 0 }
 0x274   :  { %1661 = vrot.lane.b32.xlu0 %v1427_v25, %s2753_s21 }
 0x276   :  { %1663 = vrot.lane.b32.xlu1 %v1428_v27, %s2753_s21  ;;  %v1578_v30 = vpop.permute.xlu0 %1577  ;;  %1665 = vrot.lane.b32.xlu2 %v1429_v28, %s2753_s21  ;;  %v2106_v27 = vperm.slane %v1993_v22, 0  ;;  %v1994_v28 = vrot.slane %v1961_v21, 2 }
 0x277   :  { %1897 = vst.msk [vmem:[%s5634_s1 + $0x102] sm:$0x1] %vm264_vm0, %v1578_v30  ;;  %v1995_v30 = vrot.slane %v1961_v21, 3 }
 0x278   :  { %v1580_v33 = vpop.permute.xlu1 %1579  ;;  %v1600_v35 = vpop.permute.xlu2 %1599 }
 0x279   :  { %1898 = vst.msk [vmem:[%s5634_s1 + $0x106] sm:$0x1] %vm264_vm0, %v1580_v33  ;;  %v2107_v33 = vperm.slane %v1994_v28, 0 }
 0x27a   :  { %1908 = vst.msk [vmem:[%s5634_s1 + $0x12e] sm:$0x1] %vm264_vm0, %v1600_v35  ;;  %v2108_v35 = vperm.slane %v1995_v30, 0 }
 0x27c   :  { %1667 = vrot.lane.b32.xlu0 %v1430_v34, %s2753_s21 }
 0x27e   :  { %1669 = vrot.lane.b32.xlu1 %v1431_v36, %s2753_s21  ;;  %v1584_v39 = vpop.permute.xlu0 %1583  ;;  %1671 = vrot.lane.b32.xlu2 %v1432_v38, %s2753_s21  ;;  %v2109_v36 = vperm.slane %v1996_v31, 0 }
 0x27f   :  { %1900 = vst.msk [vmem:[%s5634_s1 + $0x10e] sm:$0x1] %vm264_vm0, %v1584_v39  ;;  %v1998_v39 = vrot.slane %v1961_v21, 6 }
 0x280   :  { %v1586_v42 = vpop.permute.xlu1 %1585  ;;  %v1606_v44 = vpop.permute.xlu2 %1605 }
 0x281   :  { %1901 = vst.msk [vmem:[%s5634_s1 + $0x112] sm:$0x1] %vm264_vm0, %v1586_v42  ;;  %v2110_v42 = vperm.slane %v1997_v37, 0 }
 0x282   :  { %1911 = vst.msk [vmem:[%s5634_s1 + $0x13a] sm:$0x1] %vm264_vm0, %v1606_v44  ;;  %v2111_v44 = vperm.slane %v1998_v39, 0 }
 0x284   :  { %1673 = vrot.lane.b32.xlu0 %v1433_v43, %s2753_s21 }
 0x286   :  { %1675 = vrot.lane.b32.xlu1 %v1434_v45, %s2753_s21  ;;  %v1590_v48 = vpop.permute.xlu0 %1589  ;;  %1677 = vrot.lane.b32.xlu2 %v1435_v46, %s2753_s21  ;;  %v1962_v45 = vld [vmem:[%s5633_s0 + $0x8] sm:$0xff]  ;;  %v2112_v46 = vperm.slane %v1999_v40, 0 }
 0x287   :  { %1903 = vst.msk [vmem:[%s5634_s1 + $0x11a] sm:$0x1] %vm264_vm0, %v1590_v48  ;;  %v2000_v48 = vrot.slane %v1962_v45, 1  ;;  %v2001_v49 = vrot.slane %v1962_v45, 2  ;;  %v2004_v58 = vrot.slane %v1962_v45, 5 }
 0x288   :  { %v1592_v51 = vpop.permute.xlu1 %1591  ;;  %v1612_v53 = vpop.permute.xlu2 %1611 }
 0x289   :  { %1904 = vst.msk [vmem:[%s5634_s1 + $0x11e] sm:$0x1] %vm264_vm0, %v1592_v51  ;;  %v2113_v51 = vperm.slane %v1962_v45, 0 }
 0x28a   :  { %1914 = vst.msk [vmem:[%s5634_s1 + $0x146] sm:$0x1] %vm264_vm0, %v1612_v53  ;;  %v2114_v53 = vperm.slane %v2000_v48, 0 }
 0x28c   :  { %1679 = vrot.lane.b32.xlu0 %v1436_v52, %s2753_s21 }
 0x28e   :  { %1681 = vrot.lane.b32.xlu1 %v1437_v54, %s2753_s21  ;;  %v1596_v57 = vpop.permute.xlu0 %1595  ;;  %1683 = vrot.lane.b32.xlu2 %v1438_v55, %s2753_s21  ;;  %v2115_v54 = vperm.slane %v2001_v49, 0  ;;  %v2002_v55 = vrot.slane %v1962_v45, 3 }
 0x28f   :  { %1906 = vst.msk [vmem:[%s5634_s1 + $0x126] sm:$0x1] %vm264_vm0, %v1596_v57  ;;  %v2003_v57 = vrot.slane %v1962_v45, 4 }
 0x290   :  { %v1598_v59 = vpop.permute.xlu1 %1597  ;;  %v1618_v62 = vpop.permute.xlu2 %1617 }
 0x291   :  { %1907 = vst.msk [vmem:[%s5634_s1 + $0x12a] sm:$0x1] %vm264_vm0, %v1598_v59 }
 0x292   :  { %1917 = vst.msk [vmem:[%s5634_s1 + $0x152] sm:$0x1] %vm264_vm0, %v1618_v62  ;;  %v2117_v62 = vperm.slane %v2003_v57, 0 }
 0x294   :  { %1685 = vrot.lane.b32.xlu0 %v1439_v60, %s2753_s21  ;;  %v2116_v60 = vperm.slane %v2002_v55, 0 }
 0x296   :  { %1687 = vrot.lane.b32.xlu1 %v1440_v63, %s2753_s21  ;;  %v1602_v2 = vpop.permute.xlu0 %1601  ;;  %1689 = vrot.lane.b32.xlu2 %v1441_v0, %s2753_s21  ;;  %v2118_v63 = vperm.slane %v2004_v58, 0  ;;  %v2005_v0 = vrot.slane %v1962_v45, 6 }
 0x297   :  { %1909 = vst.msk [vmem:[%s5634_s1 + $0x132] sm:$0x1] %vm264_vm0, %v1602_v2  ;;  %v2006_v2 = vrot.slane %v1962_v45, 7 }
 0x298   :  { %v1604_v5 = vpop.permute.xlu1 %1603  ;;  %v1624_v7 = vpop.permute.xlu2 %1623  ;;  %v2119_v4 = vperm.slane %v2005_v0, 0 }
 0x299   :  { %1910 = vst.msk [vmem:[%s5634_s1 + $0x136] sm:$0x1] %vm264_vm0, %v1604_v5  ;;  %v1963_v5 = vld [vmem:[%s5633_s0 + $0x10] sm:$0xff] }
 0x29a   :  { %1920 = vst.msk [vmem:[%s5634_s1 + $0x15e] sm:$0x1] %vm264_vm0, %v1624_v7  ;;  %v2120_v7 = vperm.slane %v2006_v2, 0  ;;  %v2009_v12 = vrot.slane %v1963_v5, 3  ;;  %v2012_v21 = vrot.slane %v1963_v5, 6 }
 0x29c   :  { %1691 = vrot.lane.b32.xlu0 %v1442_v6, %s2753_s21 }
 0x29e   :  { %1693 = vrot.lane.b32.xlu1 %v1443_v8, %s2753_s21  ;;  %v1608_v11 = vpop.permute.xlu0 %1607  ;;  %1695 = vrot.lane.b32.xlu2 %v1444_v9, %s2753_s21  ;;  %v2121_v8 = vperm.slane %v1963_v5, 0  ;;  %v2007_v9 = vrot.slane %v1963_v5, 1 }
 0x29f   :  { %1912 = vst.msk [vmem:[%s5634_s1 + $0x13e] sm:$0x1] %vm264_vm0, %v1608_v11  ;;  %v2008_v11 = vrot.slane %v1963_v5, 2 }
 0x2a0   :  { %v1610_v14 = vpop.permute.xlu1 %1609  ;;  %v1630_v16 = vpop.permute.xlu2 %1629 }
 0x2a1   :  { %1913 = vst.msk [vmem:[%s5634_s1 + $0x142] sm:$0x1] %vm264_vm0, %v1610_v14  ;;  %v2122_v14 = vperm.slane %v2007_v9, 0 }
 0x2a2   :  { %1923 = vst.msk [vmem:[%s5634_s1 + $0x16a] sm:$0x1] %vm264_vm0, %v1630_v16  ;;  %v2123_v16 = vperm.slane %v2008_v11, 0 }
 0x2a4   :  { %1697 = vrot.lane.b32.xlu0 %v1445_v15, %s2753_s21 }
 0x2a6   :  { %1699 = vrot.lane.b32.xlu1 %v1446_v17, %s2753_s21  ;;  %v1614_v20 = vpop.permute.xlu0 %1613  ;;  %1701 = vrot.lane.b32.xlu2 %v1447_v18, %s2753_s21  ;;  %v2124_v17 = vperm.slane %v2009_v12, 0  ;;  %v2010_v18 = vrot.slane %v1963_v5, 4 }
 0x2a7   :  { %1915 = vst.msk [vmem:[%s5634_s1 + $0x14a] sm:$0x1] %vm264_vm0, %v1614_v20  ;;  %v2011_v20 = vrot.slane %v1963_v5, 5 }
 0x2a8   :  { %v1616_v23 = vpop.permute.xlu1 %1615  ;;  %v1636_v25 = vpop.permute.xlu2 %1635 }
 0x2a9   :  { %1916 = vst.msk [vmem:[%s5634_s1 + $0x14e] sm:$0x1] %vm264_vm0, %v1616_v23  ;;  %v2125_v23 = vperm.slane %v2010_v18, 0 }
 0x2aa   :  { %1926 = vst.msk [vmem:[%s5634_s1 + $0x176] sm:$0x1] %vm264_vm0, %v1636_v25  ;;  %v2126_v25 = vperm.slane %v2011_v20, 0 }
 0x2ac   :  { %1703 = vrot.lane.b32.xlu0 %v1448_v24, %s2753_s21 }
 0x2ae   :  { %2233 = vrot.lane.b32.xlu1 %v2105_v26, %s2754_s29  ;;  %v1620_v29 = vpop.permute.xlu0 %1619  ;;  %2235 = vrot.lane.b32.xlu2 %v2106_v27, %s2754_s29  ;;  %v2127_v26 = vperm.slane %v2012_v21, 0  ;;  %v2013_v27 = vrot.slane %v1963_v5, 7 }
 0x2af   :  { %1918 = vst.msk [vmem:[%s5634_s1 + $0x156] sm:$0x1] %vm264_vm0, %v1620_v29  ;;  %v1964_v29 = vld [vmem:[%s5633_s0 + $0x18] sm:$0xff] }
 0x2b0   :  { %v1622_v32 = vpop.permute.xlu1 %1621  ;;  %v1642_v34 = vpop.permute.xlu2 %1641  ;;  %v2014_v30 = vrot.slane %v1964_v29, 1  ;;  %v2017_v39 = vrot.slane %v1964_v29, 4  ;;  %v2018_v45 = vrot.slane %v1964_v29, 5  ;;  %v2020_v48 = vrot.slane %v1964_v29, 7 }
 0x2b1   :  { %1919 = vst.msk [vmem:[%s5634_s1 + $0x15a] sm:$0x1] %vm264_vm0, %v1622_v32  ;;  %v2128_v32 = vperm.slane %v2013_v27, 0 }
 0x2b2   :  { %1929 = vst.msk [vmem:[%s5634_s1 + $0x182] sm:$0x1] %vm264_vm0, %v1642_v34  ;;  %v2129_v34 = vperm.slane %v1964_v29, 0 }
 0x2b4   :  { %2237 = vrot.lane.b32.xlu0 %v2107_v33, %s2754_s29 }
 0x2b6   :  { %2239 = vrot.lane.b32.xlu1 %v2108_v35, %s2754_s29  ;;  %v1626_v38 = vpop.permute.xlu0 %1625  ;;  %2241 = vrot.lane.b32.xlu2 %v2109_v36, %s2754_s29  ;;  %v2130_v35 = vperm.slane %v2014_v30, 0  ;;  %v2015_v36 = vrot.slane %v1964_v29, 2 }
 0x2b7   :  { %1921 = vst.msk [vmem:[%s5634_s1 + $0x162] sm:$0x1] %vm264_vm0, %v1626_v38  ;;  %v2016_v38 = vrot.slane %v1964_v29, 3 }
 0x2b8   :  { %v1628_v41 = vpop.permute.xlu1 %1627  ;;  %v1648_v43 = vpop.permute.xlu2 %1647 }
 0x2b9   :  { %1922 = vst.msk [vmem:[%s5634_s1 + $0x166] sm:$0x1] %vm264_vm0, %v1628_v41  ;;  %v2131_v41 = vperm.slane %v2015_v36, 0 }
 0x2ba   :  { %1932 = vst.msk [vmem:[%s5634_s1 + $0x18e] sm:$0x1] %vm264_vm0, %v1648_v43  ;;  %v2132_v43 = vperm.slane %v2016_v38, 0 }
 0x2bc   :  { %2243 = vrot.lane.b32.xlu0 %v2110_v42, %s2754_s29 }
 0x2be   :  { %2245 = vrot.lane.b32.xlu1 %v2111_v44, %s2754_s29  ;;  %v1632_v47 = vpop.permute.xlu0 %1631  ;;  %2247 = vrot.lane.b32.xlu2 %v2112_v46, %s2754_s29  ;;  %v2133_v44 = vperm.slane %v2017_v39, 0 }
 0x2bf   :  { %1924 = vst.msk [vmem:[%s5634_s1 + $0x16e] sm:$0x1] %vm264_vm0, %v1632_v47  ;;  %v2019_v47 = vrot.slane %v1964_v29, 6 }
 0x2c0   :  { %v1634_v50 = vpop.permute.xlu1 %1633  ;;  %v1654_v52 = vpop.permute.xlu2 %1653 }
 0x2c1   :  { %1925 = vst.msk [vmem:[%s5634_s1 + $0x172] sm:$0x1] %vm264_vm0, %v1634_v50  ;;  %v2134_v50 = vperm.slane %v2018_v45, 0 }
 0x2c2   :  { %1935 = vst.msk [vmem:[%s5634_s1 + $0x19a] sm:$0x1] %vm264_vm0, %v1654_v52  ;;  %v2135_v52 = vperm.slane %v2019_v47, 0 }
 0x2c4   :  { %2249 = vrot.lane.b32.xlu0 %v2113_v51, %s2754_s29 }
 0x2c6   :  { %2251 = vrot.lane.b32.xlu1 %v2114_v53, %s2754_s29  ;;  %v1638_v56 = vpop.permute.xlu0 %1637  ;;  %2253 = vrot.lane.b32.xlu2 %v2115_v54, %s2754_s29  ;;  %v1965_v53 = vld [vmem:[%s5633_s0 + $0x20] sm:$0xff]  ;;  %v2136_v54 = vperm.slane %v2020_v48, 0 }
 0x2c7   :  { %1927 = vst.msk [vmem:[%s5634_s1 + $0x17a] sm:$0x1] %vm264_vm0, %v1638_v56  ;;  %v2021_v56 = vrot.slane %v1965_v53, 1  ;;  %v2022_v57 = vrot.slane %v1965_v53, 2  ;;  %v2025_v2 = vrot.slane %v1965_v53, 5  ;;  %v2026_v9 = vrot.slane %v1965_v53, 6 }
 0x2c8   :  { %v1640_v59 = vpop.permute.xlu1 %1639  ;;  %v1660_v61 = vpop.permute.xlu2 %1659  ;;  %v2027_v11 = vrot.slane %v1965_v53, 7 }
 0x2c9   :  { %1928 = vst.msk [vmem:[%s5634_s1 + $0x17e] sm:$0x1] %vm264_vm0, %v1640_v59  ;;  %v2137_v59 = vperm.slane %v1965_v53, 0 }
 0x2ca   :  { %1938 = vst.msk [vmem:[%s5634_s1 + $0x1a6] sm:$0x1] %vm264_vm0, %v1660_v61  ;;  %v2138_v61 = vperm.slane %v2021_v56, 0 }
 0x2cc   :  { %2255 = vrot.lane.b32.xlu0 %v2116_v60, %s2754_s29 }
 0x2ce   :  { %2257 = vrot.lane.b32.xlu1 %v2117_v62, %s2754_s29  ;;  %v1644_v1 = vpop.permute.xlu0 %1643  ;;  %2259 = vrot.lane.b32.xlu2 %v2118_v63, %s2754_s29  ;;  %v2139_v62 = vperm.slane %v2022_v57, 0  ;;  %v2023_v63 = vrot.slane %v1965_v53, 3 }
 0x2cf   :  { %1930 = vst.msk [vmem:[%s5634_s1 + $0x186] sm:$0x1] %vm264_vm0, %v1644_v1  ;;  %v2024_v1 = vrot.slane %v1965_v53, 4 }
 0x2d0   :  { %v1646_v3 = vpop.permute.xlu1 %1645  ;;  %v1666_v6 = vpop.permute.xlu2 %1665 }
 0x2d1   :  { %1931 = vst.msk [vmem:[%s5634_s1 + $0x18a] sm:$0x1] %vm264_vm0, %v1646_v3 }
 0x2d2   :  { %1941 = vst.msk [vmem:[%s5634_s1 + $0x1b2] sm:$0x1] %vm264_vm0, %v1666_v6  ;;  %v2141_v6 = vperm.slane %v2024_v1, 0 }
 0x2d4   :  { %2261 = vrot.lane.b32.xlu0 %v2119_v4, %s2754_s29  ;;  %v2140_v4 = vperm.slane %v2023_v63, 0 }
 0x2d6   :  { %2263 = vrot.lane.b32.xlu1 %v2120_v7, %s2754_s29  ;;  %v1650_v10 = vpop.permute.xlu0 %1649  ;;  %2265 = vrot.lane.b32.xlu2 %v2121_v8, %s2754_s29  ;;  %v4178_v7 = vld [vmem:[%s5633_s0 + $0x30] sm:$0xff]  ;;  %v2142_v8 = vperm.slane %v2025_v2, 0  ;;  %v4342_v2 = vld [vmem:[%s5633_s0 + $0x40] sm:$0xff] }
 0x2d7   :  { %1933 = vst.msk [vmem:[%s5634_s1 + $0x192] sm:$0x1] %vm264_vm0, %v1650_v10  ;;  %v2036_v48 = vrot.slane %v4178_v7, 2 }
 0x2d8   :  { %v1652_v13 = vpop.permute.xlu1 %1651  ;;  %v1672_v15 = vpop.permute.xlu2 %1671  ;;  %313 = vst.msk [vmem:[%s5634_s1 + $0xc0] sm:$0x1] %vm264_vm0, %v4178_v7 }
 0x2d9   :  { %1934 = vst.msk [vmem:[%s5634_s1 + $0x196] sm:$0x1] %vm264_vm0, %v1652_v13  ;;  %v2143_v13 = vperm.slane %v2026_v9, 0 }
 0x2da   :  { %1944 = vst.msk [vmem:[%s5634_s1 + $0x1be] sm:$0x1] %vm264_vm0, %v1672_v15 }
 0x2db   :  { %329 = vst.msk [vmem:[%s5634_s1 + $0x100] sm:$0x1] %vm264_vm0, %v4342_v2 }
 0x2dc   :  { %2267 = vrot.lane.b32.xlu0 %v2122_v14, %s2754_s29  ;;  %v1966_v14 = vld [vmem:[%s5633_s0 + $0x28] sm:$0xff]  ;;  %315 = vst.msk [vmem:[%s5634_s1 + $0xc8] sm:$0x1] %vm264_vm0, %v2036_v48 }
 0x2dd   :  { %v2028_v18 = vrot.slane %v1966_v14, 1  ;;  %v2029_v20 = vrot.slane %v1966_v14, 2  ;;  %v2030_v21 = vrot.slane %v1966_v14, 3  ;;  %v2031_v27 = vrot.slane %v1966_v14, 4 }
 0x2de   :  { %2269 = vrot.lane.b32.xlu1 %v2123_v16, %s2754_s29  ;;  %v1656_v19 = vpop.permute.xlu0 %1655  ;;  %2271 = vrot.lane.b32.xlu2 %v2124_v17, %s2754_s29  ;;  %v2144_v16 = vperm.slane %v2027_v11, 0  ;;  %v2145_v17 = vperm.slane %v1966_v14, 0  ;;  %v2032_v29 = vrot.slane %v1966_v14, 5  ;;  %v2033_v30 = vrot.slane %v1966_v14, 6 }
 0x2df   :  { %1936 = vst.msk [vmem:[%s5634_s1 + $0x19e] sm:$0x1] %vm264_vm0, %v1656_v19  ;;  %v2034_v38 = vrot.slane %v1966_v14, 7 }
 0x2e0   :  { %v1658_v22 = vpop.permute.xlu1 %1657  ;;  %v1678_v24 = vpop.permute.xlu2 %1677  ;;  %v2151_v36 = vperm.slane %v2033_v30, 0  ;;  %v2051_v30 = vrot.slane %v4342_v2, 3 }
 0x2e1   :  { %1937 = vst.msk [vmem:[%s5634_s1 + $0x1a2] sm:$0x1] %vm264_vm0, %v1658_v22 }
 0x2e2   :  { %1947 = vst.msk [vmem:[%s5634_s1 + $0x1ca] sm:$0x1] %vm264_vm0, %v1678_v24 }
 0x2e3   :  { %332 = vst.msk [vmem:[%s5634_s1 + $0x10c] sm:$0x1] %vm264_vm0, %v2051_v30 }
 0x2e4   :  { %2273 = vrot.lane.b32.xlu0 %v2125_v23, %s2754_s29  ;;  %v2146_v23 = vperm.slane %v2028_v18, 0 }
 0x2e6   :  { %2275 = vrot.lane.b32.xlu1 %v2126_v25, %s2754_s29  ;;  %v1662_v28 = vpop.permute.xlu0 %1661  ;;  %2277 = vrot.lane.b32.xlu2 %v2127_v26, %s2754_s29  ;;  %v2147_v25 = vperm.slane %v2029_v20, 0  ;;  %v2148_v26 = vperm.slane %v2030_v21, 0 }
 0x2e7   :  { %1939 = vst.msk [vmem:[%s5634_s1 + $0x1aa] sm:$0x1] %vm264_vm0, %v1662_v28 }
 0x2e8   :  { %v1664_v31 = vpop.permute.xlu1 %1663  ;;  %v1684_v33 = vpop.permute.xlu2 %1683 }
 0x2e9   :  { %1940 = vst.msk [vmem:[%s5634_s1 + $0x1ae] sm:$0x1] %vm264_vm0, %v1664_v31 }
 0x2ea   :  { %1950 = vst.msk [vmem:[%s5634_s1 + $0x1d6] sm:$0x1] %vm264_vm0, %v1684_v33 }
 0x2ec   :  { %2279 = vrot.lane.b32.xlu0 %v2128_v32, %s2754_s29  ;;  %v2149_v32 = vperm.slane %v2031_v27, 0 }
 0x2ee   :  { %2281 = vrot.lane.b32.xlu1 %v2129_v34, %s2754_s29  ;;  %v1668_v37 = vpop.permute.xlu0 %1667  ;;  %2283 = vrot.lane.b32.xlu2 %v2130_v35, %s2754_s29  ;;  %v2035_v34 = vrot.slane %v4178_v7, 1  ;;  %v2150_v35 = vperm.slane %v2032_v29, 0 }
 0x2ef   :  { %1942 = vst.msk [vmem:[%s5634_s1 + $0x1b6] sm:$0x1] %vm264_vm0, %v1668_v37  ;;  %v4237_v37 = vld [vmem:[%s5633_s0 + $0x38] sm:$0xff] }
 0x2f0   :  { %v1670_v40 = vpop.permute.xlu1 %1669  ;;  %v1690_v42 = vpop.permute.xlu2 %1689  ;;  %314 = vst.msk [vmem:[%s5634_s1 + $0xc4] sm:$0x1] %vm264_vm0, %v2035_v34  ;;  %v2044_v45 = vrot.slane %v4237_v37, 3  ;;  %v2045_v47 = vrot.slane %v4237_v37, 4  ;;  %v2047_v56 = vrot.slane %v4237_v37, 6  ;;  %v2043_v1 = vrot.slane %v4237_v37, 2 }
 0x2f1   :  { %1943 = vst.msk [vmem:[%s5634_s1 + $0x1ba] sm:$0x1] %vm264_vm0, %v1670_v40  ;;  %v2042_v9 = vrot.slane %v4237_v37, 1  ;;  %v2161_v11 = vperm.slane %v4237_v37, 0 }
 0x2f2   :  { %1953 = vst.msk [vmem:[%s5634_s1 + $0x1e2] sm:$0x1] %vm264_vm0, %v1690_v42  ;;  %v2164_v20 = vperm.slane %v2044_v45, 0 }
 0x2f3   :  { %321 = vst.msk [vmem:[%s5634_s1 + $0xe0] sm:$0x1] %vm264_vm0, %v4237_v37  ;;  %v2162_v14 = vperm.slane %v2042_v9, 0 }
 0x2f4   :  { %2285 = vrot.lane.b32.xlu0 %v2131_v41, %s2754_s29  ;;  %v2152_v41 = vperm.slane %v2034_v38, 0  ;;  %324 = vst.msk [vmem:[%s5634_s1 + $0xec] sm:$0x1] %vm264_vm0, %v2044_v45 }
 0x2f5   :  { %325 = vst.msk [vmem:[%s5634_s1 + $0xf0] sm:$0x1] %vm264_vm0, %v2045_v47 }
 0x2f6   :  { %2287 = vrot.lane.b32.xlu1 %v2132_v43, %s2754_s29  ;;  %v1674_v46 = vpop.permute.xlu0 %1673  ;;  %2289 = vrot.lane.b32.xlu2 %v2133_v44, %s2754_s29  ;;  %v2038_v43 = vrot.slane %v4178_v7, 4  ;;  %v2153_v44 = vperm.slane %v4178_v7, 0  ;;  %327 = vst.msk [vmem:[%s5634_s1 + $0xf8] sm:$0x1] %vm264_vm0, %v2047_v56 }
 0x2f7   :  { %1945 = vst.msk [vmem:[%s5634_s1 + $0x1c2] sm:$0x1] %vm264_vm0, %v1674_v46  ;;  %v2154_v46 = vperm.slane %v2035_v34, 0 }
 0x2f8   :  { %v1676_v49 = vpop.permute.xlu1 %1675  ;;  %v1696_v51 = vpop.permute.xlu2 %1695  ;;  %317 = vst.msk [vmem:[%s5634_s1 + $0xd0] sm:$0x1] %vm264_vm0, %v2038_v43  ;;  %v2157_v57 = vperm.slane %v2038_v43, 0  ;;  %v2172_v43 = vperm.slane %v2051_v30, 0 }
 0x2f9   :  { %1946 = vst.msk [vmem:[%s5634_s1 + $0x1c6] sm:$0x1] %vm264_vm0, %v1676_v49 }
 0x2fa   :  { %1956 = vst.msk [vmem:[%s5634_s1 + $0x1ee] sm:$0x1] %vm264_vm0, %v1696_v51 }
 0x2fb   :  { %323 = vst.msk [vmem:[%s5634_s1 + $0xe8] sm:$0x1] %vm264_vm0, %v2043_v1 }
 0x2fc   :  { %2291 = vrot.lane.b32.xlu0 %v2134_v50, %s2754_s29  ;;  %v2037_v50 = vrot.slane %v4178_v7, 3  ;;  %322 = vst.msk [vmem:[%s5634_s1 + $0xe4] sm:$0x1] %vm264_vm0, %v2042_v9 }
 0x2fe   :  { %2293 = vrot.lane.b32.xlu1 %v2135_v52, %s2754_s29  ;;  %v1680_v55 = vpop.permute.xlu0 %1679  ;;  %2295 = vrot.lane.b32.xlu2 %v2136_v54, %s2754_s29  ;;  %v2155_v52 = vperm.slane %v2036_v48, 0  ;;  %v2041_v54 = vrot.slane %v4178_v7, 7  ;;  %316 = vst.msk [vmem:[%s5634_s1 + $0xcc] sm:$0x1] %vm264_vm0, %v2037_v50 }
 0x2ff   :  { %1948 = vst.msk [vmem:[%s5634_s1 + $0x1ce] sm:$0x1] %vm264_vm0, %v1680_v55  ;;  %v2156_v55 = vperm.slane %v2037_v50, 0 }
 0x300   :  { %v1682_v58 = vpop.permute.xlu1 %1681  ;;  %v1702_v60 = vpop.permute.xlu2 %1701  ;;  %320 = vst.msk [vmem:[%s5634_s1 + $0xdc] sm:$0x1] %vm264_vm0, %v2041_v54 }
 0x301   :  { %1949 = vst.msk [vmem:[%s5634_s1 + $0x1d2] sm:$0x1] %vm264_vm0, %v1682_v58  ;;  %v2048_v58 = vrot.slane %v4237_v37, 7 }
 0x302   :  { %1959 = vst.msk [vmem:[%s5634_s1 + $0x1fa] sm:$0x1] %vm264_vm0, %v1702_v60 }
 0x303   :  { %328 = vst.msk [vmem:[%s5634_s1 + $0xfc] sm:$0x1] %vm264_vm0, %v2048_v58 }
 0x304   :  { %2297 = vrot.lane.b32.xlu0 %v2137_v59, %s2754_s29  ;;  %v2039_v59 = vrot.slane %v4178_v7, 5 }
 0x306   :  { %2299 = vrot.lane.b32.xlu1 %v2138_v61, %s2754_s29  ;;  %v1686_v0 = vpop.permute.xlu0 %1685  ;;  %2301 = vrot.lane.b32.xlu2 %v2139_v62, %s2754_s29  ;;  %v2040_v61 = vrot.slane %v4178_v7, 6  ;;  %v2158_v63 = vperm.slane %v2039_v59, 0  ;;  %318 = vst.msk [vmem:[%s5634_s1 + $0xd4] sm:$0x1] %vm264_vm0, %v2039_v59 }
 0x307   :  { %1951 = vst.msk [vmem:[%s5634_s1 + $0x1da] sm:$0x1] %vm264_vm0, %v1686_v0 }
 0x308   :  { %v1688_v3 = vpop.permute.xlu1 %1687  ;;  %v2236_v5 = vpop.permute.xlu2 %2235  ;;  %319 = vst.msk [vmem:[%s5634_s1 + $0xd8] sm:$0x1] %vm264_vm0, %v2040_v61 }
 0x309   :  { %1952 = vst.msk [vmem:[%s5634_s1 + $0x1de] sm:$0x1] %vm264_vm0, %v1688_v3  ;;  %v2159_v3 = vperm.slane %v2040_v61, 0 }
 0x30a   :  { %2618 = vst.msk [vmem:[%s5634_s1 + $0x7] sm:$0x1] %vm264_vm0, %v2236_v5  ;;  %v2049_v5 = vrot.slane %v4342_v2, 1 }
 0x30c   :  { %2303 = vrot.lane.b32.xlu0 %v2140_v4, %s2754_s29  ;;  %v2160_v4 = vperm.slane %v2041_v54, 0  ;;  %330 = vst.msk [vmem:[%s5634_s1 + $0x104] sm:$0x1] %vm264_vm0, %v2049_v5  ;;  %v2170_v38 = vperm.slane %v2049_v5, 0 }
 0x30e   :  { %2305 = vrot.lane.b32.xlu1 %v2141_v6, %s2754_s29  ;;  %v1692_v10 = vpop.permute.xlu0 %1691  ;;  %2307 = vrot.lane.b32.xlu2 %v2142_v8, %s2754_s29  ;;  %v2050_v6 = vrot.slane %v4342_v2, 2 }
 0x30f   :  { %1954 = vst.msk [vmem:[%s5634_s1 + $0x1e6] sm:$0x1] %vm264_vm0, %v1692_v10 }
 0x310   :  { %v1694_v12 = vpop.permute.xlu1 %1693  ;;  %v2242_v15 = vpop.permute.xlu2 %2241  ;;  %331 = vst.msk [vmem:[%s5634_s1 + $0x108] sm:$0x1] %vm264_vm0, %v2050_v6 }
 0x311   :  { %1955 = vst.msk [vmem:[%s5634_s1 + $0x1ea] sm:$0x1] %vm264_vm0, %v1694_v12 }
 0x312   :  { %2621 = vst.msk [vmem:[%s5634_s1 + $0x13] sm:$0x1] %vm264_vm0, %v2242_v15  ;;  %v2052_v15 = vrot.slane %v4342_v2, 4 }
 0x314   :  { %2309 = vrot.lane.b32.xlu0 %v2143_v13, %s2754_s29  ;;  %v2046_v13 = vrot.slane %v4237_v37, 5  ;;  %333 = vst.msk [vmem:[%s5634_s1 + $0x110] sm:$0x1] %vm264_vm0, %v2052_v15 }
 0x316   :  { %2311 = vrot.lane.b32.xlu1 %v2144_v16, %s2754_s29  ;;  %v1698_v19 = vpop.permute.xlu0 %1697  ;;  %2313 = vrot.lane.b32.xlu2 %v2145_v17, %s2754_s29  ;;  %v2163_v16 = vperm.slane %v2043_v1, 0  ;;  %v2053_v17 = vrot.slane %v4342_v2, 5  ;;  %326 = vst.msk [vmem:[%s5634_s1 + $0xf4] sm:$0x1] %vm264_vm0, %v2046_v13 }
 0x317   :  { %1957 = vst.msk [vmem:[%s5634_s1 + $0x1f2] sm:$0x1] %vm264_vm0, %v1698_v19 }
 0x318   :  { %v1700_v22 = vpop.permute.xlu1 %1699  ;;  %v2248_v24 = vpop.permute.xlu2 %2247  ;;  %334 = vst.msk [vmem:[%s5634_s1 + $0x114] sm:$0x1] %vm264_vm0, %v2053_v17 }
 0x319   :  { %1958 = vst.msk [vmem:[%s5634_s1 + $0x1f6] sm:$0x1] %vm264_vm0, %v1700_v22  ;;  %v2165_v22 = vperm.slane %v2045_v47, 0  ;;  %v2173_v47 = vperm.slane %v2052_v15, 0 }
 0x31a   :  { %2624 = vst.msk [vmem:[%s5634_s1 + $0x1f] sm:$0x1] %vm264_vm0, %v2248_v24  ;;  %v2055_v24 = vrot.slane %v4342_v2, 7 }
 0x31c   :  { %2315 = vrot.lane.b32.xlu0 %v2146_v23, %s2754_s29  ;;  %v4433_v23 = vld [vmem:[%s5633_s0 + $0x48] sm:$0xff]  ;;  %336 = vst.msk [vmem:[%s5634_s1 + $0x11c] sm:$0x1] %vm264_vm0, %v2055_v24 }
 0x31d   :  { %337 = vst.msk [vmem:[%s5634_s1 + $0x120] sm:$0x1] %vm264_vm0, %v4433_v23  ;;  %v2058_v34 = vrot.slane %v4433_v23, 3 }
 0x31e   :  { %2317 = vrot.lane.b32.xlu1 %v2147_v25, %s2754_s29  ;;  %v1704_v28 = vpop.permute.xlu0 %1703  ;;  %2319 = vrot.lane.b32.xlu2 %v2148_v26, %s2754_s29  ;;  %v2166_v25 = vperm.slane %v2046_v13, 0 }
 0x31f   :  { %1960 = vst.msk [vmem:[%s5634_s1 + $0x1fe] sm:$0x1] %vm264_vm0, %v1704_v28  ;;  %v2167_v28 = vperm.slane %v2047_v56, 0 }
 0x320   :  { %v2234_v31 = vpop.permute.xlu1 %2233  ;;  %v2254_v33 = vpop.permute.xlu2 %2253  ;;  %340 = vst.msk [vmem:[%s5634_s1 + $0x12c] sm:$0x1] %vm264_vm0, %v2058_v34 }
 0x321   :  { %2617 = vst.msk [vmem:[%s5634_s1 + $0x3] sm:$0x1] %vm264_vm0, %v2234_v31  ;;  %v2168_v31 = vperm.slane %v2048_v58, 0  ;;  %v2176_v58 = vperm.slane %v2055_v24, 0 }
 0x322   :  { %2627 = vst.msk [vmem:[%s5634_s1 + $0x2b] sm:$0x1] %vm264_vm0, %v2254_v33  ;;  %v2169_v33 = vperm.slane %v4342_v2, 0 }
 0x324   :  { %2321 = vrot.lane.b32.xlu0 %v2149_v32, %s2754_s29  ;;  %v2057_v32 = vrot.slane %v4433_v23, 2 }
 0x326   :  { %2323 = vrot.lane.b32.xlu1 %v2150_v35, %s2754_s29  ;;  %v2238_v39 = vpop.permute.xlu0 %2237  ;;  %2325 = vrot.lane.b32.xlu2 %v2151_v36, %s2754_s29  ;;  %339 = vst.msk [vmem:[%s5634_s1 + $0x128] sm:$0x1] %vm264_vm0, %v2057_v32  ;;  %v2179_v5 = vperm.slane %v2057_v32, 0 }
 0x327   :  { %2619 = vst.msk [vmem:[%s5634_s1 + $0xb] sm:$0x1] %vm264_vm0, %v2238_v39 }
 0x328   :  { %v2240_v40 = vpop.permute.xlu1 %2239  ;;  %v2260_v42 = vpop.permute.xlu2 %2259 }
 0x329   :  { %2620 = vst.msk [vmem:[%s5634_s1 + $0xf] sm:$0x1] %vm264_vm0, %v2240_v40  ;;  %v2054_v40 = vrot.slane %v4342_v2, 6 }
 0x32a   :  { %2630 = vst.msk [vmem:[%s5634_s1 + $0x37] sm:$0x1] %vm264_vm0, %v2260_v42  ;;  %v2060_v42 = vrot.slane %v4433_v23, 5 }
 0x32b   :  { %335 = vst.msk [vmem:[%s5634_s1 + $0x118] sm:$0x1] %vm264_vm0, %v2054_v40  ;;  %v2175_v54 = vperm.slane %v2054_v40, 0 }
 0x32c   :  { %2327 = vrot.lane.b32.xlu0 %v2152_v41, %s2754_s29  ;;  %v2171_v41 = vperm.slane %v2050_v6, 0  ;;  %342 = vst.msk [vmem:[%s5634_s1 + $0x134] sm:$0x1] %vm264_vm0, %v2060_v42 }
 0x32e   :  { %2329 = vrot.lane.b32.xlu1 %v2153_v44, %s2754_s29  ;;  %v2244_v49 = vpop.permute.xlu0 %2243  ;;  %2331 = vrot.lane.b32.xlu2 %v2154_v46, %s2754_s29  ;;  %v2061_v44 = vrot.slane %v4433_v23, 6 }
 0x32f   :  { %2622 = vst.msk [vmem:[%s5634_s1 + $0x17] sm:$0x1] %vm264_vm0, %v2244_v49 }
 0x330   :  { %v2246_v51 = vpop.permute.xlu1 %2245  ;;  %v2266_v53 = vpop.permute.xlu2 %2265  ;;  %343 = vst.msk [vmem:[%s5634_s1 + $0x138] sm:$0x1] %vm264_vm0, %v2061_v44 }
 0x331   :  { %2623 = vst.msk [vmem:[%s5634_s1 + $0x1b] sm:$0x1] %vm264_vm0, %v2246_v51  ;;  %v2056_v51 = vrot.slane %v4433_v23, 1 }
 0x332   :  { %2633 = vst.msk [vmem:[%s5634_s1 + $0x43] sm:$0x1] %vm264_vm0, %v2266_v53  ;;  %v2174_v53 = vperm.slane %v2053_v17, 0 }
 0x333   :  { %338 = vst.msk [vmem:[%s5634_s1 + $0x124] sm:$0x1] %vm264_vm0, %v2056_v51  ;;  %v2178_v1 = vperm.slane %v2056_v51, 0 }
 0x334   :  { %2333 = vrot.lane.b32.xlu0 %v2155_v52, %s2754_s29  ;;  %v4541_v52 = vld [vmem:[%s5633_s0 + $0x50] sm:$0xff] }
 0x335   :  { %345 = vst.msk [vmem:[%s5634_s1 + $0x140] sm:$0x1] %vm264_vm0, %v4541_v52  ;;  %v2066_v2 = vrot.slane %v4541_v52, 4  ;;  %v2069_v13 = vrot.slane %v4541_v52, 7 }
 0x336   :  { %2335 = vrot.lane.b32.xlu1 %v2156_v55, %s2754_s29  ;;  %v2250_v60 = vpop.permute.xlu0 %2249  ;;  %2337 = vrot.lane.b32.xlu2 %v2157_v57, %s2754_s29  ;;  %v2063_v55 = vrot.slane %v4541_v52, 1 }
 0x337   :  { %2625 = vst.msk [vmem:[%s5634_s1 + $0x23] sm:$0x1] %vm264_vm0, %v2250_v60 }
 0x338   :  { %v2252_v62 = vpop.permute.xlu1 %2251  ;;  %v2272_v0 = vpop.permute.xlu2 %2271  ;;  %346 = vst.msk [vmem:[%s5634_s1 + $0x144] sm:$0x1] %vm264_vm0, %v2063_v55 }
 0x339   :  { %2626 = vst.msk [vmem:[%s5634_s1 + $0x27] sm:$0x1] %vm264_vm0, %v2252_v62  ;;  %v2059_v62 = vrot.slane %v4433_v23, 4 }
 0x33a   :  { %2636 = vst.msk [vmem:[%s5634_s1 + $0x4f] sm:$0x1] %vm264_vm0, %v2272_v0  ;;  %v2065_v0 = vrot.slane %v4541_v52, 3 }
 0x33b   :  { %341 = vst.msk [vmem:[%s5634_s1 + $0x130] sm:$0x1] %vm264_vm0, %v2059_v62 }
 0x33c   :  { %2339 = vrot.lane.b32.xlu0 %v2158_v63, %s2754_s29  ;;  %v2177_v63 = vperm.slane %v4433_v23, 0  ;;  %348 = vst.msk [vmem:[%s5634_s1 + $0x14c] sm:$0x1] %vm264_vm0, %v2065_v0 }
 0x33d   :  { %349 = vst.msk [vmem:[%s5634_s1 + $0x150] sm:$0x1] %vm264_vm0, %v2066_v2 }
 0x33e   :  { %2341 = vrot.lane.b32.xlu1 %v2159_v3, %s2754_s29  ;;  %v2256_v8 = vpop.permute.xlu0 %2255  ;;  %2343 = vrot.lane.b32.xlu2 %v2160_v4, %s2754_s29  ;;  %352 = vst.msk [vmem:[%s5634_s1 + $0x15c] sm:$0x1] %vm264_vm0, %v2069_v13 }
 0x33f   :  { %2628 = vst.msk [vmem:[%s5634_s1 + $0x2f] sm:$0x1] %vm264_vm0, %v2256_v8  ;;  %v2062_v8 = vrot.slane %v4433_v23, 7 }
 0x340   :  { %v2258_v10 = vpop.permute.xlu1 %2257  ;;  %v2278_v12 = vpop.permute.xlu2 %2277 }
 0x341   :  { %2629 = vst.msk [vmem:[%s5634_s1 + $0x33] sm:$0x1] %vm264_vm0, %v2258_v10  ;;  %v2180_v10 = vperm.slane %v2058_v34, 0 }
 0x342   :  { %2639 = vst.msk [vmem:[%s5634_s1 + $0x5b] sm:$0x1] %vm264_vm0, %v2278_v12  ;;  %v2181_v12 = vperm.slane %v2059_v62, 0 }
 0x343   :  { %344 = vst.msk [vmem:[%s5634_s1 + $0x13c] sm:$0x1] %vm264_vm0, %v2062_v8 }
 0x344   :  { %2345 = vrot.lane.b32.xlu0 %v2161_v11, %s2754_s29  ;;  %v2068_v11 = vrot.slane %v4541_v52, 6 }
 0x346   :  { %2347 = vrot.lane.b32.xlu1 %v2162_v14, %s2754_s29  ;;  %v2262_v18 = vpop.permute.xlu0 %2261  ;;  %2349 = vrot.lane.b32.xlu2 %v2163_v16, %s2754_s29  ;;  %351 = vst.msk [vmem:[%s5634_s1 + $0x158] sm:$0x1] %vm264_vm0, %v2068_v11  ;;  %v2182_v16 = vperm.slane %v2060_v42, 0 }
 0x347   :  { %2631 = vst.msk [vmem:[%s5634_s1 + $0x3b] sm:$0x1] %vm264_vm0, %v2262_v18  ;;  %v2064_v18 = vrot.slane %v4541_v52, 2 }
 0x348   :  { %v2264_v19 = vpop.permute.xlu1 %2263  ;;  %v2284_v21 = vpop.permute.xlu2 %2283 }
 0x349   :  { %2632 = vst.msk [vmem:[%s5634_s1 + $0x3f] sm:$0x1] %vm264_vm0, %v2264_v19  ;;  %v4657_v19 = vld [vmem:[%s5633_s0 + $0x58] sm:$0xff] }
 0x34a   :  { %2642 = vst.msk [vmem:[%s5634_s1 + $0x67] sm:$0x1] %vm264_vm0, %v2284_v21  ;;  %v2184_v21 = vperm.slane %v2062_v8, 0  ;;  %v2071_v24 = vrot.slane %v4657_v19, 2  ;;  %v2073_v30 = vrot.slane %v4657_v19, 4  ;;  %v2074_v32 = vrot.slane %v4657_v19, 5 }
 0x34b   :  { %347 = vst.msk [vmem:[%s5634_s1 + $0x148] sm:$0x1] %vm264_vm0, %v2064_v18  ;;  %v2076_v40 = vrot.slane %v4657_v19, 7  ;;  %v2193_v51 = vperm.slane %v4657_v19, 0 }
 0x34c   :  { %2351 = vrot.lane.b32.xlu0 %v2164_v20, %s2754_s29  ;;  %v2183_v20 = vperm.slane %v2061_v44, 0  ;;  %353 = vst.msk [vmem:[%s5634_s1 + $0x160] sm:$0x1] %vm264_vm0, %v4657_v19  ;;  %v2191_v44 = vperm.slane %v2068_v11, 0 }
 0x34d   :  { %355 = vst.msk [vmem:[%s5634_s1 + $0x168] sm:$0x1] %vm264_vm0, %v2071_v24 }
 0x34e   :  { %2353 = vrot.lane.b32.xlu1 %v2165_v22, %s2754_s29  ;;  %v2268_v26 = vpop.permute.xlu0 %2267  ;;  %2355 = vrot.lane.b32.xlu2 %v2166_v25, %s2754_s29  ;;  %v2070_v22 = vrot.slane %v4657_v19, 1  ;;  %357 = vst.msk [vmem:[%s5634_s1 + $0x170] sm:$0x1] %vm264_vm0, %v2073_v30 }
 0x34f   :  { %2634 = vst.msk [vmem:[%s5634_s1 + $0x47] sm:$0x1] %vm264_vm0, %v2268_v26  ;;  %v2185_v26 = vperm.slane %v4541_v52, 0 }
 0x350   :  { %v2270_v27 = vpop.permute.xlu1 %2269  ;;  %v2290_v29 = vpop.permute.xlu2 %2289  ;;  %354 = vst.msk [vmem:[%s5634_s1 + $0x164] sm:$0x1] %vm264_vm0, %v2070_v22 }
 0x351   :  { %2635 = vst.msk [vmem:[%s5634_s1 + $0x4b] sm:$0x1] %vm264_vm0, %v2270_v27 }
 0x352   :  { %2645 = vst.msk [vmem:[%s5634_s1 + $0x73] sm:$0x1] %vm264_vm0, %v2290_v29  ;;  %v2186_v29 = vperm.slane %v2063_v55, 0  ;;  %v2194_v55 = vperm.slane %v2070_v22, 0 }
 0x353   :  { %358 = vst.msk [vmem:[%s5634_s1 + $0x174] sm:$0x1] %vm264_vm0, %v2074_v32 }
 0x354   :  { %2357 = vrot.lane.b32.xlu0 %v2167_v28, %s2754_s29  ;;  %v2067_v28 = vrot.slane %v4541_v52, 5  ;;  %360 = vst.msk [vmem:[%s5634_s1 + $0x17c] sm:$0x1] %vm264_vm0, %v2076_v40 }
 0x356   :  { %2359 = vrot.lane.b32.xlu1 %v2168_v31, %s2754_s29  ;;  %v2274_v35 = vpop.permute.xlu0 %2273  ;;  %2361 = vrot.lane.b32.xlu2 %v2169_v33, %s2754_s29  ;;  %v2187_v31 = vperm.slane %v2064_v18, 0  ;;  %350 = vst.msk [vmem:[%s5634_s1 + $0x154] sm:$0x1] %vm264_vm0, %v2067_v28 }
 0x357   :  { %2637 = vst.msk [vmem:[%s5634_s1 + $0x53] sm:$0x1] %vm264_vm0, %v2274_v35  ;;  %v2188_v35 = vperm.slane %v2065_v0, 0 }
 0x358   :  { %v2276_v36 = vpop.permute.xlu1 %2275  ;;  %v2296_v39 = vpop.permute.xlu2 %2295 }
 0x359   :  { %2638 = vst.msk [vmem:[%s5634_s1 + $0x57] sm:$0x1] %vm264_vm0, %v2276_v36 }
 0x35a   :  { %2648 = vst.msk [vmem:[%s5634_s1 + $0x7f] sm:$0x1] %vm264_vm0, %v2296_v39  ;;  %v4747_v39 = vld [vmem:[%s5633_s0 + $0x60] sm:$0xff] }
 0x35b   :  { %361 = vst.msk [vmem:[%s5634_s1 + $0x180] sm:$0x1] %vm264_vm0, %v4747_v39 }
 0x35c   :  { %2363 = vrot.lane.b32.xlu0 %v2170_v38, %s2754_s29  ;;  %v2189_v38 = vperm.slane %v2066_v2, 0  ;;  %v2197_v2 = vperm.slane %v2073_v30, 0 }
 0x35e   :  { %2365 = vrot.lane.b32.xlu1 %v2171_v41, %s2754_s29  ;;  %v2280_v45 = vpop.permute.xlu0 %2279  ;;  %2367 = vrot.lane.b32.xlu2 %v2172_v43, %s2754_s29  ;;  %v2190_v41 = vperm.slane %v2067_v28, 0 }
 0x35f   :  { %2640 = vst.msk [vmem:[%s5634_s1 + $0x5f] sm:$0x1] %vm264_vm0, %v2280_v45 }
 0x360   :  { %v2282_v46 = vpop.permute.xlu1 %2281  ;;  %v2302_v49 = vpop.permute.xlu2 %2301 }
 0x361   :  { %2641 = vst.msk [vmem:[%s5634_s1 + $0x63] sm:$0x1] %vm264_vm0, %v2282_v46  ;;  %v2072_v46 = vrot.slane %v4657_v19, 3 }
 0x362   :  { %2651 = vst.msk [vmem:[%s5634_s1 + $0x8b] sm:$0x1] %vm264_vm0, %v2302_v49  ;;  %v2078_v49 = vrot.slane %v4747_v39, 2 }
 0x363   :  { %356 = vst.msk [vmem:[%s5634_s1 + $0x16c] sm:$0x1] %vm264_vm0, %v2072_v46  ;;  %v2196_v62 = vperm.slane %v2072_v46, 0 }
 0x364   :  { %2369 = vrot.lane.b32.xlu0 %v2173_v47, %s2754_s29  ;;  %v2192_v47 = vperm.slane %v2069_v13, 0  ;;  %363 = vst.msk [vmem:[%s5634_s1 + $0x188] sm:$0x1] %vm264_vm0, %v2078_v49  ;;  %v2200_v13 = vperm.slane %v2076_v40, 0  ;;  %v2203_v22 = vperm.slane %v2078_v49, 0 }
 0x366   :  { %2371 = vrot.lane.b32.xlu1 %v2174_v53, %s2754_s29  ;;  %v2286_v56 = vpop.permute.xlu0 %2285  ;;  %2373 = vrot.lane.b32.xlu2 %v2175_v54, %s2754_s29  ;;  %v2079_v53 = vrot.slane %v4747_v39, 3 }
 0x367   :  { %2643 = vst.msk [vmem:[%s5634_s1 + $0x6b] sm:$0x1] %vm264_vm0, %v2286_v56 }
 0x368   :  { %v2288_v57 = vpop.permute.xlu1 %2287  ;;  %v2308_v60 = vpop.permute.xlu2 %2307  ;;  %364 = vst.msk [vmem:[%s5634_s1 + $0x18c] sm:$0x1] %vm264_vm0, %v2079_v53 }
 0x369   :  { %2644 = vst.msk [vmem:[%s5634_s1 + $0x6f] sm:$0x1] %vm264_vm0, %v2288_v57  ;;  %v2075_v57 = vrot.slane %v4657_v19, 6 }
 0x36a   :  { %2654 = vst.msk [vmem:[%s5634_s1 + $0x97] sm:$0x1] %vm264_vm0, %v2308_v60  ;;  %v2081_v60 = vrot.slane %v4747_v39, 5 }
 0x36b   :  { %359 = vst.msk [vmem:[%s5634_s1 + $0x178] sm:$0x1] %vm264_vm0, %v2075_v57  ;;  %v2199_v8 = vperm.slane %v2075_v57, 0 }
 0x36c   :  { %2375 = vrot.lane.b32.xlu0 %v2176_v58, %s2754_s29  ;;  %v2195_v58 = vperm.slane %v2071_v24, 0  ;;  %366 = vst.msk [vmem:[%s5634_s1 + $0x194] sm:$0x1] %vm264_vm0, %v2081_v60 }
 0x36e   :  { %2377 = vrot.lane.b32.xlu1 %v2177_v63, %s2754_s29  ;;  %v2292_v3 = vpop.permute.xlu0 %2291  ;;  %2379 = vrot.lane.b32.xlu2 %v2178_v1, %s2754_s29  ;;  %v2082_v63 = vrot.slane %v4747_v39, 6 }
 0x36f   :  { %2646 = vst.msk [vmem:[%s5634_s1 + $0x77] sm:$0x1] %vm264_vm0, %v2292_v3 }
 0x370   :  { %v2294_v4 = vpop.permute.xlu1 %2293  ;;  %v2314_v6 = vpop.permute.xlu2 %2313  ;;  %367 = vst.msk [vmem:[%s5634_s1 + $0x198] sm:$0x1] %vm264_vm0, %v2082_v63 }
 0x371   :  { %2647 = vst.msk [vmem:[%s5634_s1 + $0x7b] sm:$0x1] %vm264_vm0, %v2294_v4  ;;  %v2077_v4 = vrot.slane %v4747_v39, 1 }
 0x372   :  { %2657 = vst.msk [vmem:[%s5634_s1 + $0xa3] sm:$0x1] %vm264_vm0, %v2314_v6  ;;  %v2198_v6 = vperm.slane %v2074_v32, 0 }
 0x373   :  { %362 = vst.msk [vmem:[%s5634_s1 + $0x184] sm:$0x1] %vm264_vm0, %v2077_v4  ;;  %v2202_v18 = vperm.slane %v2077_v4, 0 }
 0x374   :  { %2381 = vrot.lane.b32.xlu0 %v2179_v5, %s2754_s29  ;;  %v4855_v5 = vld [vmem:[%s5633_s0 + $0x68] sm:$0xff] }
 0x375   :  { %369 = vst.msk [vmem:[%s5634_s1 + $0x1a0] sm:$0x1] %vm264_vm0, %v4855_v5  ;;  %v2087_v19 = vrot.slane %v4855_v5, 4  ;;  %v2090_v28 = vrot.slane %v4855_v5, 7 }
 0x376   :  { %2383 = vrot.lane.b32.xlu1 %v2180_v10, %s2754_s29  ;;  %v2298_v14 = vpop.permute.xlu0 %2297  ;;  %2385 = vrot.lane.b32.xlu2 %v2181_v12, %s2754_s29  ;;  %v2084_v10 = vrot.slane %v4855_v5, 1 }
 0x377   :  { %2649 = vst.msk [vmem:[%s5634_s1 + $0x83] sm:$0x1] %vm264_vm0, %v2298_v14 }
 0x378   :  { %v2300_v15 = vpop.permute.xlu1 %2299  ;;  %v2320_v17 = vpop.permute.xlu2 %2319  ;;  %370 = vst.msk [vmem:[%s5634_s1 + $0x1a4] sm:$0x1] %vm264_vm0, %v2084_v10 }
 0x379   :  { %2650 = vst.msk [vmem:[%s5634_s1 + $0x87] sm:$0x1] %vm264_vm0, %v2300_v15  ;;  %v2080_v15 = vrot.slane %v4747_v39, 4 }
 0x37a   :  { %2660 = vst.msk [vmem:[%s5634_s1 + $0xaf] sm:$0x1] %vm264_vm0, %v2320_v17  ;;  %v2086_v17 = vrot.slane %v4855_v5, 3 }
 0x37b   :  { %365 = vst.msk [vmem:[%s5634_s1 + $0x190] sm:$0x1] %vm264_vm0, %v2080_v15 }
 0x37c   :  { %2387 = vrot.lane.b32.xlu0 %v2182_v16, %s2754_s29  ;;  %v2201_v16 = vperm.slane %v4747_v39, 0  ;;  %372 = vst.msk [vmem:[%s5634_s1 + $0x1ac] sm:$0x1] %vm264_vm0, %v2086_v17 }
 0x37d   :  { %373 = vst.msk [vmem:[%s5634_s1 + $0x1b0] sm:$0x1] %vm264_vm0, %v2087_v19 }
 0x37e   :  { %2389 = vrot.lane.b32.xlu1 %v2183_v20, %s2754_s29  ;;  %v2304_v23 = vpop.permute.xlu0 %2303  ;;  %2391 = vrot.lane.b32.xlu2 %v2184_v21, %s2754_s29  ;;  %376 = vst.msk [vmem:[%s5634_s1 + $0x1bc] sm:$0x1] %vm264_vm0, %v2090_v28 }
 0x37f   :  { %2652 = vst.msk [vmem:[%s5634_s1 + $0x8f] sm:$0x1] %vm264_vm0, %v2304_v23  ;;  %v2083_v23 = vrot.slane %v4747_v39, 7 }
 0x380   :  { %v2306_v25 = vpop.permute.xlu1 %2305  ;;  %v2326_v27 = vpop.permute.xlu2 %2325 }
 0x381   :  { %2653 = vst.msk [vmem:[%s5634_s1 + $0x93] sm:$0x1] %vm264_vm0, %v2306_v25  ;;  %v2204_v25 = vperm.slane %v2079_v53, 0 }
 0x382   :  { %2663 = vst.msk [vmem:[%s5634_s1 + $0xbb] sm:$0x1] %vm264_vm0, %v2326_v27  ;;  %v2205_v27 = vperm.slane %v2080_v15, 0 }
 0x383   :  { %368 = vst.msk [vmem:[%s5634_s1 + $0x19c] sm:$0x1] %vm264_vm0, %v2083_v23 }
 0x384   :  { %2393 = vrot.lane.b32.xlu0 %v2185_v26, %s2754_s29  ;;  %v2089_v26 = vrot.slane %v4855_v5, 6 }
 0x386   :  { %2395 = vrot.lane.b32.xlu1 %v2186_v29, %s2754_s29  ;;  %v2310_v33 = vpop.permute.xlu0 %2309  ;;  %2397 = vrot.lane.b32.xlu2 %v2187_v31, %s2754_s29  ;;  %375 = vst.msk [vmem:[%s5634_s1 + $0x1b8] sm:$0x1] %vm264_vm0, %v2089_v26  ;;  %v2206_v31 = vperm.slane %v2081_v60, 0 }
 0x387   :  { %2655 = vst.msk [vmem:[%s5634_s1 + $0x9b] sm:$0x1] %vm264_vm0, %v2310_v33  ;;  %v2085_v33 = vrot.slane %v4855_v5, 2 }
 0x388   :  { %v2312_v34 = vpop.permute.xlu1 %2311  ;;  %v2332_v36 = vpop.permute.xlu2 %2331 }
 0x389   :  { %2656 = vst.msk [vmem:[%s5634_s1 + $0x9f] sm:$0x1] %vm264_vm0, %v2312_v34  ;;  %v4971_v34 = vld [vmem:[%s5633_s0 + $0x70] sm:$0xff] }
 0x38a   :  { %2666 = vst.msk [vmem:[%s5634_s1 + $0xc7] sm:$0x1] %vm264_vm0, %v2332_v36  ;;  %v2208_v36 = vperm.slane %v2083_v23, 0  ;;  %v2092_v40 = vrot.slane %v4971_v34, 2  ;;  %v2094_v46 = vrot.slane %v4971_v34, 4  ;;  %v2095_v49 = vrot.slane %v4971_v34, 5 }
 0x38b   :  { %371 = vst.msk [vmem:[%s5634_s1 + $0x1a8] sm:$0x1] %vm264_vm0, %v2085_v33  ;;  %v2097_v57 = vrot.slane %v4971_v34, 7  ;;  %v2217_v4 = vperm.slane %v4971_v34, 0 }
 0x38c   :  { %2399 = vrot.lane.b32.xlu0 %v2188_v35, %s2754_s29  ;;  %v2207_v35 = vperm.slane %v2082_v63, 0  ;;  %377 = vst.msk [vmem:[%s5634_s1 + $0x1c0] sm:$0x1] %vm264_vm0, %v4971_v34  ;;  %v2215_v63 = vperm.slane %v2089_v26, 0 }
 0x38d   :  { %379 = vst.msk [vmem:[%s5634_s1 + $0x1c8] sm:$0x1] %vm264_vm0, %v2092_v40  ;;  %v2224_v26 = vperm.slane %v2097_v57, 0 }
 0x38e   :  { %2401 = vrot.lane.b32.xlu1 %v2189_v38, %s2754_s29  ;;  %v2316_v42 = vpop.permute.xlu0 %2315  ;;  %2403 = vrot.lane.b32.xlu2 %v2190_v41, %s2754_s29  ;;  %v2091_v38 = vrot.slane %v4971_v34, 1  ;;  %381 = vst.msk [vmem:[%s5634_s1 + $0x1d0] sm:$0x1] %vm264_vm0, %v2094_v46 }
 0x38f   :  { %2658 = vst.msk [vmem:[%s5634_s1 + $0xa7] sm:$0x1] %vm264_vm0, %v2316_v42  ;;  %v2209_v42 = vperm.slane %v4855_v5, 0 }
 0x390   :  { %v2318_v43 = vpop.permute.xlu1 %2317  ;;  %v2338_v45 = vpop.permute.xlu2 %2337  ;;  %378 = vst.msk [vmem:[%s5634_s1 + $0x1c4] sm:$0x1] %vm264_vm0, %v2091_v38 }
 0x391   :  { %2659 = vst.msk [vmem:[%s5634_s1 + $0xab] sm:$0x1] %vm264_vm0, %v2318_v43 }
 0x392   :  { %2669 = vst.msk [vmem:[%s5634_s1 + $0xd3] sm:$0x1] %vm264_vm0, %v2338_v45  ;;  %v2210_v45 = vperm.slane %v2084_v10, 0  ;;  %v2218_v10 = vperm.slane %v2091_v38, 0 }
 0x393   :  { %382 = vst.msk [vmem:[%s5634_s1 + $0x1d4] sm:$0x1] %vm264_vm0, %v2095_v49 }
 0x394   :  { %2405 = vrot.lane.b32.xlu0 %v2191_v44, %s2754_s29  ;;  %v2088_v44 = vrot.slane %v4855_v5, 5  ;;  %384 = vst.msk [vmem:[%s5634_s1 + $0x1dc] sm:$0x1] %vm264_vm0, %v2097_v57 }
 0x396   :  { %2407 = vrot.lane.b32.xlu1 %v2192_v47, %s2754_s29  ;;  %v2322_v52 = vpop.permute.xlu0 %2321  ;;  %2409 = vrot.lane.b32.xlu2 %v2193_v51, %s2754_s29  ;;  %v2211_v47 = vperm.slane %v2085_v33, 0  ;;  %374 = vst.msk [vmem:[%s5634_s1 + $0x1b4] sm:$0x1] %vm264_vm0, %v2088_v44 }
 0x397   :  { %2661 = vst.msk [vmem:[%s5634_s1 + $0xb3] sm:$0x1] %vm264_vm0, %v2322_v52  ;;  %v2212_v52 = vperm.slane %v2086_v17, 0 }
 0x398   :  { %v2324_v54 = vpop.permute.xlu1 %2323  ;;  %v2344_v56 = vpop.permute.xlu2 %2343 }
 0x399   :  { %2662 = vst.msk [vmem:[%s5634_s1 + $0xb7] sm:$0x1] %vm264_vm0, %v2324_v54 }
 0x39a   :  { %2672 = vst.msk [vmem:[%s5634_s1 + $0xdf] sm:$0x1] %vm264_vm0, %v2344_v56  ;;  %v5061_v56 = vld [vmem:[%s5633_s0 + $0x78] sm:$0xff] }
 0x39b   :  { %385 = vst.msk [vmem:[%s5634_s1 + $0x1e0] sm:$0x1] %vm264_vm0, %v5061_v56 }
 0x39c   :  { %2411 = vrot.lane.b32.xlu0 %v2194_v55, %s2754_s29  ;;  %v2213_v55 = vperm.slane %v2087_v19, 0  ;;  %v2221_v19 = vperm.slane %v2094_v46, 0 }
 0x39e   :  { %2413 = vrot.lane.b32.xlu1 %v2195_v58, %s2754_s29  ;;  %v2328_v0 = vpop.permute.xlu0 %2327  ;;  %2415 = vrot.lane.b32.xlu2 %v2196_v62, %s2754_s29  ;;  %v2214_v58 = vperm.slane %v2088_v44, 0 }
 0x39f   :  { %2664 = vst.msk [vmem:[%s5634_s1 + $0xbf] sm:$0x1] %vm264_vm0, %v2328_v0 }
 0x3a0   :  { %v2330_v1 = vpop.permute.xlu1 %2329  ;;  %v2350_v3 = vpop.permute.xlu2 %2349 }
 0x3a1   :  { %2665 = vst.msk [vmem:[%s5634_s1 + $0xc3] sm:$0x1] %vm264_vm0, %v2330_v1  ;;  %v2093_v1 = vrot.slane %v4971_v34, 3 }
 0x3a2   :  { %2675 = vst.msk [vmem:[%s5634_s1 + $0xeb] sm:$0x1] %vm264_vm0, %v2350_v3  ;;  %v2099_v3 = vrot.slane %v5061_v56, 2 }
 0x3a3   :  { %380 = vst.msk [vmem:[%s5634_s1 + $0x1cc] sm:$0x1] %vm264_vm0, %v2093_v1  ;;  %v2220_v15 = vperm.slane %v2093_v1, 0 }
 0x3a4   :  { %2417 = vrot.lane.b32.xlu0 %v2197_v2, %s2754_s29  ;;  %v2216_v2 = vperm.slane %v2090_v28, 0  ;;  %387 = vst.msk [vmem:[%s5634_s1 + $0x1e8] sm:$0x1] %vm264_vm0, %v2099_v3  ;;  %v2101_v28 = vrot.slane %v5061_v56, 4  ;;  %v2227_v33 = vperm.slane %v2099_v3, 0 }
 0x3a6   :  { %2419 = vrot.lane.b32.xlu1 %v2198_v6, %s2754_s29  ;;  %v2334_v11 = vpop.permute.xlu0 %2333  ;;  %2421 = vrot.lane.b32.xlu2 %v2199_v8, %s2754_s29  ;;  %v2100_v6 = vrot.slane %v5061_v56, 3  ;;  %389 = vst.msk [vmem:[%s5634_s1 + $0x1f0] sm:$0x1] %vm264_vm0, %v2101_v28  ;;  %v2229_v38 = vperm.slane %v2101_v28, 0 }
 0x3a7   :  { %2667 = vst.msk [vmem:[%s5634_s1 + $0xcb] sm:$0x1] %vm264_vm0, %v2334_v11 }
 0x3a8   :  { %v2336_v12 = vpop.permute.xlu1 %2335  ;;  %v2356_v14 = vpop.permute.xlu2 %2355  ;;  %388 = vst.msk [vmem:[%s5634_s1 + $0x1ec] sm:$0x1] %vm264_vm0, %v2100_v6 }
 0x3a9   :  { %2668 = vst.msk [vmem:[%s5634_s1 + $0xcf] sm:$0x1] %vm264_vm0, %v2336_v12  ;;  %v2096_v12 = vrot.slane %v4971_v34, 6 }
 0x3aa   :  { %2678 = vst.msk [vmem:[%s5634_s1 + $0xf7] sm:$0x1] %vm264_vm0, %v2356_v14  ;;  %v2102_v14 = vrot.slane %v5061_v56, 5 }
 0x3ab   :  { %383 = vst.msk [vmem:[%s5634_s1 + $0x1d8] sm:$0x1] %vm264_vm0, %v2096_v12 }
 0x3ac   :  { %2423 = vrot.lane.b32.xlu0 %v2200_v13, %s2754_s29  ;;  %v2219_v13 = vperm.slane %v2092_v40, 0  ;;  %390 = vst.msk [vmem:[%s5634_s1 + $0x1f4] sm:$0x1] %vm264_vm0, %v2102_v14 }
 0x3ae   :  { %2425 = vrot.lane.b32.xlu1 %v2201_v16, %s2754_s29  ;;  %v2340_v20 = vpop.permute.xlu0 %2339  ;;  %2427 = vrot.lane.b32.xlu2 %v2202_v18, %s2754_s29  ;;  %v2103_v16 = vrot.slane %v5061_v56, 6 }
 0x3af   :  { %2670 = vst.msk [vmem:[%s5634_s1 + $0xd7] sm:$0x1] %vm264_vm0, %v2340_v20 }
 0x3b0   :  { %v2342_v21 = vpop.permute.xlu1 %2341  ;;  %v2362_v24 = vpop.permute.xlu2 %2361  ;;  %391 = vst.msk [vmem:[%s5634_s1 + $0x1f8] sm:$0x1] %vm264_vm0, %v2103_v16 }
 0x3b1   :  { %2671 = vst.msk [vmem:[%s5634_s1 + $0xdb] sm:$0x1] %vm264_vm0, %v2342_v21  ;;  %v2098_v21 = vrot.slane %v5061_v56, 1 }
 0x3b2   :  { %2681 = vst.msk [vmem:[%s5634_s1 + $0x103] sm:$0x1] %vm264_vm0, %v2362_v24  ;;  %v2223_v24 = vperm.slane %v2096_v12, 0 }
 0x3b3   :  { %386 = vst.msk [vmem:[%s5634_s1 + $0x1e4] sm:$0x1] %vm264_vm0, %v2098_v21 }
 0x3b4   :  { %2429 = vrot.lane.b32.xlu0 %v2203_v22, %s2754_s29  ;;  %v2222_v22 = vperm.slane %v2095_v49, 0 }
 0x3b6   :  { %2431 = vrot.lane.b32.xlu1 %v2204_v25, %s2754_s29  ;;  %v2346_v29 = vpop.permute.xlu0 %2345  ;;  %2433 = vrot.lane.b32.xlu2 %v2205_v27, %s2754_s29 }
 0x3b7   :  { %2673 = vst.msk [vmem:[%s5634_s1 + $0xe3] sm:$0x1] %vm264_vm0, %v2346_v29  ;;  %v2225_v29 = vperm.slane %v5061_v56, 0 }
 0x3b8   :  { %v2348_v30 = vpop.permute.xlu1 %2347  ;;  %v2368_v32 = vpop.permute.xlu2 %2367 }
 0x3b9   :  { %2674 = vst.msk [vmem:[%s5634_s1 + $0xe7] sm:$0x1] %vm264_vm0, %v2348_v30  ;;  %v2226_v30 = vperm.slane %v2098_v21, 0 }
 0x3ba   :  { %2684 = vst.msk [vmem:[%s5634_s1 + $0x10f] sm:$0x1] %vm264_vm0, %v2368_v32 }
 0x3bc   :  { %2435 = vrot.lane.b32.xlu0 %v2206_v31, %s2754_s29 }
 0x3be   :  { %2437 = vrot.lane.b32.xlu1 %v2207_v35, %s2754_s29  ;;  %v2352_v39 = vpop.permute.xlu0 %2351  ;;  %2439 = vrot.lane.b32.xlu2 %v2208_v36, %s2754_s29  ;;  %v2104_v35 = vrot.slane %v5061_v56, 7  ;;  %v2228_v36 = vperm.slane %v2100_v6, 0 }
 0x3bf   :  { %2676 = vst.msk [vmem:[%s5634_s1 + $0xef] sm:$0x1] %vm264_vm0, %v2352_v39 }
 0x3c0   :  { %v2354_v41 = vpop.permute.xlu1 %2353  ;;  %v2374_v43 = vpop.permute.xlu2 %2373  ;;  %392 = vst.msk [vmem:[%s5634_s1 + $0x1fc] sm:$0x1] %vm264_vm0, %v2104_v35  ;;  %v2232_v44 = vperm.slane %v2104_v35, 0 }
 0x3c1   :  { %2677 = vst.msk [vmem:[%s5634_s1 + $0xf3] sm:$0x1] %vm264_vm0, %v2354_v41  ;;  %v2230_v41 = vperm.slane %v2102_v14, 0 }
 0x3c2   :  { %2687 = vst.msk [vmem:[%s5634_s1 + $0x11b] sm:$0x1] %vm264_vm0, %v2374_v43  ;;  %v2231_v43 = vperm.slane %v2103_v16, 0 }
 0x3c4   :  { %2441 = vrot.lane.b32.xlu0 %v2209_v42, %s2754_s29 }
 0x3c6   :  { %2443 = vrot.lane.b32.xlu1 %v2210_v45, %s2754_s29  ;;  %v2358_v51 = vpop.permute.xlu0 %2357  ;;  %2445 = vrot.lane.b32.xlu2 %v2211_v47, %s2754_s29 }
 0x3c7   :  { %2679 = vst.msk [vmem:[%s5634_s1 + $0xfb] sm:$0x1] %vm264_vm0, %v2358_v51 }
 0x3c8   :  { %v2360_v53 = vpop.permute.xlu1 %2359  ;;  %v2380_v54 = vpop.permute.xlu2 %2379 }
 0x3c9   :  { %2680 = vst.msk [vmem:[%s5634_s1 + $0xff] sm:$0x1] %vm264_vm0, %v2360_v53 }
 0x3ca   :  { %2690 = vst.msk [vmem:[%s5634_s1 + $0x127] sm:$0x1] %vm264_vm0, %v2380_v54 }
 0x3cc   :  { %2447 = vrot.lane.b32.xlu0 %v2212_v52, %s2754_s29 }
 0x3ce   :  { %2449 = vrot.lane.b32.xlu1 %v2213_v55, %s2754_s29  ;;  %v2364_v60 = vpop.permute.xlu0 %2363  ;;  %2451 = vrot.lane.b32.xlu2 %v2214_v58, %s2754_s29 }
 0x3cf   :  { %2682 = vst.msk [vmem:[%s5634_s1 + $0x107] sm:$0x1] %vm264_vm0, %v2364_v60 }
 0x3d0   :  { %v2366_v62 = vpop.permute.xlu1 %2365  ;;  %v2386_v0 = vpop.permute.xlu2 %2385 }
 0x3d1   :  { %2683 = vst.msk [vmem:[%s5634_s1 + $0x10b] sm:$0x1] %vm264_vm0, %v2366_v62 }
 0x3d2   :  { %2693 = vst.msk [vmem:[%s5634_s1 + $0x133] sm:$0x1] %vm264_vm0, %v2386_v0 }
 0x3d4   :  { %2453 = vrot.lane.b32.xlu0 %v2215_v63, %s2754_s29 }
 0x3d6   :  { %2455 = vrot.lane.b32.xlu1 %v2216_v2, %s2754_s29  ;;  %v2370_v5 = vpop.permute.xlu0 %2369  ;;  %2457 = vrot.lane.b32.xlu2 %v2217_v4, %s2754_s29 }
 0x3d7   :  { %2685 = vst.msk [vmem:[%s5634_s1 + $0x113] sm:$0x1] %vm264_vm0, %v2370_v5 }
 0x3d8   :  { %v2372_v8 = vpop.permute.xlu1 %2371  ;;  %v2392_v11 = vpop.permute.xlu2 %2391 }
 0x3d9   :  { %2686 = vst.msk [vmem:[%s5634_s1 + $0x117] sm:$0x1] %vm264_vm0, %v2372_v8 }
 0x3da   :  { %2696 = vst.msk [vmem:[%s5634_s1 + $0x13f] sm:$0x1] %vm264_vm0, %v2392_v11 }
 0x3dc   :  { %2459 = vrot.lane.b32.xlu0 %v2218_v10, %s2754_s29 }
 0x3de   :  { %2461 = vrot.lane.b32.xlu1 %v2219_v13, %s2754_s29  ;;  %v2376_v17 = vpop.permute.xlu0 %2375  ;;  %2463 = vrot.lane.b32.xlu2 %v2220_v15, %s2754_s29 }
 0x3df   :  { %2688 = vst.msk [vmem:[%s5634_s1 + $0x11f] sm:$0x1] %vm264_vm0, %v2376_v17 }
 0x3e0   :  { %v2378_v18 = vpop.permute.xlu1 %2377  ;;  %v2398_v20 = vpop.permute.xlu2 %2397 }
 0x3e1   :  { %2689 = vst.msk [vmem:[%s5634_s1 + $0x123] sm:$0x1] %vm264_vm0, %v2378_v18  ;;  %v8_v18 = vld [vmem:[%s5633_s0] sm:$0xff] }
 0x3e2   :  { %2699 = vst.msk [vmem:[%s5634_s1 + $0x14b] sm:$0x1] %vm264_vm0, %v2398_v20  ;;  %v41_v21 = vrot.slane %v8_v18, 2  ;;  %v45_v28 = vrot.slane %v8_v18, 6 }
 0x3e3   :  { %265 = vst.msk [vmem:[%s5634_s1] sm:$0x1] %vm264_vm0, %v8_v18 }
 0x3e4   :  { %2465 = vrot.lane.b32.xlu0 %v2221_v19, %s2754_s29  ;;  %v40_v19 = vrot.slane %v8_v18, 1  ;;  %267 = vst.msk [vmem:[%s5634_s1 + $0x8] sm:$0x1] %vm264_vm0, %v41_v21 }
 0x3e5   :  { %271 = vst.msk [vmem:[%s5634_s1 + $0x18] sm:$0x1] %vm264_vm0, %v45_v28 }
 0x3e6   :  { %2467 = vrot.lane.b32.xlu1 %v2222_v22, %s2754_s29  ;;  %v2382_v23 = vpop.permute.xlu0 %2381  ;;  %2469 = vrot.lane.b32.xlu2 %v2223_v24, %s2754_s29  ;;  %v42_v24 = vrot.slane %v8_v18, 3  ;;  %266 = vst.msk [vmem:[%s5634_s1 + $0x4] sm:$0x1] %vm264_vm0, %v40_v19 }
 0x3e7   :  { %2691 = vst.msk [vmem:[%s5634_s1 + $0x12b] sm:$0x1] %vm264_vm0, %v2382_v23  ;;  %v43_v23 = vrot.slane %v8_v18, 4 }
 0x3e8   :  { %v2384_v25 = vpop.permute.xlu1 %2383  ;;  %v2404_v27 = vpop.permute.xlu2 %2403  ;;  %268 = vst.msk [vmem:[%s5634_s1 + $0xc] sm:$0x1] %vm264_vm0, %v42_v24 }
 0x3e9   :  { %2692 = vst.msk [vmem:[%s5634_s1 + $0x12f] sm:$0x1] %vm264_vm0, %v2384_v25  ;;  %v44_v25 = vrot.slane %v8_v18, 5 }
 0x3ea   :  { %2702 = vst.msk [vmem:[%s5634_s1 + $0x157] sm:$0x1] %vm264_vm0, %v2404_v27  ;;  %v9_v27 = vld [vmem:[%s5633_s0 + $0x8] sm:$0xff] }
 0x3eb   :  { %269 = vst.msk [vmem:[%s5634_s1 + $0x10] sm:$0x1] %vm264_vm0, %v43_v23  ;;  %v49_v35 = vrot.slane %v9_v27, 3 }
 0x3ec   :  { %2471 = vrot.lane.b32.xlu0 %v2224_v26, %s2754_s29  ;;  %270 = vst.msk [vmem:[%s5634_s1 + $0x14] sm:$0x1] %vm264_vm0, %v44_v25 }
 0x3ed   :  { %273 = vst.msk [vmem:[%s5634_s1 + $0x20] sm:$0x1] %vm264_vm0, %v9_v27 }
 0x3ee   :  { %2473 = vrot.lane.b32.xlu1 %v2225_v29, %s2754_s29  ;;  %v2388_v31 = vpop.permute.xlu0 %2387  ;;  %2475 = vrot.lane.b32.xlu2 %v2226_v30, %s2754_s29  ;;  %v46_v30 = vrot.slane %v8_v18, 7  ;;  %276 = vst.msk [vmem:[%s5634_s1 + $0x2c] sm:$0x1] %vm264_vm0, %v49_v35 }
 0x3ef   :  { %2694 = vst.msk [vmem:[%s5634_s1 + $0x137] sm:$0x1] %vm264_vm0, %v2388_v31 }
 0x3f0   :  { %v2390_v32 = vpop.permute.xlu1 %2389  ;;  %v2410_v34 = vpop.permute.xlu2 %2409  ;;  %272 = vst.msk [vmem:[%s5634_s1 + $0x1c] sm:$0x1] %vm264_vm0, %v46_v30 }
 0x3f1   :  { %2695 = vst.msk [vmem:[%s5634_s1 + $0x13b] sm:$0x1] %vm264_vm0, %v2390_v32  ;;  %v47_v32 = vrot.slane %v9_v27, 1 }
 0x3f2   :  { %2705 = vst.msk [vmem:[%s5634_s1 + $0x163] sm:$0x1] %vm264_vm0, %v2410_v34 }
 0x3f3   :  { %274 = vst.msk [vmem:[%s5634_s1 + $0x24] sm:$0x1] %vm264_vm0, %v47_v32 }
 0x3f4   :  { %2477 = vrot.lane.b32.xlu0 %v2227_v33, %s2754_s29  ;;  %v48_v33 = vrot.slane %v9_v27, 2 }
 0x3f6   :  { %2479 = vrot.lane.b32.xlu1 %v2228_v36, %s2754_s29  ;;  %v2394_v40 = vpop.permute.xlu0 %2393  ;;  %2481 = vrot.lane.b32.xlu2 %v2229_v38, %s2754_s29  ;;  %v50_v36 = vrot.slane %v9_v27, 4  ;;  %275 = vst.msk [vmem:[%s5634_s1 + $0x28] sm:$0x1] %vm264_vm0, %v48_v33 }
 0x3f7   :  { %2697 = vst.msk [vmem:[%s5634_s1 + $0x143] sm:$0x1] %vm264_vm0, %v2394_v40  ;;  %v51_v40 = vrot.slane %v9_v27, 5 }
 0x3f8   :  { %v2396_v39 = vpop.permute.xlu1 %2395  ;;  %v2416_v42 = vpop.permute.xlu2 %2415  ;;  %277 = vst.msk [vmem:[%s5634_s1 + $0x30] sm:$0x1] %vm264_vm0, %v50_v36 }
 0x3f9   :  { %2698 = vst.msk [vmem:[%s5634_s1 + $0x147] sm:$0x1] %vm264_vm0, %v2396_v39  ;;  %v52_v39 = vrot.slane %v9_v27, 6 }
 0x3fa   :  { %2708 = vst.msk [vmem:[%s5634_s1 + $0x16f] sm:$0x1] %vm264_vm0, %v2416_v42  ;;  %v10_v42 = vld [vmem:[%s5633_s0 + $0x10] sm:$0xff] }
 0x3fb   :  { %278 = vst.msk [vmem:[%s5634_s1 + $0x34] sm:$0x1] %vm264_vm0, %v51_v40 }
 0x3fc   :  { %2483 = vrot.lane.b32.xlu0 %v2230_v41, %s2754_s29  ;;  %v53_v41 = vrot.slane %v9_v27, 7  ;;  %279 = vst.msk [vmem:[%s5634_s1 + $0x38] sm:$0x1] %vm264_vm0, %v52_v39 }
 0x3fd   :  { %281 = vst.msk [vmem:[%s5634_s1 + $0x40] sm:$0x1] %vm264_vm0, %v10_v42 }
 0x3fe   :  { %2485 = vrot.lane.b32.xlu1 %v2231_v43, %s2754_s29  ;;  %v2400_v45 = vpop.permute.xlu0 %2399  ;;  %2487 = vrot.lane.b32.xlu2 %v2232_v44, %s2754_s29  ;;  %v54_v44 = vrot.slane %v10_v42, 1  ;;  %280 = vst.msk [vmem:[%s5634_s1 + $0x3c] sm:$0x1] %vm264_vm0, %v53_v41 }
 0x3ff   :  { %2700 = vst.msk [vmem:[%s5634_s1 + $0x14f] sm:$0x1] %vm264_vm0, %v2400_v45  ;;  %v55_v45 = vrot.slane %v10_v42, 2 }
 0x400   :  { %v2402_v46 = vpop.permute.xlu1 %2401  ;;  %v2422_v47 = vpop.permute.xlu2 %2421  ;;  %282 = vst.msk [vmem:[%s5634_s1 + $0x44] sm:$0x1] %vm264_vm0, %v54_v44 }
 0x401   :  { %2701 = vst.msk [vmem:[%s5634_s1 + $0x153] sm:$0x1] %vm264_vm0, %v2402_v46 }
 0x402   :  { %2711 = vst.msk [vmem:[%s5634_s1 + $0x17b] sm:$0x1] %vm264_vm0, %v2422_v47  ;;  %v56_v47 = vrot.slane %v10_v42, 3 }
 0x403   :  { %283 = vst.msk [vmem:[%s5634_s1 + $0x48] sm:$0x1] %vm264_vm0, %v55_v45 }
 0x404   :  { %284 = vst.msk [vmem:[%s5634_s1 + $0x4c] sm:$0x1] %vm264_vm0, %v56_v47 }
 0x406   :  { %v2406_v49 = vpop.permute.xlu0 %2405 }
 0x407   :  { %2703 = vst.msk [vmem:[%s5634_s1 + $0x15b] sm:$0x1] %vm264_vm0, %v2406_v49  ;;  %v57_v49 = vrot.slane %v10_v42, 4 }
 0x408   :  { %v2408_v51 = vpop.permute.xlu1 %2407  ;;  %v2428_v53 = vpop.permute.xlu2 %2427 }
 0x409   :  { %2704 = vst.msk [vmem:[%s5634_s1 + $0x15f] sm:$0x1] %vm264_vm0, %v2408_v51  ;;  %v58_v51 = vrot.slane %v10_v42, 5 }
 0x40a   :  { %2714 = vst.msk [vmem:[%s5634_s1 + $0x187] sm:$0x1] %vm264_vm0, %v2428_v53  ;;  %v59_v53 = vrot.slane %v10_v42, 6 }
 0x40b   :  { %285 = vst.msk [vmem:[%s5634_s1 + $0x50] sm:$0x1] %vm264_vm0, %v57_v49 }
 0x40c   :  { %286 = vst.msk [vmem:[%s5634_s1 + $0x54] sm:$0x1] %vm264_vm0, %v58_v51 }
 0x40d   :  { %287 = vst.msk [vmem:[%s5634_s1 + $0x58] sm:$0x1] %vm264_vm0, %v59_v53 }
 0x40e   :  { %v2412_v52 = vpop.permute.xlu0 %2411 }
 0x40f   :  { %2706 = vst.msk [vmem:[%s5634_s1 + $0x167] sm:$0x1] %vm264_vm0, %v2412_v52  ;;  %v11_v52 = vld [vmem:[%s5633_s0 + $0x18] sm:$0xff] }
 0x410   :  { %v2414_v54 = vpop.permute.xlu1 %2413  ;;  %v2434_v55 = vpop.permute.xlu2 %2433  ;;  %289 = vst.msk [vmem:[%s5634_s1 + $0x60] sm:$0x1] %vm264_vm0, %v11_v52 }
 0x411   :  { %2707 = vst.msk [vmem:[%s5634_s1 + $0x16b] sm:$0x1] %vm264_vm0, %v2414_v54 }
 0x412   :  { %2717 = vst.msk [vmem:[%s5634_s1 + $0x193] sm:$0x1] %vm264_vm0, %v2434_v55  ;;  %v60_v55 = vrot.slane %v10_v42, 7 }
 0x414   :  { %288 = vst.msk [vmem:[%s5634_s1 + $0x5c] sm:$0x1] %vm264_vm0, %v60_v55 }
 0x416   :  { %v2418_v56 = vpop.permute.xlu0 %2417 }
 0x417   :  { %2709 = vst.msk [vmem:[%s5634_s1 + $0x173] sm:$0x1] %vm264_vm0, %v2418_v56 }
 0x418   :  { %v2420_v57 = vpop.permute.xlu1 %2419  ;;  %v2440_v58 = vpop.permute.xlu2 %2439 }
 0x419   :  { %2710 = vst.msk [vmem:[%s5634_s1 + $0x177] sm:$0x1] %vm264_vm0, %v2420_v57  ;;  %v61_v57 = vrot.slane %v11_v52, 1 }
 0x41a   :  { %2720 = vst.msk [vmem:[%s5634_s1 + $0x19f] sm:$0x1] %vm264_vm0, %v2440_v58  ;;  %v62_v58 = vrot.slane %v11_v52, 2 }
 0x41b   :  { %290 = vst.msk [vmem:[%s5634_s1 + $0x64] sm:$0x1] %vm264_vm0, %v61_v57 }
 0x41c   :  { %291 = vst.msk [vmem:[%s5634_s1 + $0x68] sm:$0x1] %vm264_vm0, %v62_v58 }
 0x41e   :  { %v2424_v60 = vpop.permute.xlu0 %2423 }
 0x41f   :  { %2712 = vst.msk [vmem:[%s5634_s1 + $0x17f] sm:$0x1] %vm264_vm0, %v2424_v60  ;;  %v63_v60 = vrot.slane %v11_v52, 3 }
 0x420   :  { %v2426_v62 = vpop.permute.xlu1 %2425  ;;  %v2446_v63 = vpop.permute.xlu2 %2445 }
 0x421   :  { %2713 = vst.msk [vmem:[%s5634_s1 + $0x183] sm:$0x1] %vm264_vm0, %v2426_v62  ;;  %v64_v62 = vrot.slane %v11_v52, 4 }
 0x422   :  { %2723 = vst.msk [vmem:[%s5634_s1 + $0x1ab] sm:$0x1] %vm264_vm0, %v2446_v63  ;;  %v65_v63 = vrot.slane %v11_v52, 5 }
 0x423   :  { %292 = vst.msk [vmem:[%s5634_s1 + $0x6c] sm:$0x1] %vm264_vm0, %v63_v60 }
 0x424   :  { %293 = vst.msk [vmem:[%s5634_s1 + $0x70] sm:$0x1] %vm264_vm0, %v64_v62 }
 0x425   :  { %294 = vst.msk [vmem:[%s5634_s1 + $0x74] sm:$0x1] %vm264_vm0, %v65_v63 }
 0x426   :  { %v2430_v0 = vpop.permute.xlu0 %2429 }
 0x427   :  { %2715 = vst.msk [vmem:[%s5634_s1 + $0x18b] sm:$0x1] %vm264_vm0, %v2430_v0  ;;  %v12_v0 = vld [vmem:[%s5633_s0 + $0x20] sm:$0xff] }
 0x428   :  { %v2432_v1 = vpop.permute.xlu1 %2431  ;;  %v2452_v2 = vpop.permute.xlu2 %2451  ;;  %297 = vst.msk [vmem:[%s5634_s1 + $0x80] sm:$0x1] %vm264_vm0, %v12_v0 }
 0x429   :  { %2716 = vst.msk [vmem:[%s5634_s1 + $0x18f] sm:$0x1] %vm264_vm0, %v2432_v1  ;;  %v66_v1 = vrot.slane %v11_v52, 6 }
 0x42a   :  { %2726 = vst.msk [vmem:[%s5634_s1 + $0x1b7] sm:$0x1] %vm264_vm0, %v2452_v2  ;;  %v67_v2 = vrot.slane %v11_v52, 7 }
 0x42b   :  { %295 = vst.msk [vmem:[%s5634_s1 + $0x78] sm:$0x1] %vm264_vm0, %v66_v1 }
 0x42c   :  { %296 = vst.msk [vmem:[%s5634_s1 + $0x7c] sm:$0x1] %vm264_vm0, %v67_v2 }
 0x42e   :  { %v2436_v3 = vpop.permute.xlu0 %2435 }
 0x42f   :  { %2718 = vst.msk [vmem:[%s5634_s1 + $0x197] sm:$0x1] %vm264_vm0, %v2436_v3  ;;  %v68_v3 = vrot.slane %v12_v0, 1 }
 0x430   :  { %v2438_v4 = vpop.permute.xlu1 %2437  ;;  %v2458_v6 = vpop.permute.xlu2 %2457 }
 0x431   :  { %2719 = vst.msk [vmem:[%s5634_s1 + $0x19b] sm:$0x1] %vm264_vm0, %v2438_v4  ;;  %v69_v4 = vrot.slane %v12_v0, 2 }
 0x432   :  { %2729 = vst.msk [vmem:[%s5634_s1 + $0x1c3] sm:$0x1] %vm264_vm0, %v2458_v6  ;;  %v70_v6 = vrot.slane %v12_v0, 3 }
 0x433   :  { %298 = vst.msk [vmem:[%s5634_s1 + $0x84] sm:$0x1] %vm264_vm0, %v68_v3 }
 0x434   :  { %299 = vst.msk [vmem:[%s5634_s1 + $0x88] sm:$0x1] %vm264_vm0, %v69_v4 }
 0x435   :  { %300 = vst.msk [vmem:[%s5634_s1 + $0x8c] sm:$0x1] %vm264_vm0, %v70_v6 }
 0x436   :  { %v2442_v5 = vpop.permute.xlu0 %2441 }
 0x437   :  { %2721 = vst.msk [vmem:[%s5634_s1 + $0x1a3] sm:$0x1] %vm264_vm0, %v2442_v5  ;;  %v71_v5 = vrot.slane %v12_v0, 4 }
 0x438   :  { %v2444_v8 = vpop.permute.xlu1 %2443  ;;  %v2464_v10 = vpop.permute.xlu2 %2463 }
 0x439   :  { %2722 = vst.msk [vmem:[%s5634_s1 + $0x1a7] sm:$0x1] %vm264_vm0, %v2444_v8  ;;  %v72_v8 = vrot.slane %v12_v0, 5 }
 0x43a   :  { %2732 = vst.msk [vmem:[%s5634_s1 + $0x1cf] sm:$0x1] %vm264_vm0, %v2464_v10  ;;  %v13_v10 = vld [vmem:[%s5633_s0 + $0x28] sm:$0xff] }
 0x43b   :  { %301 = vst.msk [vmem:[%s5634_s1 + $0x90] sm:$0x1] %vm264_vm0, %v71_v5  ;;  %v80_v18 = vrot.slane %v13_v10, 6  ;;  %v81_v19 = vrot.slane %v13_v10, 7 }
 0x43c   :  { %302 = vst.msk [vmem:[%s5634_s1 + $0x94] sm:$0x1] %vm264_vm0, %v72_v8 }
 0x43d   :  { %305 = vst.msk [vmem:[%s5634_s1 + $0xa0] sm:$0x1] %vm264_vm0, %v13_v10 }
 0x43e   :  { %v2448_v11 = vpop.permute.xlu0 %2447  ;;  %311 = vst.msk [vmem:[%s5634_s1 + $0xb8] sm:$0x1] %vm264_vm0, %v80_v18 }
 0x43f   :  { %2724 = vst.msk [vmem:[%s5634_s1 + $0x1af] sm:$0x1] %vm264_vm0, %v2448_v11  ;;  %v73_v11 = vrot.slane %v12_v0, 6 }
 0x440   :  { %v2450_v12 = vpop.permute.xlu1 %2449  ;;  %v2470_v13 = vpop.permute.xlu2 %2469  ;;  %312 = vst.msk [vmem:[%s5634_s1 + $0xbc] sm:$0x1] %vm264_vm0, %v81_v19 }
 0x441   :  { %2725 = vst.msk [vmem:[%s5634_s1 + $0x1b3] sm:$0x1] %vm264_vm0, %v2450_v12  ;;  %v74_v12 = vrot.slane %v12_v0, 7 }
 0x442   :  { %2735 = vst.msk [vmem:[%s5634_s1 + $0x1db] sm:$0x1] %vm264_vm0, %v2470_v13  ;;  %v75_v13 = vrot.slane %v13_v10, 1 }
 0x443   :  { %303 = vst.msk [vmem:[%s5634_s1 + $0x98] sm:$0x1] %vm264_vm0, %v73_v11 }
 0x444   :  { %304 = vst.msk [vmem:[%s5634_s1 + $0x9c] sm:$0x1] %vm264_vm0, %v74_v12 }
 0x445   :  { %306 = vst.msk [vmem:[%s5634_s1 + $0xa4] sm:$0x1] %vm264_vm0, %v75_v13 }
 0x446   :  { %v2454_v14 = vpop.permute.xlu0 %2453 }
 0x447   :  { %2727 = vst.msk [vmem:[%s5634_s1 + $0x1bb] sm:$0x1] %vm264_vm0, %v2454_v14  ;;  %v76_v14 = vrot.slane %v13_v10, 2 }
 0x448   :  { %v2456_v15 = vpop.permute.xlu1 %2455  ;;  %v2476_v16 = vpop.permute.xlu2 %2475 }
 0x449   :  { %2728 = vst.msk [vmem:[%s5634_s1 + $0x1bf] sm:$0x1] %vm264_vm0, %v2456_v15  ;;  %v77_v15 = vrot.slane %v13_v10, 3 }
 0x44a   :  { %2738 = vst.msk [vmem:[%s5634_s1 + $0x1e7] sm:$0x1] %vm264_vm0, %v2476_v16  ;;  %v78_v16 = vrot.slane %v13_v10, 4 }
 0x44b   :  { %307 = vst.msk [vmem:[%s5634_s1 + $0xa8] sm:$0x1] %vm264_vm0, %v76_v14 }
 0x44c   :  { %308 = vst.msk [vmem:[%s5634_s1 + $0xac] sm:$0x1] %vm264_vm0, %v77_v15 }
 0x44d   :  { %309 = vst.msk [vmem:[%s5634_s1 + $0xb0] sm:$0x1] %vm264_vm0, %v78_v16 }
 0x44e   :  { %v2460_v17 = vpop.permute.xlu0 %2459 }
 0x44f   :  { %2730 = vst.msk [vmem:[%s5634_s1 + $0x1c7] sm:$0x1] %vm264_vm0, %v2460_v17  ;;  %v79_v17 = vrot.slane %v13_v10, 5 }
 0x450   :  { %v2462_v20 = vpop.permute.xlu1 %2461  ;;  %v2482_v22 = vpop.permute.xlu2 %2481 }
 0x451   :  { %2731 = vst.msk [vmem:[%s5634_s1 + $0x1cb] sm:$0x1] %vm264_vm0, %v2462_v20 }
 0x452   :  { %2741 = vst.msk [vmem:[%s5634_s1 + $0x1f3] sm:$0x1] %vm264_vm0, %v2482_v22 }
 0x453   :  { %310 = vst.msk [vmem:[%s5634_s1 + $0xb4] sm:$0x1] %vm264_vm0, %v79_v17 }
 0x456   :  { %v2466_v26 = vpop.permute.xlu0 %2465 }
 0x457   :  { %2733 = vst.msk [vmem:[%s5634_s1 + $0x1d3] sm:$0x1] %vm264_vm0, %v2466_v26 }
 0x458   :  { %v2468_v29 = vpop.permute.xlu1 %2467  ;;  %v2488_v31 = vpop.permute.xlu2 %2487 }
 0x459   :  { %2734 = vst.msk [vmem:[%s5634_s1 + $0x1d7] sm:$0x1] %vm264_vm0, %v2468_v29 }
 0x45a   :  { %2744 = vst.msk [vmem:[%s5634_s1 + $0x1ff] sm:$0x1] %vm264_vm0, %v2488_v31 }
 0x45e   :  { %v2472_v34 = vpop.permute.xlu0 %2471 }
 0x45f   :  { %2736 = vst.msk [vmem:[%s5634_s1 + $0x1df] sm:$0x1] %vm264_vm0, %v2472_v34 }
 0x460   :  { %v2474_v38 = vpop.permute.xlu1 %2473 }
 0x461   :  { %2737 = vst.msk [vmem:[%s5634_s1 + $0x1e3] sm:$0x1] %vm264_vm0, %v2474_v38 }
 0x466   :  { %v2478_v43 = vpop.permute.xlu0 %2477 }
 0x467   :  { %2739 = vst.msk [vmem:[%s5634_s1 + $0x1eb] sm:$0x1] %vm264_vm0, %v2478_v43 }
 0x468   :  { %v2480_v46 = vpop.permute.xlu1 %2479 }
 0x469   :  { %2740 = vst.msk [vmem:[%s5634_s1 + $0x1ef] sm:$0x1] %vm264_vm0, %v2480_v46 }
 0x46e   :  { %v2484_v54 = vpop.permute.xlu0 %2483 }
 0x46f   :  { %2742 = vst.msk [vmem:[%s5634_s1 + $0x1f7] sm:$0x1] %vm264_vm0, %v2484_v54 }
 0x470   :  { %v2486_v56 = vpop.permute.xlu1 %2485 }
 0x471   :  { %2743 = vst.msk [vmem:[%s5634_s1 + $0x1fb] sm:$0x1] %vm264_vm0, %v2486_v56 }

</bundles_post_ra>
